<compile_context>
chip_gen: v5e
topology: v5e:2x2
jax: 0.10.0
libtpu: 0.0.40
codegen_flags: <defaults>
</compile_context>

<pallas_src>
import math

import jax
import jax.numpy as jnp
from jax.experimental import pallas as pl
from jax.experimental.pallas import tpu as pltpu


def _fold_taps(c):
    # Fold the 3 dx taps along K only when the windows are lane-aligned
    # (c % 128 == 0) and the per-tap K=c underfills the 256-wide MXU
    # (c <= 128).  C=64 keeps the 9-tap path (lane-unaligned concatenation
    # costs XLU shuffles that outweigh the fill benefit at half lane
    # occupancy); C >= 256 already fills the MXU per tap.
    return (c % 128 == 0) and (c <= 128)


def _make_resnet_block_kernel(H, W, has_shortcut):
    N = H * W
    P = ((W + 1 + 7) // 8) * 8      # halo rows each side (>= W+1, 8-aligned)
    eps = 1e-6

    def _gn_affine(x_f32, g_ref, gamma_ref, beta_ref):
        # Fold GroupNorm(G) + affine into y = x * a + b (per-channel a, b).
        # g_ref: (C, G) one-hot group-membership matrix (f32).
        g = g_ref[...]
        group_size = x_f32.shape[1] // g.shape[1]
        cnt = jnp.float32(N * group_size)
        s = jnp.sum(x_f32, axis=0, keepdims=True)                 # (1, C)
        ss = jnp.sum(x_f32 * x_f32, axis=0, keepdims=True)        # (1, C)
        # Fused stat matmuls: one (2,C)@(C,G) gather + one (2,G)x(C,G)
        # scatter instead of four tiny M=1 MXU pushes.
        stat = jnp.concatenate([s, ss], axis=0)                   # (2, C)
        gstat = jnp.dot(stat, g, preferred_element_type=jnp.float32)   # (2, G)
        dn = (((1,), (1,)), ((), ()))
        cstat = jax.lax.dot_general(gstat, g, dn,
                                    preferred_element_type=jnp.float32)  # (2, C)
        mean_c = cstat[0:1, :] / cnt
        ex2_c = cstat[1:2, :] / cnt
        # NOTE: E[x^2]-E[x]^2 can cancel when |mean| >> std; activations here
        # are either the raw input or conv outputs of zero-mean weights, so
        # this is benign.  Switch to a centered two-pass if that breaks.
        var_c = ex2_c - mean_c * mean_c
        inv = jax.lax.rsqrt(var_c + eps)
        a = gamma_ref[...] * inv                                  # (1, C)
        b = beta_ref[...] - mean_c * a                            # (1, C)
        return a, b

    def _swish(h):
        # sigmoid via EUP exp + EUP approximate reciprocal (no VPU divide).
        return h * pl.reciprocal(1.0 + jnp.exp(-h), approx=True)

    def _conv3x3(src_f32, pad_ref, w_ref, b_ref, masks):
        # src_f32: (N, Cin) f32.  pad_ref: (P+N+P, Cin) bf16 staging buffer.
        # w_ref: (3, 3*Cin, Cout) bf16 when dx taps are folded along K,
        #        (9,   Cin, Cout) bf16 otherwise.
        cin = src_f32.shape[1]
        cout = w_ref.shape[2]
        folded = w_ref.shape[0] == 3

        # bf16 staging: cast once here; all tap reads below reuse it.
        # The halos are re-zeroed every grid step: that is only 2*P rows
        # (negligible next to the N-row token store) and it keeps the kernel
        # correct when the "parallel" batch axis is split across TensorCores
        # on v7x (a pl.when(program_id==0) gate would leave the second core's
        # scratch halos uninitialized).
        zeros_halo = jnp.zeros((P, cin), jnp.bfloat16)
        pad_ref[pl.ds(0, P), :] = zeros_halo
        pad_ref[pl.ds(P + N, P), :] = zeros_halo
        pad_ref[pl.ds(P, N), :] = src_f32.astype(jnp.bfloat16)

        acc = jnp.zeros((N, cout), jnp.float32)
        if folded:
            # 3 matmuls with K = 3*Cin.  dy out-of-range reads land in the
            # zeroed halos; dx = +/-1 windows mask tokens whose shifted read
            # would wrap across an image-row boundary.
            for t, dy in enumerate((-1, 0, 1)):
                base = P + dy * W
                win_m = jnp.where(masks[-1], pad_ref[pl.ds(base - 1, N), :], 0.0)
                win_0 = pad_ref[pl.ds(base, N), :]
                win_p = jnp.where(masks[1], pad_ref[pl.ds(base + 1, N), :], 0.0)
                cat = jnp.concatenate([win_m, win_0, win_p], axis=1)  # (N, 3*Cin) bf16
                acc = acc + jnp.dot(cat, w_ref[t],
                                    preferred_element_type=jnp.float32)
        else:
            # 9 shifted (N, Cin) @ (Cin, Cout) matmuls.
            t = 0
            for dy in (-1, 0, 1):
                for dx in (-1, 0, 1):
                    win = pad_ref[pl.ds(P + dy * W + dx, N), :]   # bf16
                    if dx != 0:
                        win = jnp.where(masks[dx], win, 0.0)
                    acc = acc + jnp.dot(win, w_ref[t],
                                        preferred_element_type=jnp.float32)
                    t += 1
        return acc + b_ref[...]

    def kernel(*args):
        if has_shortcut:
            (x_ref, g1_ref, gm1_ref, bt1_ref, w1_ref, b1_ref,
             g2_ref, gm2_ref, bt2_ref, w2_ref, b2_ref,
             wn_ref, bn_ref, o_ref, pad1_ref, pad2_ref) = args
        else:
            (x_ref, g1_ref, gm1_ref, bt1_ref, w1_ref, b1_ref,
             g2_ref, gm2_ref, bt2_ref, w2_ref, b2_ref,
             o_ref, pad1_ref, pad2_ref) = args

        x = x_ref[0].astype(jnp.float32)                 # (N, Cin)

        # Column masks for dx = -1 / +1 taps (tokens whose shifted read would
        # wrap across a row boundary).  dy out-of-range is handled by the
        # zeroed staging halos.
        col = jax.lax.broadcasted_iota(jnp.int32, (N, 1), 0) % W
        masks = {-1: col >= 1, 1: col < (W - 1)}

        # norm1 -> swish -> conv1
        a1, c1 = _gn_affine(x, g1_ref, gm1_ref, bt1_ref)
        h = _swish(x * a1 + c1)
        h = _conv3x3(h, pad1_ref, w1_ref, b1_ref, masks)      # (N, Cout) f32

        # norm2 -> swish -> conv2
        a2, c2 = _gn_affine(h, g2_ref, gm2_ref, bt2_ref)
        h = _swish(h * a2 + c2)
        h = _conv3x3(h, pad2_ref, w2_ref, b2_ref, masks)      # (N, Cout) f32

        # residual: 1x1 nin_shortcut when Cin != Cout, else identity
        if has_shortcut:
            xs = jnp.dot(x.astype(jnp.bfloat16), wn_ref[...],
                         preferred_element_type=jnp.float32) + bn_ref[...]
        else:
            xs = x
        o_ref[0] = (xs + h).astype(o_ref.dtype)

    return kernel, P


def _vmem_limit_bytes(N, cin, cout, P, has_shortcut):
    """Size vmem_limit from the actual buffer set (2x margin, 56 MiB cap)."""
    f32, bf16 = 4, 2
    io = 2 * N * cin * f32 + 2 * N * cout * f32                  # dbl-buffered x / out
    const = ((3 * 3 * cin * cout + 3 * 3 * cout * cout) * bf16   # conv weights
             + 32 * (cin + cout) * f32                           # one-hot group mats
             + (2 * cin + 4 * cout) * f32)                       # gammas/betas/biases
    if has_shortcut:
        const += cin * cout * bf16 + cout * f32
    const *= 2                                                   # default double-buffer
    scratch = (2 * P + N) * (cin + cout) * bf16                  # bf16 staging buffers
    temps = (4 * N * 3 * max(cin, cout) * bf16                   # folded tap windows
             + 8 * N * max(cin, cout) * f32)                     # f32 value temporaries
    est = io + const + scratch + temps
    return int(min(56 * 2 ** 20, max(2 * est, 16 * 2 ** 20)))


def _prep_conv_weight(w):
    """(Cout, Cin, 3, 3) -> per-tap bf16 MXU operand.

    Folded layout (3, 3*Cin, Cout) when _fold_taps(Cin), else (9, Cin, Cout).
    Row order of the folded K axis is [dx=-1 | dx=0 | dx=+1] blocks of Cin,
    matching the lane-concatenated window in the kernel.
    """
    cout, cin = w.shape[0], w.shape[1]
    wt = jnp.transpose(w, (2, 3, 1, 0))                          # (kh, kw, Cin, Cout)
    if _fold_taps(cin):
        return wt.reshape(3, 3 * cin, cout).astype(jnp.bfloat16)
    return wt.reshape(9, cin, cout).astype(jnp.bfloat16)


def resnet_block_nhwc(x_nhwc, params, *, in_channels, out_channels, num_groups=32):
    B, H, W, cin = x_nhwc.shape
    assert cin == in_channels
    cout = out_channels
    assert cin % num_groups == 0 and cout % num_groups == 0
    N = H * W
    has_shortcut = in_channels != out_channels

    kernel, P = _make_resnet_block_kernel(H, W, has_shortcut)

    x_tok = x_nhwc.reshape(B, N, cin)

    eye = jnp.eye(num_groups, dtype=jnp.float32)
    g1 = jnp.repeat(eye, cin // num_groups, axis=0)              # (cin, 32)
    g2 = jnp.repeat(eye, cout // num_groups, axis=0)             # (cout, 32)

    gamma1 = params["gn1_g"].reshape(1, cin).astype(jnp.float32)
    beta1 = params["gn1_b"].reshape(1, cin).astype(jnp.float32)
    gamma2 = params["gn2_g"].reshape(1, cout).astype(jnp.float32)
    beta2 = params["gn2_b"].reshape(1, cout).astype(jnp.float32)

    w1 = _prep_conv_weight(params["w1"])          # conv1: Cin = cin
    w2 = _prep_conv_weight(params["w2"])          # conv2: Cin = cout
    b1 = params["b1"].reshape(1, cout).astype(jnp.float32)
    b2 = params["b2"].reshape(1, cout).astype(jnp.float32)

    const_ops = [g1, gamma1, beta1, w1, b1, g2, gamma2, beta2, w2, b2]
    if has_shortcut:
        wn = jnp.transpose(params["wn"], (1, 0)).astype(jnp.bfloat16)   # (cin, cout)
        bn = params["bn"].reshape(1, cout).astype(jnp.float32)
        const_ops += [wn, bn]

    def const_spec(arr):
        if arr.ndim == 2:
            return pl.BlockSpec(arr.shape, lambda b: (0, 0))
        return pl.BlockSpec(arr.shape, lambda b: (0, 0, 0))

    # TODO(synk): the constant operands (weights/affines) have a constant
    # index_map and could be single-buffered via pipeline_mode=pl.Buffered(1)
    # to save ~half their VMEM at C=512; kept at the default double-buffer
    # here for portability (their bf16 cast already halves the footprint).
    in_specs = [pl.BlockSpec((1, N, cin), lambda b: (b, 0, 0))]
    in_specs += [const_spec(a) for a in const_ops]

    # TODO(synk): for very large feature maps (e.g. 64x64x512 on v7x's 64 MiB
    # VMEM) add a row-block grid axis with 1-row halos; because GroupNorm
    # statistics are global over H*W this needs a two-pass structure (stats
    # pass, then normalize+conv pass) or cross-row-block accumulation.
    # TODO(synk): accept/emit bf16 at the pallas_call boundary when the
    # surrounding pipeline tolerates it (halves HBM DMA and I/O VMEM).
    out = pl.pallas_call(
        kernel,
        out_shape=jax.ShapeDtypeStruct((B, N, cout), jnp.float32),
        grid_spec=pltpu.PrefetchScalarGridSpec(
            num_scalar_prefetch=0,
            grid=(B,),
            in_specs=in_specs,
            out_specs=pl.BlockSpec((1, N, cout), lambda b: (b, 0, 0)),
            scratch_shapes=[
                pltpu.VMEM((P + N + P, cin), jnp.bfloat16),   # conv1 staging (bf16)
                pltpu.VMEM((P + N + P, cout), jnp.bfloat16),  # conv2 staging (bf16)
            ],
        ),
        compiler_params=pltpu.CompilerParams(
            # Megacore (v7x) shards the batch axis; it engages whenever the
            # per-chip batch is >= 2 (true in the test below).
            dimension_semantics=("parallel",),
            vmem_limit_bytes=_vmem_limit_bytes(N, cin, cout, P, has_shortcut),
        ),
    )(x_tok, *const_ops)

    return out.reshape(B, H, W, cout)


def resnet_block(x_nchw, params, *, in_channels, out_channels):
    """NCHW adapter for PyTorch parity.

    Prefer calling resnet_block_nhwc directly from an NHWC pipeline to avoid
    the two layout transposes around the kernel.
    """
    x_nhwc = jnp.transpose(x_nchw, (0, 2, 3, 1))
    out_nhwc = resnet_block_nhwc(x_nhwc, params,
                                 in_channels=in_channels, out_channels=out_channels)
    return jnp.transpose(out_nhwc, (0, 3, 1, 2))


def resnet_block_ref(x_nchw, params, *, in_channels, out_channels, num_groups=32):
    """Pure-JAX f32 reference mirroring the PyTorch forward."""
    def gn(x, gamma, beta):
        B, C, H, W = x.shape
        xg = x.reshape(B, num_groups, C // num_groups, H, W)
        mean = jnp.mean(xg, axis=(2, 3, 4), keepdims=True)
        var = jnp.var(xg, axis=(2, 3, 4), keepdims=True)
        xn = ((xg - mean) / jnp.sqrt(var + 1e-6)).reshape(B, C, H, W)
        return xn * gamma[None, :, None, None] + beta[None, :, None, None]

    def swish(t):
        return t * jax.nn.sigmoid(t)

    def conv3x3(t, w, b):
        out = jax.lax.conv_general_dilated(
            t, w, window_strides=(1, 1), padding=((1, 1), (1, 1)),
            dimension_numbers=("NCHW", "OIHW", "NCHW"))
        return out + b[None, :, None, None]

    h = conv3x3(swish(gn(x_nchw, params["gn1_g"], params["gn1_b"])),
                params["w1"], params["b1"])
    h = conv3x3(swish(gn(h, params["gn2_g"], params["gn2_b"])),
                params["w2"], params["b2"])
    if in_channels != out_channels:
        x_nchw = (jnp.einsum("bchw,oc->bohw", x_nchw, params["wn"])
                  + params["bn"][None, :, None, None])
    return x_nchw + h


def init_params(key, cin, cout):
    ks = jax.random.split(key, 10)

    def uni(k, shape, fan_in):
        bound = 1.0 / math.sqrt(fan_in)
        return jax.random.uniform(k, shape, jnp.float32, -bound, bound)

    p = {
        "gn1_g": 1.0 + 0.1 * jax.random.normal(ks[0], (cin,), jnp.float32),
        "gn1_b": 0.1 * jax.random.normal(ks[1], (cin,), jnp.float32),
        "w1": uni(ks[2], (cout, cin, 3, 3), cin * 9),
        "b1": uni(ks[3], (cout,), cin * 9),
        "gn2_g": 1.0 + 0.1 * jax.random.normal(ks[4], (cout,), jnp.float32),
        "gn2_b": 0.1 * jax.random.normal(ks[5], (cout,), jnp.float32),
        "w2": uni(ks[6], (cout, cout, 3, 3), cout * 9),
        "b2": uni(ks[7], (cout,), cout * 9),
    }
    if cin != cout:
        p["wn"] = uni(ks[8], (cout, cin), cin)   # 1x1 nin_shortcut
        p["bn"] = uni(ks[9], (cout,), cin)
    return p


if __name__ == "__main__":
    key = jax.random.PRNGKey(0)
    B, H, W = 2, 8, 8
    # Case 1 exercises the nin_shortcut path plus the K-folded conv2 (Cin=128);
    # case 2 exercises the identity-residual, per-tap (Cin=64) path.
    for cin, cout in ((64, 128), (64, 64)):
        key, kx, kp = jax.random.split(key, 3)
        x = jax.random.normal(kx, (B, cin, H, W), jnp.float32)
        params = init_params(kp, cin, cout)

        out = resnet_block(x, params, in_channels=cin, out_channels=cout)
        jax.block_until_ready(out)

        ref = resnet_block_ref(x, params, in_channels=cin, out_channels=cout)
        assert out.shape == (B, cout, H, W)
        err = float(jnp.max(jnp.abs(out - ref)))
        # Tolerance reflects bf16 MXU operands (f32 accumulation) and the
        # approximate EUP reciprocal in swish vs. the pure-f32 reference.
        assert err < 1e-1, f"max abs err {err}"
    print("KERNEL_OK")
</pallas_src>

<mosaic_0001>
module attributes {stable_mosaic.version = 11 : i64} {
  func.func @kernel(%arg0: i32, %arg1: memref<1x64x64xf32, #tpu.memory_space<vmem>>, %arg2: memref<64x32xf32, #tpu.memory_space<vmem>>, %arg3: memref<1x64xf32, #tpu.memory_space<vmem>>, %arg4: memref<1x64xf32, #tpu.memory_space<vmem>>, %arg5: memref<9x64x128xbf16, #tpu.memory_space<vmem>>, %arg6: memref<1x128xf32, #tpu.memory_space<vmem>>, %arg7: memref<128x32xf32, #tpu.memory_space<vmem>>, %arg8: memref<1x128xf32, #tpu.memory_space<vmem>>, %arg9: memref<1x128xf32, #tpu.memory_space<vmem>>, %arg10: memref<3x384x128xbf16, #tpu.memory_space<vmem>>, %arg11: memref<1x128xf32, #tpu.memory_space<vmem>>, %arg12: memref<64x128xbf16, #tpu.memory_space<vmem>>, %arg13: memref<1x128xf32, #tpu.memory_space<vmem>>, %arg14: memref<1x64x128xf32, #tpu.memory_space<vmem>>, %arg15: memref<96x64xbf16, #tpu.memory_space<vmem>>, %arg16: memref<96x128xbf16, #tpu.memory_space<vmem>>) attributes {dimension_semantics = [#tpu.dimension_semantics<parallel>], iteration_bounds = array<i64: 2>, scalar_prefetch = 0 : i64, scratch_operands = 2 : i64, tpu.core_type = #tpu.core_type<tc>, window_params = [{transform_indices = @transform_0, window_bounds = array<i64: 1, 64, 64>}, {pipeline_mode = #tpu.pipeline_mode<synchronous>, transform_indices = @transform_1, window_bounds = array<i64: 64, 32>}, {pipeline_mode = #tpu.pipeline_mode<synchronous>, transform_indices = @transform_2, window_bounds = array<i64: 1, 64>}, {pipeline_mode = #tpu.pipeline_mode<synchronous>, transform_indices = @transform_3, window_bounds = array<i64: 1, 64>}, {pipeline_mode = #tpu.pipeline_mode<synchronous>, transform_indices = @transform_4, window_bounds = array<i64: 9, 64, 128>}, {pipeline_mode = #tpu.pipeline_mode<synchronous>, transform_indices = @transform_5, window_bounds = array<i64: 1, 128>}, {pipeline_mode = #tpu.pipeline_mode<synchronous>, transform_indices = @transform_6, window_bounds = array<i64: 128, 32>}, {pipeline_mode = #tpu.pipeline_mode<synchronous>, transform_indices = @transform_7, window_bounds = array<i64: 1, 128>}, {pipeline_mode = #tpu.pipeline_mode<synchronous>, transform_indices = @transform_8, window_bounds = array<i64: 1, 128>}, {pipeline_mode = #tpu.pipeline_mode<synchronous>, transform_indices = @transform_9, window_bounds = array<i64: 3, 384, 128>}, {pipeline_mode = #tpu.pipeline_mode<synchronous>, transform_indices = @transform_10, window_bounds = array<i64: 1, 128>}, {pipeline_mode = #tpu.pipeline_mode<synchronous>, transform_indices = @transform_11, window_bounds = array<i64: 64, 128>}, {pipeline_mode = #tpu.pipeline_mode<synchronous>, transform_indices = @transform_12, window_bounds = array<i64: 1, 128>}, {transform_indices = @transform_13, window_bounds = array<i64: 1, 64, 128>}]} {
    %c0 = arith.constant 0 : index
    %c0_0 = arith.constant 0 : index
    %c0_1 = arith.constant 0 : index
    %0 = vector.load %arg1[%c0, %c0_0, %c0_1] : memref<1x64x64xf32, #tpu.memory_space<vmem>>, vector<1x64x64xf32>
    %1 = vector.shape_cast %0 : vector<1x64x64xf32> to vector<64x64xf32>
    %2 = tpu.iota {dimensions = array<i32: 0>} : vector<64x1xi32>
    %c8_i32 = arith.constant 8 : i32
    %c0_i32 = arith.constant 0 : i32
    %3 = arith.cmpi eq, %c8_i32, %c0_i32 : i32
    %c1_i32 = arith.constant 1 : i32
    %4 = arith.select %3, %c1_i32, %c8_i32 : i32
    %5 = vector.broadcast %4 : i32 to vector<64x1xi32>
    %6 = arith.remsi %2, %5 : vector<64x1xi32>
    %c0_i32_2 = arith.constant 0 : i32
    %7 = vector.broadcast %c0_i32_2 : i32 to vector<64x1xi32>
    %8 = arith.cmpi ne, %6, %7 : vector<64x1xi32>
    %c0_i32_3 = arith.constant 0 : i32
    %9 = vector.broadcast %c0_i32_3 : i32 to vector<64x1xi32>
    %10 = arith.cmpi slt, %6, %9 : vector<64x1xi32>
    %c0_i32_4 = arith.constant 0 : i32
    %11 = arith.cmpi slt, %4, %c0_i32_4 : i32
    %12 = vector.broadcast %11 : i1 to vector<64x1xi1>
    %13 = vector.broadcast %12 : vector<64x1xi1> to vector<64x1xi1>
    %14 = arith.xori %10, %13 : vector<64x1xi1>
    %15 = arith.andi %14, %8 : vector<64x1xi1>
    %16 = vector.broadcast %4 : i32 to vector<64x1xi32>
    %17 = arith.addi %6, %16 : vector<64x1xi32>
    %18 = arith.select %15, %17, %6 : vector<64x1xi1>, vector<64x1xi32>
    %c1_i32_5 = arith.constant 1 : i32
    %19 = vector.broadcast %c1_i32_5 : i32 to vector<64x1xi32>
    %20 = arith.cmpi sge, %18, %19 : vector<64x1xi32>
    %c7_i32 = arith.constant 7 : i32
    %21 = vector.broadcast %c7_i32 : i32 to vector<64x1xi32>
    %22 = arith.cmpi slt, %18, %21 : vector<64x1xi32>
    %c0_6 = arith.constant 0 : index
    %c0_7 = arith.constant 0 : index
    %23 = vector.load %arg2[%c0_6, %c0_7] : memref<64x32xf32, #tpu.memory_space<vmem>>, vector<64x32xf32>
    %cst = arith.constant dense<0.000000e+00> : vector<64xf32>
    %24 = vector.multi_reduction <add>, %1, %cst [0] : vector<64x64xf32> to vector<64xf32>
    %25 = vector.shape_cast %24 : vector<64xf32> to vector<1x64xf32>
    %26 = arith.mulf %1, %1 : vector<64x64xf32>
    %cst_8 = arith.constant dense<0.000000e+00> : vector<64xf32>
    %27 = vector.multi_reduction <add>, %26, %cst_8 [0] : vector<64x64xf32> to vector<64xf32>
    %28 = vector.shape_cast %27 : vector<64xf32> to vector<1x64xf32>
    %29 = tpu.concatenate %25, %28 in 0 : vector<1x64xf32>, vector<1x64xf32> -> vector<2x64xf32>
    %cst_9 = arith.constant dense<0.000000e+00> : vector<2x32xf32>
    %30 = tpu.matmul %29, %23, %cst_9 {dimension_numbers = #tpu.dot_dimension_numbers<[1], [0], [0], [1], [0, 0, 1, 1], [], []>} : vector<2x64xf32>, vector<64x32xf32>, vector<2x32xf32> -> vector<2x32xf32>
    %cst_10 = arith.constant dense<0.000000e+00> : vector<2x64xf32>
    %31 = tpu.matmul %30, %23, %cst_10 {dimension_numbers = #tpu.dot_dimension_numbers<[1], [1], [0], [0], [0, 0, 1, 0], [], []>} : vector<2x32xf32>, vector<64x32xf32>, vector<2x64xf32> -> vector<2x64xf32>
    %32 = vector.extract_strided_slice %31 {offsets = [0, 0], sizes = [1, 64], strides = [1, 1]} : vector<2x64xf32> to vector<1x64xf32>
    %cst_11 = arith.constant 1.280000e+02 : f32
    %33 = vector.broadcast %cst_11 : f32 to vector<1x64xf32>
    %34 = arith.divf %32, %33 : vector<1x64xf32>
    %35 = vector.extract_strided_slice %31 {offsets = [1, 0], sizes = [1, 64], strides = [1, 1]} : vector<2x64xf32> to vector<1x64xf32>
    %cst_12 = arith.constant 1.280000e+02 : f32
    %36 = vector.broadcast %cst_12 : f32 to vector<1x64xf32>
    %37 = arith.divf %35, %36 : vector<1x64xf32>
    %38 = arith.mulf %34, %34 : vector<1x64xf32>
    %39 = arith.subf %37, %38 : vector<1x64xf32>
    %cst_13 = arith.constant 9.99999997E-7 : f32
    %40 = vector.broadcast %cst_13 : f32 to vector<1x64xf32>
    %41 = arith.addf %39, %40 : vector<1x64xf32>
    %42 = math.rsqrt %41 : vector<1x64xf32>
    %c0_14 = arith.constant 0 : index
    %c0_15 = arith.constant 0 : index
    %43 = vector.load %arg3[%c0_14, %c0_15] : memref<1x64xf32, #tpu.memory_space<vmem>>, vector<1x64xf32>
    %44 = arith.mulf %43, %42 : vector<1x64xf32>
    %c0_16 = arith.constant 0 : index
    %c0_17 = arith.constant 0 : index
    %45 = vector.load %arg4[%c0_16, %c0_17] : memref<1x64xf32, #tpu.memory_space<vmem>>, vector<1x64xf32>
    %46 = arith.mulf %34, %44 : vector<1x64xf32>
    %47 = arith.subf %45, %46 : vector<1x64xf32>
    %48 = vector.broadcast %44 : vector<1x64xf32> to vector<64x64xf32>
    %49 = arith.mulf %1, %48 : vector<64x64xf32>
    %50 = vector.broadcast %47 : vector<1x64xf32> to vector<64x64xf32>
    %51 = arith.addf %49, %50 : vector<64x64xf32>
    %cst_18 = arith.constant 0.000000e+00 : f32
    %52 = vector.broadcast %cst_18 : f32 to vector<64x64xf32>
    %53 = arith.subf %52, %51 : vector<64x64xf32>
    %54 = math.exp %53 : vector<64x64xf32>
    %cst_19 = arith.constant 1.000000e+00 : f32
    %55 = vector.broadcast %cst_19 : f32 to vector<64x64xf32>
    %56 = arith.addf %55, %54 : vector<64x64xf32>
    %57 = tpu.reciprocal %56 {approx = true} : vector<64x64xf32> -> vector<64x64xf32>
    %58 = arith.mulf %51, %57 : vector<64x64xf32>
    %cst_20 = arith.constant 0.000000e+00 : bf16
    %59 = vector.broadcast %cst_20 : bf16 to vector<16x64xbf16>
    %c0_21 = arith.constant 0 : index
    %c0_22 = arith.constant 0 : index
    %60 = vector.load %arg15[%c0_21, %c0_22] : memref<96x64xbf16, #tpu.memory_space<vmem>>, vector<16x64xbf16>
    tpu.vector_store %arg15[%c0_21, %c0_22], %59 {strides = array<i32>} : memref<96x64xbf16, #tpu.memory_space<vmem>>, vector<16x64xbf16>,
    %c80 = arith.constant 80 : index
    %c0_23 = arith.constant 0 : index
    %61 = vector.load %arg15[%c80, %c0_23] : memref<96x64xbf16, #tpu.memory_space<vmem>>, vector<16x64xbf16>
    tpu.vector_store %arg15[%c80, %c0_23], %59 {strides = array<i32>} : memref<96x64xbf16, #tpu.memory_space<vmem>>, vector<16x64xbf16>,
    %62 = arith.truncf %58 : vector<64x64xf32> to vector<64x64xbf16>
    %c16 = arith.constant 16 : index
    %c0_24 = arith.constant 0 : index
    %63 = vector.load %arg15[%c16, %c0_24] : memref<96x64xbf16, #tpu.memory_space<vmem>>, vector<64x64xbf16>
    tpu.vector_store %arg15[%c16, %c0_24], %62 {strides = array<i32>} : memref<96x64xbf16, #tpu.memory_space<vmem>>, vector<64x64xbf16>,
    %cst_25 = arith.constant 0.000000e+00 : f32
    %64 = vector.broadcast %cst_25 : f32 to vector<64x128xf32>
    %c7 = arith.constant 7 : index
    %c0_26 = arith.constant 0 : index
    %65 = vector.load %arg15[%c7, %c0_26] : memref<96x64xbf16, #tpu.memory_space<vmem>>, vector<64x64xbf16>
    %cst_27 = arith.constant 0.000000e+00 : f32
    %66 = arith.truncf %cst_27 : f32 to bf16
    %67 = vector.shape_cast %20 : vector<64x1xi1> to vector<64x1xi1>
    %68 = vector.broadcast %67 : vector<64x1xi1> to vector<64x64xi1>
    %69 = vector.broadcast %66 : bf16 to vector<64x64xbf16>
    %70 = arith.select %68, %65, %69 : vector<64x64xi1>, vector<64x64xbf16>
    %c0_28 = arith.constant 0 : index
    %c0_29 = arith.constant 0 : index
    %c0_30 = arith.constant 0 : index
    %71 = vector.load %arg5[%c0_28, %c0_29, %c0_30] : memref<9x64x128xbf16, #tpu.memory_space<vmem>>, vector<1x64x128xbf16>
    %72 = vector.shape_cast %71 : vector<1x64x128xbf16> to vector<64x128xbf16>
    %cst_31 = arith.constant dense<0.000000e+00> : vector<64x128xf32>
    %73 = tpu.matmul %70, %72, %cst_31 {dimension_numbers = #tpu.dot_dimension_numbers<[1], [0], [0], [1], [0, 0, 1, 1], [], []>} : vector<64x64xbf16>, vector<64x128xbf16>, vector<64x128xf32> -> vector<64x128xf32>
    %74 = arith.addf %64, %73 : vector<64x128xf32>
    %c8 = arith.constant 8 : index
    %c0_32 = arith.constant 0 : index
    %75 = vector.load %arg15[%c8, %c0_32] : memref<96x64xbf16, #tpu.memory_space<vmem>>, vector<64x64xbf16>
    %c1 = arith.constant 1 : index
    %c0_33 = arith.constant 0 : index
    %c0_34 = arith.constant 0 : index
    %76 = vector.load %arg5[%c1, %c0_33, %c0_34] : memref<9x64x128xbf16, #tpu.memory_space<vmem>>, vector<1x64x128xbf16>
    %77 = vector.shape_cast %76 : vector<1x64x128xbf16> to vector<64x128xbf16>
    %cst_35 = arith.constant dense<0.000000e+00> : vector<64x128xf32>
    %78 = tpu.matmul %75, %77, %cst_35 {dimension_numbers = #tpu.dot_dimension_numbers<[1], [0], [0], [1], [0, 0, 1, 1], [], []>} : vector<64x64xbf16>, vector<64x128xbf16>, vector<64x128xf32> -> vector<64x128xf32>
    %79 = arith.addf %74, %78 : vector<64x128xf32>
    %c9 = arith.constant 9 : index
    %c0_36 = arith.constant 0 : index
    %80 = vector.load %arg15[%c9, %c0_36] : memref<96x64xbf16, #tpu.memory_space<vmem>>, vector<64x64xbf16>
    %cst_37 = arith.constant 0.000000e+00 : f32
    %81 = arith.truncf %cst_37 : f32 to bf16
    %82 = vector.shape_cast %22 : vector<64x1xi1> to vector<64x1xi1>
    %83 = vector.broadcast %82 : vector<64x1xi1> to vector<64x64xi1>
    %84 = vector.broadcast %81 : bf16 to vector<64x64xbf16>
    %85 = arith.select %83, %80, %84 : vector<64x64xi1>, vector<64x64xbf16>
    %c2 = arith.constant 2 : index
    %c0_38 = arith.constant 0 : index
    %c0_39 = arith.constant 0 : index
    %86 = vector.load %arg5[%c2, %c0_38, %c0_39] : memref<9x64x128xbf16, #tpu.memory_space<vmem>>, vector<1x64x128xbf16>
    %87 = vector.shape_cast %86 : vector<1x64x128xbf16> to vector<64x128xbf16>
    %cst_40 = arith.constant dense<0.000000e+00> : vector<64x128xf32>
    %88 = tpu.matmul %85, %87, %cst_40 {dimension_numbers = #tpu.dot_dimension_numbers<[1], [0], [0], [1], [0, 0, 1, 1], [], []>} : vector<64x64xbf16>, vector<64x128xbf16>, vector<64x128xf32> -> vector<64x128xf32>
    %89 = arith.addf %79, %88 : vector<64x128xf32>
    %c15 = arith.constant 15 : index
    %c0_41 = arith.constant 0 : index
    %90 = vector.load %arg15[%c15, %c0_41] : memref<96x64xbf16, #tpu.memory_space<vmem>>, vector<64x64xbf16>
    %cst_42 = arith.constant 0.000000e+00 : f32
    %91 = arith.truncf %cst_42 : f32 to bf16
    %92 = vector.shape_cast %20 : vector<64x1xi1> to vector<64x1xi1>
    %93 = vector.broadcast %92 : vector<64x1xi1> to vector<64x64xi1>
    %94 = vector.broadcast %91 : bf16 to vector<64x64xbf16>
    %95 = arith.select %93, %90, %94 : vector<64x64xi1>, vector<64x64xbf16>
    %c3 = arith.constant 3 : index
    %c0_43 = arith.constant 0 : index
    %c0_44 = arith.constant 0 : index
    %96 = vector.load %arg5[%c3, %c0_43, %c0_44] : memref<9x64x128xbf16, #tpu.memory_space<vmem>>, vector<1x64x128xbf16>
    %97 = vector.shape_cast %96 : vector<1x64x128xbf16> to vector<64x128xbf16>
    %cst_45 = arith.constant dense<0.000000e+00> : vector<64x128xf32>
    %98 = tpu.matmul %95, %97, %cst_45 {dimension_numbers = #tpu.dot_dimension_numbers<[1], [0], [0], [1], [0, 0, 1, 1], [], []>} : vector<64x64xbf16>, vector<64x128xbf16>, vector<64x128xf32> -> vector<64x128xf32>
    %99 = arith.addf %89, %98 : vector<64x128xf32>
    %c16_46 = arith.constant 16 : index
    %c0_47 = arith.constant 0 : index
    %100 = vector.load %arg15[%c16_46, %c0_47] : memref<96x64xbf16, #tpu.memory_space<vmem>>, vector<64x64xbf16>
    %c4 = arith.constant 4 : index
    %c0_48 = arith.constant 0 : index
    %c0_49 = arith.constant 0 : index
    %101 = vector.load %arg5[%c4, %c0_48, %c0_49] : memref<9x64x128xbf16, #tpu.memory_space<vmem>>, vector<1x64x128xbf16>
    %102 = vector.shape_cast %101 : vector<1x64x128xbf16> to vector<64x128xbf16>
    %cst_50 = arith.constant dense<0.000000e+00> : vector<64x128xf32>
    %103 = tpu.matmul %100, %102, %cst_50 {dimension_numbers = #tpu.dot_dimension_numbers<[1], [0], [0], [1], [0, 0, 1, 1], [], []>} : vector<64x64xbf16>, vector<64x128xbf16>, vector<64x128xf32> -> vector<64x128xf32>
    %104 = arith.addf %99, %103 : vector<64x128xf32>
    %c17 = arith.constant 17 : index
    %c0_51 = arith.constant 0 : index
    %105 = vector.load %arg15[%c17, %c0_51] : memref<96x64xbf16, #tpu.memory_space<vmem>>, vector<64x64xbf16>
    %cst_52 = arith.constant 0.000000e+00 : f32
    %106 = arith.truncf %cst_52 : f32 to bf16
    %107 = vector.shape_cast %22 : vector<64x1xi1> to vector<64x1xi1>
    %108 = vector.broadcast %107 : vector<64x1xi1> to vector<64x64xi1>
    %109 = vector.broadcast %106 : bf16 to vector<64x64xbf16>
    %110 = arith.select %108, %105, %109 : vector<64x64xi1>, vector<64x64xbf16>
    %c5 = arith.constant 5 : index
    %c0_53 = arith.constant 0 : index
    %c0_54 = arith.constant 0 : index
    %111 = vector.load %arg5[%c5, %c0_53, %c0_54] : memref<9x64x128xbf16, #tpu.memory_space<vmem>>, vector<1x64x128xbf16>
    %112 = vector.shape_cast %111 : vector<1x64x128xbf16> to vector<64x128xbf16>
    %cst_55 = arith.constant dense<0.000000e+00> : vector<64x128xf32>
    %113 = tpu.matmul %110, %112, %cst_55 {dimension_numbers = #tpu.dot_dimension_numbers<[1], [0], [0], [1], [0, 0, 1, 1], [], []>} : vector<64x64xbf16>, vector<64x128xbf16>, vector<64x128xf32> -> vector<64x128xf32>
    %114 = arith.addf %104, %113 : vector<64x128xf32>
    %c23 = arith.constant 23 : index
    %c0_56 = arith.constant 0 : index
    %115 = vector.load %arg15[%c23, %c0_56] : memref<96x64xbf16, #tpu.memory_space<vmem>>, vector<64x64xbf16>
    %cst_57 = arith.constant 0.000000e+00 : f32
    %116 = arith.truncf %cst_57 : f32 to bf16
    %117 = vector.shape_cast %20 : vector<64x1xi1> to vector<64x1xi1>
    %118 = vector.broadcast %117 : vector<64x1xi1> to vector<64x64xi1>
    %119 = vector.broadcast %116 : bf16 to vector<64x64xbf16>
    %120 = arith.select %118, %115, %119 : vector<64x64xi1>, vector<64x64xbf16>
    %c6 = arith.constant 6 : index
    %c0_58 = arith.constant 0 : index
    %c0_59 = arith.constant 0 : index
    %121 = vector.load %arg5[%c6, %c0_58, %c0_59] : memref<9x64x128xbf16, #tpu.memory_space<vmem>>, vector<1x64x128xbf16>
    %122 = vector.shape_cast %121 : vector<1x64x128xbf16> to vector<64x128xbf16>
    %cst_60 = arith.constant dense<0.000000e+00> : vector<64x128xf32>
    %123 = tpu.matmul %120, %122, %cst_60 {dimension_numbers = #tpu.dot_dimension_numbers<[1], [0], [0], [1], [0, 0, 1, 1], [], []>} : vector<64x64xbf16>, vector<64x128xbf16>, vector<64x128xf32> -> vector<64x128xf32>
    %124 = arith.addf %114, %123 : vector<64x128xf32>
    %c24 = arith.constant 24 : index
    %c0_61 = arith.constant 0 : index
    %125 = vector.load %arg15[%c24, %c0_61] : memref<96x64xbf16, #tpu.memory_space<vmem>>, vector<64x64xbf16>
    %c7_62 = arith.constant 7 : index
    %c0_63 = arith.constant 0 : index
    %c0_64 = arith.constant 0 : index
    %126 = vector.load %arg5[%c7_62, %c0_63, %c0_64] : memref<9x64x128xbf16, #tpu.memory_space<vmem>>, vector<1x64x128xbf16>
    %127 = vector.shape_cast %126 : vector<1x64x128xbf16> to vector<64x128xbf16>
    %cst_65 = arith.constant dense<0.000000e+00> : vector<64x128xf32>
    %128 = tpu.matmul %125, %127, %cst_65 {dimension_numbers = #tpu.dot_dimension_numbers<[1], [0], [0], [1], [0, 0, 1, 1], [], []>} : vector<64x64xbf16>, vector<64x128xbf16>, vector<64x128xf32> -> vector<64x128xf32>
    %129 = arith.addf %124, %128 : vector<64x128xf32>
    %c25 = arith.constant 25 : index
    %c0_66 = arith.constant 0 : index
    %130 = vector.load %arg15[%c25, %c0_66] : memref<96x64xbf16, #tpu.memory_space<vmem>>, vector<64x64xbf16>
    %cst_67 = arith.constant 0.000000e+00 : f32
    %131 = arith.truncf %cst_67 : f32 to bf16
    %132 = vector.shape_cast %22 : vector<64x1xi1> to vector<64x1xi1>
    %133 = vector.broadcast %132 : vector<64x1xi1> to vector<64x64xi1>
    %134 = vector.broadcast %131 : bf16 to vector<64x64xbf16>
    %135 = arith.select %133, %130, %134 : vector<64x64xi1>, vector<64x64xbf16>
    %c8_68 = arith.constant 8 : index
    %c0_69 = arith.constant 0 : index
    %c0_70 = arith.constant 0 : index
    %136 = vector.load %arg5[%c8_68, %c0_69, %c0_70] : memref<9x64x128xbf16, #tpu.memory_space<vmem>>, vector<1x64x128xbf16>
    %137 = vector.shape_cast %136 : vector<1x64x128xbf16> to vector<64x128xbf16>
    %cst_71 = arith.constant dense<0.000000e+00> : vector<64x128xf32>
    %138 = tpu.matmul %135, %137, %cst_71 {dimension_numbers = #tpu.dot_dimension_numbers<[1], [0], [0], [1], [0, 0, 1, 1], [], []>} : vector<64x64xbf16>, vector<64x128xbf16>, vector<64x128xf32> -> vector<64x128xf32>
    %139 = arith.addf %129, %138 : vector<64x128xf32>
    %c0_72 = arith.constant 0 : index
    %c0_73 = arith.constant 0 : index
    %140 = vector.load %arg6[%c0_72, %c0_73] : memref<1x128xf32, #tpu.memory_space<vmem>>, vector<1x128xf32>
    %141 = vector.broadcast %140 : vector<1x128xf32> to vector<64x128xf32>
    %142 = arith.addf %139, %141 : vector<64x128xf32>
    %c0_74 = arith.constant 0 : index
    %c0_75 = arith.constant 0 : index
    %143 = vector.load %arg7[%c0_74, %c0_75] : memref<128x32xf32, #tpu.memory_space<vmem>>, vector<128x32xf32>
    %cst_76 = arith.constant dense<0.000000e+00> : vector<128xf32>
    %144 = vector.multi_reduction <add>, %142, %cst_76 [0] : vector<64x128xf32> to vector<128xf32>
    %145 = vector.shape_cast %144 : vector<128xf32> to vector<1x128xf32>
    %146 = arith.mulf %142, %142 : vector<64x128xf32>
    %cst_77 = arith.constant dense<0.000000e+00> : vector<128xf32>
    %147 = vector.multi_reduction <add>, %146, %cst_77 [0] : vector<64x128xf32> to vector<128xf32>
    %148 = vector.shape_cast %147 : vector<128xf32> to vector<1x128xf32>
    %149 = tpu.concatenate %145, %148 in 0 : vector<1x128xf32>, vector<1x128xf32> -> vector<2x128xf32>
    %cst_78 = arith.constant dense<0.000000e+00> : vector<2x32xf32>
    %150 = tpu.matmul %149, %143, %cst_78 {dimension_numbers = #tpu.dot_dimension_numbers<[1], [0], [0], [1], [0, 0, 1, 1], [], []>} : vector<2x128xf32>, vector<128x32xf32>, vector<2x32xf32> -> vector<2x32xf32>
    %cst_79 = arith.constant dense<0.000000e+00> : vector<2x128xf32>
    %151 = tpu.matmul %150, %143, %cst_79 {dimension_numbers = #tpu.dot_dimension_numbers<[1], [1], [0], [0], [0, 0, 1, 0], [], []>} : vector<2x32xf32>, vector<128x32xf32>, vector<2x128xf32> -> vector<2x128xf32>
    %152 = vector.extract_strided_slice %151 {offsets = [0, 0], sizes = [1, 128], strides = [1, 1]} : vector<2x128xf32> to vector<1x128xf32>
    %cst_80 = arith.constant 2.560000e+02 : f32
    %153 = vector.broadcast %cst_80 : f32 to vector<1x128xf32>
    %154 = arith.divf %152, %153 : vector<1x128xf32>
    %155 = vector.extract_strided_slice %151 {offsets = [1, 0], sizes = [1, 128], strides = [1, 1]} : vector<2x128xf32> to vector<1x128xf32>
    %cst_81 = arith.constant 2.560000e+02 : f32
    %156 = vector.broadcast %cst_81 : f32 to vector<1x128xf32>
    %157 = arith.divf %155, %156 : vector<1x128xf32>
    %158 = arith.mulf %154, %154 : vector<1x128xf32>
    %159 = arith.subf %157, %158 : vector<1x128xf32>
    %cst_82 = arith.constant 9.99999997E-7 : f32
    %160 = vector.broadcast %cst_82 : f32 to vector<1x128xf32>
    %161 = arith.addf %159, %160 : vector<1x128xf32>
    %162 = math.rsqrt %161 : vector<1x128xf32>
    %c0_83 = arith.constant 0 : index
    %c0_84 = arith.constant 0 : index
    %163 = vector.load %arg8[%c0_83, %c0_84] : memref<1x128xf32, #tpu.memory_space<vmem>>, vector<1x128xf32>
    %164 = arith.mulf %163, %162 : vector<1x128xf32>
    %c0_85 = arith.constant 0 : index
    %c0_86 = arith.constant 0 : index
    %165 = vector.load %arg9[%c0_85, %c0_86] : memref<1x128xf32, #tpu.memory_space<vmem>>, vector<1x128xf32>
    %166 = arith.mulf %154, %164 : vector<1x128xf32>
    %167 = arith.subf %165, %166 : vector<1x128xf32>
    %168 = vector.broadcast %164 : vector<1x128xf32> to vector<64x128xf32>
    %169 = arith.mulf %142, %168 : vector<64x128xf32>
    %170 = vector.broadcast %167 : vector<1x128xf32> to vector<64x128xf32>
    %171 = arith.addf %169, %170 : vector<64x128xf32>
    %cst_87 = arith.constant 0.000000e+00 : f32
    %172 = vector.broadcast %cst_87 : f32 to vector<64x128xf32>
    %173 = arith.subf %172, %171 : vector<64x128xf32>
    %174 = math.exp %173 : vector<64x128xf32>
    %cst_88 = arith.constant 1.000000e+00 : f32
    %175 = vector.broadcast %cst_88 : f32 to vector<64x128xf32>
    %176 = arith.addf %175, %174 : vector<64x128xf32>
    %177 = tpu.reciprocal %176 {approx = true} : vector<64x128xf32> -> vector<64x128xf32>
    %178 = arith.mulf %171, %177 : vector<64x128xf32>
    %cst_89 = arith.constant 0.000000e+00 : bf16
    %179 = vector.broadcast %cst_89 : bf16 to vector<16x128xbf16>
    %c0_90 = arith.constant 0 : index
    %c0_91 = arith.constant 0 : index
    %180 = vector.load %arg16[%c0_90, %c0_91] : memref<96x128xbf16, #tpu.memory_space<vmem>>, vector<16x128xbf16>
    tpu.vector_store %arg16[%c0_90, %c0_91], %179 {strides = array<i32>} : memref<96x128xbf16, #tpu.memory_space<vmem>>, vector<16x128xbf16>,
    %c80_92 = arith.constant 80 : index
    %c0_93 = arith.constant 0 : index
    %181 = vector.load %arg16[%c80_92, %c0_93] : memref<96x128xbf16, #tpu.memory_space<vmem>>, vector<16x128xbf16>
    tpu.vector_store %arg16[%c80_92, %c0_93], %179 {strides = array<i32>} : memref<96x128xbf16, #tpu.memory_space<vmem>>, vector<16x128xbf16>,
    %182 = arith.truncf %178 : vector<64x128xf32> to vector<64x128xbf16>
    %c16_94 = arith.constant 16 : index
    %c0_95 = arith.constant 0 : index
    %183 = vector.load %arg16[%c16_94, %c0_95] : memref<96x128xbf16, #tpu.memory_space<vmem>>, vector<64x128xbf16>
    tpu.vector_store %arg16[%c16_94, %c0_95], %182 {strides = array<i32>} : memref<96x128xbf16, #tpu.memory_space<vmem>>, vector<64x128xbf16>,
    %cst_96 = arith.constant 0.000000e+00 : f32
    %184 = vector.broadcast %cst_96 : f32 to vector<64x128xf32>
    %c7_97 = arith.constant 7 : index
    %c0_98 = arith.constant 0 : index
    %185 = vector.load %arg16[%c7_97, %c0_98] : memref<96x128xbf16, #tpu.memory_space<vmem>>, vector<64x128xbf16>
    %cst_99 = arith.constant 0.000000e+00 : f32
    %186 = arith.truncf %cst_99 : f32 to bf16
    %187 = vector.shape_cast %20 : vector<64x1xi1> to vector<64x1xi1>
    %188 = vector.broadcast %187 : vector<64x1xi1> to vector<64x128xi1>
    %189 = vector.broadcast %186 : bf16 to vector<64x128xbf16>
    %190 = arith.select %188, %185, %189 : vector<64x128xi1>, vector<64x128xbf16>
    %c8_100 = arith.constant 8 : index
    %c0_101 = arith.constant 0 : index
    %191 = vector.load %arg16[%c8_100, %c0_101] : memref<96x128xbf16, #tpu.memory_space<vmem>>, vector<64x128xbf16>
    %c9_102 = arith.constant 9 : index
    %c0_103 = arith.constant 0 : index
    %192 = vector.load %arg16[%c9_102, %c0_103] : memref<96x128xbf16, #tpu.memory_space<vmem>>, vector<64x128xbf16>
    %cst_104 = arith.constant 0.000000e+00 : f32
    %193 = arith.truncf %cst_104 : f32 to bf16
    %194 = vector.shape_cast %22 : vector<64x1xi1> to vector<64x1xi1>
    %195 = vector.broadcast %194 : vector<64x1xi1> to vector<64x128xi1>
    %196 = vector.broadcast %193 : bf16 to vector<64x128xbf16>
    %197 = arith.select %195, %192, %196 : vector<64x128xi1>, vector<64x128xbf16>
    %198 = tpu.concatenate %190, %191, %197 in 1 : vector<64x128xbf16>, vector<64x128xbf16>, vector<64x128xbf16> -> vector<64x384xbf16>
    %c0_105 = arith.constant 0 : index
    %c0_106 = arith.constant 0 : index
    %c0_107 = arith.constant 0 : index
    %199 = vector.load %arg10[%c0_105, %c0_106, %c0_107] : memref<3x384x128xbf16, #tpu.memory_space<vmem>>, vector<1x384x128xbf16>
    %200 = vector.shape_cast %199 : vector<1x384x128xbf16> to vector<384x128xbf16>
    %cst_108 = arith.constant dense<0.000000e+00> : vector<64x128xf32>
    %201 = tpu.matmul %198, %200, %cst_108 {dimension_numbers = #tpu.dot_dimension_numbers<[1], [0], [0], [1], [0, 0, 1, 1], [], []>} : vector<64x384xbf16>, vector<384x128xbf16>, vector<64x128xf32> -> vector<64x128xf32>
    %202 = arith.addf %184, %201 : vector<64x128xf32>
    %c15_109 = arith.constant 15 : index
    %c0_110 = arith.constant 0 : index
    %203 = vector.load %arg16[%c15_109, %c0_110] : memref<96x128xbf16, #tpu.memory_space<vmem>>, vector<64x128xbf16>
    %cst_111 = arith.constant 0.000000e+00 : f32
    %204 = arith.truncf %cst_111 : f32 to bf16
    %205 = vector.shape_cast %20 : vector<64x1xi1> to vector<64x1xi1>
    %206 = vector.broadcast %205 : vector<64x1xi1> to vector<64x128xi1>
    %207 = vector.broadcast %204 : bf16 to vector<64x128xbf16>
    %208 = arith.select %206, %203, %207 : vector<64x128xi1>, vector<64x128xbf16>
    %c16_112 = arith.constant 16 : index
    %c0_113 = arith.constant 0 : index
    %209 = vector.load %arg16[%c16_112, %c0_113] : memref<96x128xbf16, #tpu.memory_space<vmem>>, vector<64x128xbf16>
    %c17_114 = arith.constant 17 : index
    %c0_115 = arith.constant 0 : index
    %210 = vector.load %arg16[%c17_114, %c0_115] : memref<96x128xbf16, #tpu.memory_space<vmem>>, vector<64x128xbf16>
    %cst_116 = arith.constant 0.000000e+00 : f32
    %211 = arith.truncf %cst_116 : f32 to bf16
    %212 = vector.shape_cast %22 : vector<64x1xi1> to vector<64x1xi1>
    %213 = vector.broadcast %212 : vector<64x1xi1> to vector<64x128xi1>
    %214 = vector.broadcast %211 : bf16 to vector<64x128xbf16>
    %215 = arith.select %213, %210, %214 : vector<64x128xi1>, vector<64x128xbf16>
    %216 = tpu.concatenate %208, %209, %215 in 1 : vector<64x128xbf16>, vector<64x128xbf16>, vector<64x128xbf16> -> vector<64x384xbf16>
    %c1_117 = arith.constant 1 : index
    %c0_118 = arith.constant 0 : index
    %c0_119 = arith.constant 0 : index
    %217 = vector.load %arg10[%c1_117, %c0_118, %c0_119] : memref<3x384x128xbf16, #tpu.memory_space<vmem>>, vector<1x384x128xbf16>
    %218 = vector.shape_cast %217 : vector<1x384x128xbf16> to vector<384x128xbf16>
    %cst_120 = arith.constant dense<0.000000e+00> : vector<64x128xf32>
    %219 = tpu.matmul %216, %218, %cst_120 {dimension_numbers = #tpu.dot_dimension_numbers<[1], [0], [0], [1], [0, 0, 1, 1], [], []>} : vector<64x384xbf16>, vector<384x128xbf16>, vector<64x128xf32> -> vector<64x128xf32>
    %220 = arith.addf %202, %219 : vector<64x128xf32>
    %c23_121 = arith.constant 23 : index
    %c0_122 = arith.constant 0 : index
    %221 = vector.load %arg16[%c23_121, %c0_122] : memref<96x128xbf16, #tpu.memory_space<vmem>>, vector<64x128xbf16>
    %cst_123 = arith.constant 0.000000e+00 : f32
    %222 = arith.truncf %cst_123 : f32 to bf16
    %223 = vector.shape_cast %20 : vector<64x1xi1> to vector<64x1xi1>
    %224 = vector.broadcast %223 : vector<64x1xi1> to vector<64x128xi1>
    %225 = vector.broadcast %222 : bf16 to vector<64x128xbf16>
    %226 = arith.select %224, %221, %225 : vector<64x128xi1>, vector<64x128xbf16>
    %c24_124 = arith.constant 24 : index
    %c0_125 = arith.constant 0 : index
    %227 = vector.load %arg16[%c24_124, %c0_125] : memref<96x128xbf16, #tpu.memory_space<vmem>>, vector<64x128xbf16>
    %c25_126 = arith.constant 25 : index
    %c0_127 = arith.constant 0 : index
    %228 = vector.load %arg16[%c25_126, %c0_127] : memref<96x128xbf16, #tpu.memory_space<vmem>>, vector<64x128xbf16>
    %cst_128 = arith.constant 0.000000e+00 : f32
    %229 = arith.truncf %cst_128 : f32 to bf16
    %230 = vector.shape_cast %22 : vector<64x1xi1> to vector<64x1xi1>
    %231 = vector.broadcast %230 : vector<64x1xi1> to vector<64x128xi1>
    %232 = vector.broadcast %229 : bf16 to vector<64x128xbf16>
    %233 = arith.select %231, %228, %232 : vector<64x128xi1>, vector<64x128xbf16>
    %234 = tpu.concatenate %226, %227, %233 in 1 : vector<64x128xbf16>, vector<64x128xbf16>, vector<64x128xbf16> -> vector<64x384xbf16>
    %c2_129 = arith.constant 2 : index
    %c0_130 = arith.constant 0 : index
    %c0_131 = arith.constant 0 : index
    %235 = vector.load %arg10[%c2_129, %c0_130, %c0_131] : memref<3x384x128xbf16, #tpu.memory_space<vmem>>, vector<1x384x128xbf16>
    %236 = vector.shape_cast %235 : vector<1x384x128xbf16> to vector<384x128xbf16>
    %cst_132 = arith.constant dense<0.000000e+00> : vector<64x128xf32>
    %237 = tpu.matmul %234, %236, %cst_132 {dimension_numbers = #tpu.dot_dimension_numbers<[1], [0], [0], [1], [0, 0, 1, 1], [], []>} : vector<64x384xbf16>, vector<384x128xbf16>, vector<64x128xf32> -> vector<64x128xf32>
    %238 = arith.addf %220, %237 : vector<64x128xf32>
    %c0_133 = arith.constant 0 : index
    %c0_134 = arith.constant 0 : index
    %239 = vector.load %arg11[%c0_133, %c0_134] : memref<1x128xf32, #tpu.memory_space<vmem>>, vector<1x128xf32>
    %240 = vector.broadcast %239 : vector<1x128xf32> to vector<64x128xf32>
    %241 = arith.addf %238, %240 : vector<64x128xf32>
    %242 = arith.truncf %1 : vector<64x64xf32> to vector<64x64xbf16>
    %c0_135 = arith.constant 0 : index
    %c0_136 = arith.constant 0 : index
    %243 = vector.load %arg12[%c0_135, %c0_136] : memref<64x128xbf16, #tpu.memory_space<vmem>>, vector<64x128xbf16>
    %cst_137 = arith.constant dense<0.000000e+00> : vector<64x128xf32>
    %244 = tpu.matmul %242, %243, %cst_137 {dimension_numbers = #tpu.dot_dimension_numbers<[1], [0], [0], [1], [0, 0, 1, 1], [], []>} : vector<64x64xbf16>, vector<64x128xbf16>, vector<64x128xf32> -> vector<64x128xf32>
    %c0_138 = arith.constant 0 : index
    %c0_139 = arith.constant 0 : index
    %245 = vector.load %arg13[%c0_138, %c0_139] : memref<1x128xf32, #tpu.memory_space<vmem>>, vector<1x128xf32>
    %246 = vector.broadcast %245 : vector<1x128xf32> to vector<64x128xf32>
    %247 = arith.addf %244, %246 : vector<64x128xf32>
    %248 = arith.addf %247, %241 : vector<64x128xf32>
    %c0_140 = arith.constant 0 : index
    %c0_141 = arith.constant 0 : index
    %c0_142 = arith.constant 0 : index
    %249 = vector.load %arg14[%c0_140, %c0_141, %c0_142] : memref<1x64x128xf32, #tpu.memory_space<vmem>>, vector<1x64x128xf32>
    %250 = vector.shape_cast %249 : vector<1x64x128xf32> to vector<64x128xf32>
    %251 = vector.shape_cast %248 : vector<64x128xf32> to vector<1x64x128xf32>
    tpu.vector_store %arg14[%c0_140, %c0_141, %c0_142], %251 {strides = array<i32>} : memref<1x64x128xf32, #tpu.memory_space<vmem>>, vector<1x64x128xf32>,
    return
  }
  func.func @transform_0(%arg0: i32) -> (i32, i32, i32) {
    %c0_i32 = arith.constant 0 : i32
    %c0_i32_0 = arith.constant 0 : i32
    %c0_i32_1 = arith.constant 0 : i32
    return %arg0, %c0_i32, %c0_i32_0 : i32, i32, i32
  }
  func.func @transform_1(%arg0: i32) -> (i32, i32) {
    %c0_i32 = arith.constant 0 : i32
    %c0_i32_0 = arith.constant 0 : i32
    %c0_i32_1 = arith.constant 0 : i32
    return %c0_i32, %c0_i32_0 : i32, i32
  }
  func.func @transform_2(%arg0: i32) -> (i32, i32) {
    %c0_i32 = arith.constant 0 : i32
    %c0_i32_0 = arith.constant 0 : i32
    %c0_i32_1 = arith.constant 0 : i32
    return %c0_i32, %c0_i32_0 : i32, i32
  }
  func.func @transform_3(%arg0: i32) -> (i32, i32) {
    %c0_i32 = arith.constant 0 : i32
    %c0_i32_0 = arith.constant 0 : i32
    %c0_i32_1 = arith.constant 0 : i32
    return %c0_i32, %c0_i32_0 : i32, i32
  }
  func.func @transform_4(%arg0: i32) -> (i32, i32, i32) {
    %c0_i32 = arith.constant 0 : i32
    %c0_i32_0 = arith.constant 0 : i32
    %c0_i32_1 = arith.constant 0 : i32
    %c0_i32_2 = arith.constant 0 : i32
    return %c0_i32, %c0_i32_0, %c0_i32_1 : i32, i32, i32
  }
  func.func @transform_5(%arg0: i32) -> (i32, i32) {
    %c0_i32 = arith.constant 0 : i32
    %c0_i32_0 = arith.constant 0 : i32
    %c0_i32_1 = arith.constant 0 : i32
    return %c0_i32, %c0_i32_0 : i32, i32
  }
  func.func @transform_6(%arg0: i32) -> (i32, i32) {
    %c0_i32 = arith.constant 0 : i32
    %c0_i32_0 = arith.constant 0 : i32
    %c0_i32_1 = arith.constant 0 : i32
    return %c0_i32, %c0_i32_0 : i32, i32
  }
  func.func @transform_7(%arg0: i32) -> (i32, i32) {
    %c0_i32 = arith.constant 0 : i32
    %c0_i32_0 = arith.constant 0 : i32
    %c0_i32_1 = arith.constant 0 : i32
    return %c0_i32, %c0_i32_0 : i32, i32
  }
  func.func @transform_8(%arg0: i32) -> (i32, i32) {
    %c0_i32 = arith.constant 0 : i32
    %c0_i32_0 = arith.constant 0 : i32
    %c0_i32_1 = arith.constant 0 : i32
    return %c0_i32, %c0_i32_0 : i32, i32
  }
  func.func @transform_9(%arg0: i32) -> (i32, i32, i32) {
    %c0_i32 = arith.constant 0 : i32
    %c0_i32_0 = arith.constant 0 : i32
    %c0_i32_1 = arith.constant 0 : i32
    %c0_i32_2 = arith.constant 0 : i32
    return %c0_i32, %c0_i32_0, %c0_i32_1 : i32, i32, i32
  }
  func.func @transform_10(%arg0: i32) -> (i32, i32) {
    %c0_i32 = arith.constant 0 : i32
    %c0_i32_0 = arith.constant 0 : i32
    %c0_i32_1 = arith.constant 0 : i32
    return %c0_i32, %c0_i32_0 : i32, i32
  }
  func.func @transform_11(%arg0: i32) -> (i32, i32) {
    %c0_i32 = arith.constant 0 : i32
    %c0_i32_0 = arith.constant 0 : i32
    %c0_i32_1 = arith.constant 0 : i32
    return %c0_i32, %c0_i32_0 : i32, i32
  }
  func.func @transform_12(%arg0: i32) -> (i32, i32) {
    %c0_i32 = arith.constant 0 : i32
    %c0_i32_0 = arith.constant 0 : i32
    %c0_i32_1 = arith.constant 0 : i32
    return %c0_i32, %c0_i32_0 : i32, i32
  }
  func.func @transform_13(%arg0: i32) -> (i32, i32, i32) {
    %c0_i32 = arith.constant 0 : i32
    %c0_i32_0 = arith.constant 0 : i32
    %c0_i32_1 = arith.constant 0 : i32
    return %arg0, %c0_i32, %c0_i32_0 : i32, i32, i32
  }
}

</mosaic_0001>

<bundles_post_ra>
// kernel: tpu_custom_call.1
= control target key start
LH: loop header
LB: loop body
LE: loop exit
PB: predicated region body
PF: predicated region fallthrough
CT: control target
= control target key end

     0   :  { %18 = vsyncpa [#allocation5], 0  ;;  %s7440_s0 = inlined_call_operand.vmem [shape: f32[2,64,64], index: 0, kind: input, shape index: {}]   ;;  %s7441_s1 = inlined_call_operand.vmem [shape: f32[64,32], index: 1, kind: input, shape index: {}]   ;;  %s7442_s2 = inlined_call_operand.vmem [shape: f32[1,64], index: 2, kind: input, shape index: {}]   ;;  %s7443_s3 = inlined_call_operand.vmem [shape: f32[1,64], index: 3, kind: input, shape index: {}]   ;;  %s7444_s4 = inlined_call_operand.hbm [shape: bf16[9,64,128], index: 4, kind: input, shape index: {}]   ;;  %s7445_s5 = inlined_call_operand.vmem [shape: f32[1,128], index: 5, kind: input, shape index: {}]   ;;  %s7446_s6 = inlined_call_operand.vmem [shape: f32[128,32], index: 6, kind: input, shape index: {}]   ;;  %s7447_s7 = inlined_call_operand.vmem [shape: f32[1,128], index: 7, kind: input, shape index: {}]   ;;  %s7448_s8 = inlined_call_operand.vmem [shape: f32[1,128], index: 8, kind: input, shape index: {}]   ;;  %s7449_s9 = inlined_call_operand.hbm [shape: bf16[3,384,128], index: 9, kind: input, shape index: {}]   ;;  %s7450_s10 = inlined_call_operand.vmem [shape: f32[1,128], index: 10, kind: input, shape index: {}]   ;;  %s7451_s11 = inlined_call_operand.vmem [shape: bf16[64,128], index: 11, kind: input, shape index: {}]   ;;  %s7452_s12 = inlined_call_operand.vmem [shape: f32[1,128], index: 12, kind: input, shape index: {}]   ;;  %s7453_s13 = inlined_call_operand.hbm [shape: f32[2,64,128], index: 13, kind: output, shape index: {}]  }
   0x1   :  { %19 = vsyncpa [#allocation8], 0 }
   0x2   :  { %20 = vsyncpa [#allocation6], 0 }
   0x3   :  { %22 = vsyncpa [#allocation6 + $0x1], 0  ;;  %s5657_s25 = smov 0   ;;  %s5659_s26 = smov 0  }
   0x4   :  { %s5661_s27 = smov 0   ;;  %s5663_s28 = smov 0  }
   0x5 LB: > { %7521 = sst [smem:[#allocation13_spill]] %s5572_s27  ;;  %s5678_s29 = sadd.s32 4294967295, %s5576_s28   ;;  %s5576_s28 = sphi %s5663_s28, %s7770_s28   ;;  %s5572_s27 = sphi %s5661_s27, %s7772_s27   ;;  %s5568_s26 = sphi %s5659_s26, %s7774_s26   ;;  %s5564_s25 = sphi %s5657_s25, %s7773_s25  }
   0x6   : > { %s4563_s30 = sadd.s32 4294967294, %s5576_s28   ;;  %s5682_s14 = sadd.s32 1, %s5576_s28  }
   0x7   : > { %7522 = sst [smem:[#allocation14_spill]] %s5682_s14  ;;  %s313_s15 = sadd.s32 1, %s5572_s27 }
   0x8   : > { %s310_s16 = ssub.s32 %s5576_s28, %s5682_s14  ;;  %p323_p0 = scmp.ne.s32.totalorder %s5572_s27, %s5568_s26 }
   0x9   : > { %p311_p1 = scmp.eq.s32.totalorder %s310_s16, 0  ;;  %p324_p2 = scmp.eq.s32.totalorder %s5678_s29, 1 }
   0xa   : > { %p329_p3 = scmp.ne.s32.totalorder %s5568_s26, %s5564_s25  ;;  %p330_p4 = scmp.eq.s32.totalorder %s4563_s30, 1 }
   0xb   : > { %s5693_s17 = scalar_select %p311_p1, %s5572_s27, %s313_s15  }
   0xc   : > { %p5695_p5 = por %p324_p2, %p323_p0  ;;  %p5699_p6 = por %p330_p4, %p329_p3 }
   0xd   : > { %7523 = sst [smem:[#allocation15_spill]] %s5693_s17  ;;  %p4564_p7 = scmp.ge.s32.totalorder %s5576_s28, 1 }
   0xe   : > { %s7525_s19 = scalar_select %p5699_p6, 1, 0 }
   0xf   : > { %p337_p8 = scmp.lt.s32.totalorder %s5576_s28, 3  ;;  %p5317_p9 = scmp.eq.s32.totalorder %s5678_s29, 0 }
  0x10   : > { %7526 = sst [smem:[#allocation16_spill]] %s7525_s19  ;;  %s357_s23 = sshll.u32 %s7444_s4, 4  ;;  %s358_s23 = int_to_ptr.hbm [resolvable:$true] %s357_s23 }
  0x11   : > { %p5706_p10 = pnand %p4564_p7, %p337_p8  ;;  %s5578_s24 = smov [#allocation4]  }
  0x12   : > { %s359_s30 = sshll.u32 %s5578_s24, 4  ;;  %s383_s17 = sshll.u32 %s7449_s9, 4  ;;  %s360_s30 = int_to_ptr.vmem [resolvable:$true] %s359_s30  ;;  %s384_s17 = int_to_ptr.hbm [resolvable:$true] %s383_s17 }
  0x13   : > { %p5306_p11 = pneg %p5706_p10  ;;  %s5579_s27 = smov 64  }
  0x14   : > { %s5580_s14 = smov 4   ;;  %s5581_s19 = smov [#allocation7]  }
  0x15   : > { %p5307_p12 = pnand %p5317_p9, %p5306_p11  ;;  %s385_s21 = sshll.u32 %s5581_s19, 4  ;;  %s386_s21 = int_to_ptr.vmem [resolvable:$true] %s385_s21 }
  0x16   : > { %418 = sbr.rel (%p5706_p10) target bundleno = 1436 (0x59c), region = 72 }
  0x17   : > { %5309 = dma.hbm_to_vmem [thread:$0]  (!%p5307_p12), %s358_s23, 4608, %s360_s30, [#allocation5], %s5579_s27, %s5579_s27, %s5580_s14  }
  0x18   : > { %5312 = dma.hbm_to_vmem [thread:$0]  (!%p5307_p12), %s384_s17, 9216, %s386_s21, [#allocation8], %s5579_s27, %s5579_s27, %s5580_s14  }
  0x1b   : > { %5551 = dma.done.wait (%p5317_p9), [#allocation5], 4608  }
  0x1c   : > { %5553 = vsyncadd (%p5317_p9), [#allocation5], 4294962688 }
  0x1d   : > { %5555 = dma.done.wait (%p5317_p9), [#allocation8], 9216  }
  0x1e   : > { %5557 = vsyncadd (%p5317_p9), [#allocation8], 4294958080  ;;  %p468_p13 = scmp.lt.s32.totalorder %s5678_s29, 1  ;;  %v612_v0 = vld [vmem:[%s7441_s1 + $0x38] sm:$0xff]  ;;  %v5743_v1 = vld [vmem:[%s7441_s1 + $0x30] sm:$0xff]  ;;  %vm7461_vm0 = vcmask 523264  }
  0x1f   : > { %677 = vmatpush.msra.mxu0 %v612_v0  ;;  %v5748_v2 = vld [vmem:[%s7441_s1 + $0x28] sm:$0xff]  ;;  %v5768_v8 = vld [vmem:[%s7441_s1 + $0x20] sm:$0xff]  ;;  %v608_v15 = vld [vmem:[%s7441_s1 + $0x18] sm:$0xff]  ;;  %vm7460_vm1 = vcmask 261120   ;;  %vm7459_vm2 = vcmask 1040384   ;;  %vm841_vm12 = vcmask 519168  }
  0x20   : > { %s469_s19 = scalar_select %p468_p13, %s5678_s29, 1  ;;  %v607_v22 = vld [vmem:[%s7441_s1 + $0x10] sm:$0xff]  ;;  %v606_v30 = vld [vmem:[%s7441_s1 + $0x8] sm:$0xff]  ;;  %v605_v37 = vld [vmem:[%s7441_s1] sm:$0xff] }
  0x21   : > { %678 = vmatpush.msra.mxu0 %v5743_v1  ;;  %s5267_s21 = sshll.u32 %s5678_s29, 6 }
  0x22   : > { %s5142_s27 = sshll.u32 %s469_s19, 6  ;;  %s4475_s14 = scalar_lea.hbm %s7453_s13, %s5267_s21 }
  0x23   : > { %s5735_s20 = scalar_lea.vmem %s7440_s0, %s5142_s27  ;;  %679 = vmatpush.msra.mxu0 %v5748_v2  ;;  %s4478_s22 = sshll.u32 %s4475_s14, 4  ;;  %s4479_s22 = int_to_ptr.hbm [resolvable:$true] %s4478_s22 }
  0x24   : > { %v5751_v3 = vld [vmem:[%s5735_s20] sm:$0xff]  ;;  %v5755_v4 = vld [vmem:[%s5735_s20 + $0x8] sm:$0xff]  ;;  %v5758_v5 = vld [vmem:[%s5735_s20 + $0x10] sm:$0xff]  ;;  %s5520_s23 = sshra.s32 %s4479_s22, 4  ;;  %s5526_s21 = scalar_lea.hbm %s7453_s13, 128  ;;  %s5521_s23 = int_to_ptr.hbm [resolvable:$true] %s5520_s23 }
  0x25   : > { %v5761_v6 = vld [vmem:[%s5735_s20 + $0x18] sm:$0xff]  ;;  %v614_v7 = vsel %vm7461_vm0, %v5751_v3, 0.0  ;;  %v615_v9 = vsel %vm7461_vm0, %v5755_v4, 0.0  ;;  %v617_v10 = vsel %vm7461_vm0, %v5758_v5, 0.0  ;;  %v635_v11 = vmul.f32 %v5751_v3, %v5751_v3  ;;  %v5780_v13 = vld [vmem:[%s5735_s20 + $0x20] sm:$0xff]  ;;  %680 = vmatpush.msra.mxu0 %v5768_v8  ;;  %v5793_v19 = vld [vmem:[%s5735_s20 + $0x28] sm:$0xff]  ;;  %p5527_p3 = scmp.lt.s32.totalorder %s5521_s23, %s7453_s13 }
  0x26   : > { %v636_v12 = vmul.f32 %v5755_v4, %v5755_v4  ;;  %v616_v14 = vadd.f32 %v615_v9, %v614_v7  ;;  %v619_v16 = vsel %vm7461_vm0, %v5761_v6, 0.0  ;;  %v637_v17 = vmul.f32 %v5758_v5, %v5758_v5  ;;  %v5806_v27 = vld [vmem:[%s5735_s20 + $0x30] sm:$0xff]  ;;  %v5817_v34 = vld [vmem:[%s5735_s20 + $0x38] sm:$0xff]  ;;  %s5522_s24 = scalar_lea.hbm %s5521_s23, 64 }
  0x27   : > { %v638_v18 = vmul.f32 %v5761_v6, %v5761_v6  ;;  %v621_v21 = vsel %vm7461_vm0, %v5780_v13, 0.0  ;;  %v639_v23 = vmul.f32 %v5780_v13, %v5780_v13  ;;  %v643_v24 = vsel %vm7461_vm0, %v635_v11, 0.0  ;;  %681 = vmatpush.msra.mxu0 %v608_v15  ;;  %p5523_p0 = scmp.ne.s32.totalorder %s5521_s23, %s5522_s24  ;;  %p5528_p4 = scmp.lt.s32.totalorder %s5526_s21, %s5522_s24 }
  0x28   : > { %v618_v20 = vadd.f32 %v617_v10, %v616_v14  ;;  %v644_v25 = vsel %vm7461_vm0, %v636_v12, 0.0  ;;  %v646_v26 = vsel %vm7461_vm0, %v637_v17, 0.0  ;;  %v623_v31 = vsel %vm7461_vm0, %v5793_v19, 0.0 }
  0x29   : > { %v645_v29 = vadd.f32 %v644_v25, %v643_v24  ;;  %v640_v32 = vmul.f32 %v5793_v19, %v5793_v19  ;;  %v648_v33 = vsel %vm7461_vm0, %v638_v18, 0.0  ;;  %682 = vmatpush.msra.mxu0 %v607_v22  ;;  %v625_v38 = vsel %vm7461_vm0, %v5806_v27, 0.0  ;;  %p5524_p1 = pnand %p5523_p0, %p5695_p5  ;;  %p5529_p7 = por %p5528_p4, %p5527_p3 }
  0x2a   : > { %v620_v28 = vadd.f32 %v619_v16, %v618_v20  ;;  %v641_v39 = vmul.f32 %v5806_v27, %v5806_v27  ;;  %v650_v40 = vsel %vm7461_vm0, %v639_v23, 0.0  ;;  %v627_v43 = vsel %vm7461_vm0, %v5817_v34, 0.0 }
  0x2b   : > { %v647_v36 = vadd.f32 %v646_v26, %v645_v29  ;;  %683 = vmatpush.msra.mxu0 %v606_v30  ;;  %v642_v44 = vmul.f32 %v5817_v34, %v5817_v34  ;;  %v652_v45 = vsel %vm7461_vm0, %v640_v32, 0.0  ;;  %p5525_p2 = pneg %p5524_p1 }
  0x2c   : > { %v622_v35 = vadd.f32 %v621_v21, %v620_v28  ;;  %v654_v48 = vsel %vm7461_vm0, %v641_v39, 0.0 }
  0x2d   : > { %v649_v42 = vadd.f32 %v648_v33, %v647_v36  ;;  %684 = vmatpush.msra.mxu0 %v605_v37  ;;  %v656_v51 = vsel %vm7461_vm0, %v642_v44, 0.0  ;;  %v761_v33 = vld [vmem:[%s7442_s2] sm:$0x1]  ;;  %p5530_p8 = pnand %p5529_p7, %p5525_p2 }
  0x2e   : > { %v624_v41 = vadd.f32 %v623_v31, %v622_v35  ;;  %v484_v31 = vlaneseq }
  0x2f   : > { %v651_v47 = vadd.f32 %v650_v40, %v649_v42  ;;  %4575 = vmatpush.xpose.msk.msrb.mxu0 %vm7460_vm1, %v612_v0 }
  0x30   : > { %v626_v46 = vadd.f32 %v625_v38, %v624_v41  ;;  %v5848_v32 = vshrl.u32 %v484_v31, 7 }
  0x31   : > { %v653_v50 = vadd.f32 %v652_v45, %v651_v47  ;;  %v768_v45 = vld [vmem:[%s7443_s3] sm:$0x1] }
  0x32   : > { %v628_v49 = vadd.f32 %v627_v43, %v626_v46  ;;  %v5854_v35 = vadd.s32 8, %v5848_v32  ;;  %v5857_v36 = vadd.s32 16, %v5848_v32  ;;  %v497_v39 = vand.u32 7, %v5848_v32  ;;  %v5154_v46 = vld [vmem:[#allocation4 + $0x38] sm:$0xff] }
  0x33   : > { %v655_v53 = vadd.f32 %v654_v48, %v653_v50  ;;  %4576 = vmatpush.xpose.msk.msrb.mxu0 %vm7460_vm1, %v5743_v1  ;;  %v5864_v40 = vadd.s32 32, %v5848_v32  ;;  %v5867_v41 = vadd.s32 40, %v5848_v32  ;;  %1134 = vmatpush.bf16.msra.mxu2 %v5154_v46  ;;  %v5583_v50 = vmov 0   ;;  %v5170_v46 = vld [vmem:[#allocation4 + $0x98] sm:$0xff] }
  0x34   : > { %v629_v52 = vrot.slane %v628_v49, 4  ;;  %v504_v43 = vand.u32 7, %v5854_v35  ;;  %v511_v44 = vand.u32 7, %v5857_v36  ;;  %vm589_vm7 = vcmp.ge.s32.totalorder %v497_v39, 1  ;;  %2721 = vst [vmem:[#allocation3] sm:$0xf] %v5583_v50 }
  0x35   : > { %v657_v55 = vadd.f32 %v656_v51, %v655_v53  ;;  %vm887_vm8 = vmpackc.low %vm589_vm7, %vm589_vm7  ;;  %v525_v51 = vand.u32 7, %v5864_v40  ;;  %2722 = vst [vmem:[#allocation3 + $0x4] sm:$0xf] %v5583_v50  ;;  %v5163_v35 = vld [vmem:[#allocation4 + $0x60] sm:$0xff] }
  0x36   : > { %v630_v54 = vadd.f32 %v629_v52, %v628_v49  ;;  %v532_v52 = vand.u32 7, %v5867_v41  ;;  %vm5883_vm9 = vcmp.ge.s32.totalorder %v504_v43, 1  ;;  %vm5889_vm10 = vcmp.ge.s32.totalorder %v511_v44, 1  ;;  %2723 = vst [vmem:[#allocation3 + $0x28] sm:$0xf] %v5583_v50 }
  0x37   : > { %v658_v57 = vrot.slane %v657_v55, 4  ;;  %4577 = vmatpush.xpose.msk.msrb.mxu0 %vm7460_vm1, %v5748_v2  ;;  %2724 = vst [vmem:[#allocation3 + $0x2c] sm:$0xf] %v5583_v50  ;;  %vm888_vm13 = vmpackc.low %vm5883_vm9, %vm5883_vm9 }
  0x38   : > { %v631_v56 = vrot.slane %v630_v54, 2  ;;  %843 = vst.msk [vmem:[#allocation2 + $0x4] sm:$0xf] %vm841_vm12, %v5583_v50  ;;  %vm889_vm14 = vmpackc.low %vm5889_vm10, %vm5889_vm10  ;;  %v896_v31 = vsel %vm888_vm13, 65537, %v5583_v50 }
  0x39   : > { %v659_v59 = vadd.f32 %v658_v57, %v657_v55  ;;  %842 = vst.msk [vmem:[#allocation2] sm:$0xf] %vm841_vm12, %v5583_v50 }
  0x3a   : > { %v632_v58 = vadd.f32 %v631_v56, %v630_v54  ;;  %v5894_v56 = vsel %vm887_vm8, 65537, %v5583_v50  ;;  %844 = vst.msk [vmem:[#allocation2 + $0x28] sm:$0xf] %vm841_vm12, %v5583_v50  ;;  %v5970_v54 = vunpack.c.l.b16 %v5583_v50 }
  0x3b   : > { %v660_v61 = vrot.slane %v659_v59, 2  ;;  %4578 = vmatpush.xpose.msk.msrb.mxu0 %vm7460_vm1, %v5768_v8  ;;  %v5582_v8 = vmov 128.0   ;;  %845 = vst.msk [vmem:[#allocation2 + $0x2c] sm:$0xf] %vm841_vm12, %v5583_v50 }
  0x3c   : > { %v633_v60 = vrot.slane %v632_v58, 1  ;;  %5366 = vrcp.f32 %v5582_v8  ;;  %v907_v8 = vshll.u32 %v5894_v56, 16 }
  0x3d   : > { %v661_v62 = vadd.f32 %v660_v61, %v659_v59  ;;  %v5158_v61 = vld [vmem:[#allocation4 + $0x40] sm:$0xff] }
  0x3e   : > { %v634_v63 = vadd.f32 %v633_v60, %v632_v58  ;;  %v5153_v60 = vld [vmem:[#allocation4 + $0x30] sm:$0xff]  ;;  %v5972_v55 = vrot.slane %v907_v8, 5  ;;  %v5983_v8 = vunpack.c.h.b16 %v5583_v50 }
  0x3f   : > { %v662_v0 = vrot.slane %v661_v62, 1  ;;  %4579 = vmatpush.xpose.msk.msrb.mxu0 %vm7460_vm1, %v608_v15  ;;  %1135 = vmatpush.bf16.msra.mxu2 %v5153_v60  ;;  %v920_v60 = vshrl.u32 %v896_v31, 16 }
  0x41   : > { %v663_v1 = vadd.f32 %v662_v0, %v661_v62 }
  0x42   : > { %v5367_v9 = vpop.eup %5366 }
  0x43   : > { %v665_v7 = vsel %vm7459_vm2, %v634_v63, %v663_v1  ;;  %4580 = vmatpush.xpose.msk.msrb.mxu0 %vm7460_vm1, %v607_v22  ;;  %v738_v10 = vmul.f32 128.0, %v5367_v9  ;;  %vm742_vm3 = vweird.f32 %v5367_v9  ;;  %v5152_v1 = vld [vmem:[#allocation4 + $0x28] sm:$0xff] }
  0x44   : > { %4574 = vmatmul.msk.f32.vlgmr.msra.gmra.mxu0 %vm7461_vm0, %v665_v7  ;;  %v5150_v7 = vld [vmem:[#allocation4 + $0x18] sm:$0xff]  ;;  %1136 = vmatpush.bf16.msra.mxu2 %v5152_v1 }
  0x45   : > { %v739_v11 = vsub.f32 1.0, %v738_v10  ;;  %1267 = vmatpush.bf16.msra.mxu1 %v5150_v7  ;;  %5292 = vmatpush.bf16.msra.mxu3 %v5150_v7 }
  0x47   : > { %4581 = vmatpush.xpose.msk.msrb.mxu0 %vm7460_vm1, %v606_v30  ;;  %v740_v12 = vmul.f32 %v5367_v9, %v739_v11 }
  0x49   : > { %v741_v14 = vadd.f32 %v5367_v9, %v740_v12  ;;  %v5151_v12 = vld [vmem:[#allocation4 + $0x20] sm:$0xff] }
  0x4a   : > { %1137 = vmatpush.bf16.msra.mxu2 %v5151_v12 }
  0x4b   : > { %4582 = vmatpush.xpose.msk.msrb.mxu0 %vm7460_vm1, %v605_v37  ;;  %v743_v15 = vsel %vm742_vm3, %v5367_v9, %v741_v14  ;;  %v5860_v37 = vadd.s32 24, %v5848_v32  ;;  %v5149_v14 = vld [vmem:[#allocation4 + $0x10] sm:$0xff]  ;;  %vm7458_vm3 = vsmask.f32 3328 }
  0x4c   : > { %1268 = vmatpush.bf16.msra.mxu1 %v5149_v14  ;;  %5293 = vmatpush.bf16.msra.mxu3 %v5149_v14 }
  0x4d   : > { %v518_v47 = vand.u32 7, %v5860_v37  ;;  %v5165_v37 = vld [vmem:[#allocation4 + $0x70] sm:$0xff] }
  0x4e   : > { %1850 = vmatpush.bf16.msrb.mxu2 %v5170_v46 }
  0x4f   : > { %vm5902_vm11 = vcmp.ge.s32.totalorder %v518_v47, 1 }
  0x50   : > { %vm890_vm15 = vmpackc.low %vm5902_vm11, %vm5902_vm11 }
  0xc1   : > { %v686_v2 = vpop.f32.mrf.mxu0 }
  0xc2   : > { %4583 = vmatmul.msk.f32.vlgmr.msrb.gmra.mxu0 %vm7460_vm1, %v686_v2  ;;  %v5161_v2 = vld [vmem:[#allocation4 + $0x58] sm:$0xff] }
  0xc3   : > { %1588 = vmatpush.bf16.msra.mxu0 %v5161_v2 }
 0x13f   : > { %v734_v16 = vpop.f32.mrf.mxu0 }
 0x140   : > { %v744_v17 = vmul.f32 %v743_v15, %v734_v16  ;;  %v5160_v15 = vld [vmem:[#allocation4 + $0x50] sm:$0xff] }
 0x141   : > { %1589 = vmatpush.bf16.msra.mxu0 %v5160_v15 }
 0x142   : > { %v745_v18 = vmul.f32 %v744_v17, %v744_v17 }
 0x144   : > { %v747_v20 = vrot.slane %v745_v18, 7 }
 0x146   : > { %v749_v21 = vsub.f32 %v744_v17, %v747_v20 }
 0x148   : > { %v750_v22 = vadd.f32 1e-06, %v749_v21 }
 0x14a   : > { %5368 = vrsqrt.f32 %v750_v22  ;;  %vm757_vm5 = vweird.f32 %v750_v22 }
 0x150   : > { %v5369_v23 = vpop.eup %5368 }
 0x151   : > { %v752_v24 = vmul.f32 %v5369_v23, %v750_v22  ;;  %vm758_vm4 = vweird.f32 %v5369_v23 }
 0x152   : > { %vm759_vm6 = vmor %vm757_vm5, %vm758_vm4  ;;  %vm904_vm4 = vsmask.f32 7440  ;;  %vm5978_vm5 = vcmp.ge.s32.totalorder %v525_v51, 1 }
 0x153   : > { %v753_v25 = vmul.f32 %v5369_v23, %v752_v24  ;;  %vm5994_vm7 = vmor %vm7458_vm3, %vm904_vm4 }
 0x155   : > { %v754_v26 = vmul.f32 0.5, %v753_v25 }
 0x157   : > { %v755_v28 = vsub.f32 1.5, %v754_v26 }
 0x159   : > { %v756_v29 = vmul.f32 %v5369_v23, %v755_v28 }
 0x15b   : > { %v760_v30 = vsel %vm759_vm6, %v5369_v23, %v756_v29  ;;  %vm5988_vm6 = vcmp.ge.s32.totalorder %v532_v52, 1 }
 0x15c   : > { %763 = vst [vmem:[#allocation1] sm:$0xff] %v760_v30 }
 0x163   : > { %v765_v38 = vld [vmem:[#allocation1 + $0x1] ss:$9 sm:$0xff] }
 0x164   : > { %v767_v42 = vmul.f32 %v765_v38, %v761_v33  ;;  %v897_v33 = vsel %vm889_vm14, 65537, %v5583_v50  ;;  %vm891_vm14 = vmpackc.low %vm5978_vm5, %vm5978_vm5 }
 0x166   : > { %v769_v48 = vmul.f32 %v767_v42, %v744_v17  ;;  %v772_v49 = vperm.slane %v767_v42, 0 }
 0x168   : > { %v770_v53 = vsub.f32 %v768_v45, %v769_v48  ;;  %v774_v57 = vmul.f32 %v772_v49, %v5751_v3  ;;  %v775_v58 = vmul.f32 %v772_v49, %v5755_v4  ;;  %v776_v59 = vmul.f32 %v772_v49, %v5758_v5  ;;  %v5148_v48 = vld [vmem:[#allocation4 + $0x8] sm:$0xff] }
 0x169   : > { %v777_v62 = vmul.f32 %v772_v49, %v5761_v6  ;;  %v778_v63 = vmul.f32 %v772_v49, %v5780_v13  ;;  %v779_v0 = vmul.f32 %v772_v49, %v5793_v19  ;;  %v780_v4 = vmul.f32 %v772_v49, %v5806_v27  ;;  %1269 = vmatpush.bf16.msra.mxu1 %v5148_v48 }
 0x16a   : > { %v783_v3 = vperm.slane %v770_v53, 0  ;;  %v781_v5 = vmul.f32 %v772_v49, %v5817_v34  ;;  %v5159_v49 = vld [vmem:[#allocation4 + $0x48] sm:$0xff]  ;;  %v5967_v53 = vsel %vm890_vm15, 65537, %v5583_v50  ;;  %5294 = vmatpush.bf16.msra.mxu3 %v5148_v48 }
 0x16b   : > { %1590 = vmatpush.bf16.msra.mxu0 %v5159_v49 }
 0x16c   : > { %v5913_v9 = vadd.f32 %v783_v3, %v774_v57  ;;  %v5915_v6 = vadd.f32 %v783_v3, %v775_v58  ;;  %v5917_v13 = vadd.f32 %v783_v3, %v776_v59  ;;  %v5919_v19 = vadd.f32 %v783_v3, %v777_v62  ;;  %v5147_v57 = vld [vmem:[#allocation4] sm:$0xff] }
 0x16d   : > { %v5926_v27 = vadd.f32 %v783_v3, %v778_v63  ;;  %v5928_v34 = vadd.f32 %v783_v3, %v779_v0  ;;  %v5930_v10 = vadd.f32 %v783_v3, %v780_v4  ;;  %v5932_v11 = vadd.f32 %v783_v3, %v781_v5  ;;  %1270 = vmatpush.bf16.msra.mxu1 %v5147_v57 }
 0x16e   : > { %v793_v16 = vsub.f32 0.0, %v5913_v9  ;;  %v794_v17 = vsub.f32 0.0, %v5915_v6  ;;  %v795_v18 = vsub.f32 0.0, %v5917_v13  ;;  %v796_v20 = vsub.f32 0.0, %v5919_v19  ;;  %5295 = vmatpush.bf16.msra.mxu3 %v5147_v57 }
 0x16f   : > { %v797_v21 = vsub.f32 0.0, %v5926_v27  ;;  %v798_v22 = vsub.f32 0.0, %v5928_v34  ;;  %v799_v23 = vsub.f32 0.0, %v5930_v10  ;;  %v800_v24 = vsub.f32 0.0, %v5932_v11  ;;  %1591 = vmatpush.bf16.msra.mxu0 %v5158_v61 }
 0x170   : > { %v801_v25 = vmul.f32 1.442695, %v793_v16  ;;  %v803_v26 = vmul.f32 1.442695, %v794_v17  ;;  %v805_v28 = vmul.f32 1.442695, %v795_v18 }
 0x171   : > { %v807_v29 = vmul.f32 1.442695, %v796_v20  ;;  %v809_v30 = vmul.f32 1.442695, %v797_v21  ;;  %v811_v38 = vmul.f32 1.442695, %v798_v22 }
 0x172   : > { %5370 = vpow2.f32 %v801_v25  ;;  %v813_v42 = vmul.f32 1.442695, %v799_v23  ;;  %v815_v45 = vmul.f32 1.442695, %v800_v24  ;;  %v910_v58 = vshrl.u32 %v5894_v56, 16 }
 0x173   : > { %5372 = vpow2.f32 %v803_v26  ;;  %v916_v59 = vshll.u32 %v896_v31, 16  ;;  %v926_v62 = vshll.u32 %v897_v33, 16  ;;  %v930_v63 = vshrl.u32 %v897_v33, 16 }
 0x174   : > { %5374 = vpow2.f32 %v805_v28  ;;  %v936_v0 = vshll.u32 %v5967_v53, 16  ;;  %v912_v3 = vrot.slane %v910_v58, 4  ;;  %v922_v5 = vrot.slane %v920_v60, 4 }
 0x175   : > { %5376 = vpow2.f32 %v807_v29  ;;  %v918_v4 = vrot.slane %v916_v59, 5  ;;  %v928_v7 = vrot.slane %v926_v62, 5  ;;  %v932_v2 = vrot.slane %v930_v63, 4 }
 0x176   : > { %5378 = vpow2.f32 %v809_v30  ;;  %v913_v15 = vor.u32 %v912_v3, %v5972_v55  ;;  %v5998_v23 = vrot.slane %v936_v0, 5  ;;  %v985_v24 = vunpack.c.l.b16 %v5972_v55  ;;  %v862_v3 = vld [vmem:[#allocation2] sm:$0x8] }
 0x177   : > { %5380 = vpow2.f32 %v811_v38  ;;  %v923_v16 = vor.u32 %v922_v5, %v918_v4  ;;  %v933_v22 = vor.u32 %v932_v2, %v928_v7  ;;  %v986_v38 = vunpack.c.h.b16 %v5972_v55 }
 0x178   : > { %v5371_v56 = vpop.eup %5370  ;;  %5382 = vpow2.f32 %v813_v42  ;;  %v914_v28 = vrot.slane %v913_v15, 4  ;;  %vm989_vm8 = vcmp.ne.s32.totalorder %v985_v24, %v5970_v54  ;;  %v7540_v5 = vmov 0 }
 0x179   : > { %v5373_v12 = vpop.eup %5372  ;;  %5384 = vpow2.f32 %v815_v45  ;;  %v817_v14 = vadd.f32 1.0, %v5371_v56  ;;  %v924_v29 = vrot.slane %v923_v16, 4  ;;  %v934_v33 = vrot.slane %v933_v22, 4 }
 0x17a   : > { %v5375_v18 = vpop.eup %5374  ;;  %v818_v20 = vadd.f32 1.0, %v5373_v12  ;;  %v919_v46 = vsel %vm5994_vm7, %v914_v28, %v918_v4  ;;  %vm990_vm9 = vcmp.ne.s32.totalorder %v986_v38, %v5983_v8  ;;  %v863_v4 = vld [vmem:[#allocation2 + $0x4] sm:$0xf] }
 0x17b   : > { %v5377_v25 = vpop.eup %5376  ;;  %v819_v26 = vadd.f32 1.0, %v5375_v18  ;;  %5386 = vrcp.f32 %v817_v14  ;;  %v929_v48 = vsel %vm5994_vm7, %v924_v29, %v928_v7  ;;  %v939_v58 = vsel %vm5994_vm7, %v934_v33, %v5998_v23  ;;  %vm6011_vm10 = vmpackc.low %vm990_vm9, %vm989_vm8 }
 0x17c   : > { %v5379_v30 = vpop.eup %5378  ;;  %v820_v31 = vadd.f32 1.0, %v5377_v25  ;;  %5388 = vrcp.f32 %v818_v20  ;;  %v992_v60 = vunpack.c.l.b16 %v919_v46  ;;  %v993_v62 = vunpack.c.h.b16 %v919_v46  ;;  %vm892_vm9 = vmpackc.low %vm5988_vm6, %vm5988_vm6 }
 0x17d   : > { %v5381_v42 = vpop.eup %5380  ;;  %v821_v45 = vadd.f32 1.0, %v5379_v30  ;;  %5390 = vrcp.f32 %v819_v26  ;;  %v999_v63 = vunpack.c.l.b16 %v929_v48  ;;  %v7541_v5 = vsel %vm6011_vm10, 4294967295, %v7540_v5 }
 0x17e   : > { %v5383_v49 = vpop.eup %5382  ;;  %v822_v57 = vadd.f32 1.0, %v5381_v42  ;;  %5392 = vrcp.f32 %v820_v31  ;;  %vm996_vm11 = vcmp.ne.s32.totalorder %v992_v60, %v5970_v54  ;;  %v1000_v56 = vunpack.c.h.b16 %v929_v48 }
 0x17f   : > { %v5385_v59 = vpop.eup %5384  ;;  %v823_v55 = vadd.f32 1.0, %v5383_v49  ;;  %5394 = vrcp.f32 %v821_v45  ;;  %v1006_v7 = vunpack.c.l.b16 %v939_v58  ;;  %v940_v14 = vshrl.u32 %v5967_v53, 16 }
 0x180   : > { %v824_v61 = vadd.f32 1.0, %v5385_v59  ;;  %5396 = vrcp.f32 %v822_v57  ;;  %vm997_vm13 = vcmp.ne.s32.totalorder %v993_v62, %v5983_v8  ;;  %v7542_v18 = vmov 0 }
 0x181   : > { %v5387_v0 = vpop.eup %5386  ;;  %5398 = vrcp.f32 %v823_v55  ;;  %vm6023_vm15 = vmpackc.low %vm997_vm13, %vm996_vm11  ;;  %vm6028_vm4 = vcmp.ne.s32.totalorder %v999_v63, %v5970_v54  ;;  %vm6033_vm8 = vcmp.ne.s32.totalorder %v1000_v56, %v5983_v8  ;;  %v1007_v53 = vunpack.c.h.b16 %v939_v58 }
 0x182   : > { %v5389_v2 = vpop.eup %5388  ;;  %5400 = vrcp.f32 %v824_v61  ;;  %v833_v12 = vmul.f32 %v5387_v0, %v5913_v9  ;;  %v7543_v18 = vsel %vm6023_vm15, 4294967295, %v7542_v18  ;;  %v1049_v26 = vsel %vm6023_vm15, %v863_v4, 0  ;;  %vm6085_vm5 = vmpackc.low %vm6033_vm8, %vm6028_vm4 }
 0x183   : > { %v5391_v15 = vpop.eup %5390  ;;  %v834_v16 = vmul.f32 %v5389_v2, %v5915_v6  ;;  %v1048_v6 = vsel %vm6011_vm10, %v862_v3, 0  ;;  %vm6047_vm11 = vcmp.ne.s32.totalorder %v1006_v7, %v5970_v54  ;;  %vm6054_vm13 = vcmp.ne.s32.totalorder %v1007_v53, %v5983_v8 }
 0x184   : > { %v5393_v22 = vpop.eup %5392  ;;  %v835_v24 = vmul.f32 %v5391_v15, %v5917_v13  ;;  %v846_v25 = vpack.c.bf16 %v833_v12, %v833_v12  ;;  %v1168_v13 = vunpack.c.l.b16 %v1048_v6  ;;  %v1169_v46 = vunpack.c.l.b16 %v1049_v26  ;;  %vm6095_vm6 = vmpackc.low %vm6054_vm13, %vm6047_vm11 }
 0x185   : > { %v5395_v28 = vpop.eup %5394  ;;  %v836_v29 = vmul.f32 %v5393_v22, %v5919_v19  ;;  %v847_v30 = vpack.c.bf16 %v834_v16, %v834_v16  ;;  %v6072_v57 = vsel %vm892_vm9, 65537, %v5583_v50  ;;  %v942_v60 = vrot.slane %v940_v14, 4 }
 0x186   : > { %v5397_v33 = vpop.eup %5396  ;;  %v837_v38 = vmul.f32 %v5395_v28, %v5926_v27  ;;  %v848_v42 = vpack.c.bf16 %v835_v24, %v835_v24  ;;  %854 = vst.msk [vmem:[#allocation2 + $0x8] sm:$0xf] %vm841_vm12, %v846_v25  ;;  %v899_v27 = vsel %vm891_vm14, 65537, %v5583_v50  ;;  %v1177_v55 = vpack.c.b16 %v1169_v46, %v1168_v13 }
 0x187   : > { %v5399_v19 = vpop.eup %5398  ;;  %v838_v48 = vmul.f32 %v5397_v33, %v5928_v34  ;;  %v849_v49 = vpack.c.bf16 %v836_v29, %v836_v29  ;;  %855 = vst.msk [vmem:[#allocation2 + $0xc] sm:$0xf] %vm841_vm12, %v847_v30  ;;  %v946_v62 = vshll.u32 %v899_v27, 16  ;;  %v950_v63 = vshrl.u32 %v899_v27, 16 }
 0x188   : > { %v5401_v58 = vpop.eup %5400  ;;  %v839_v34 = vmul.f32 %v5399_v19, %v5930_v10  ;;  %v850_v59 = vpack.c.bf16 %v837_v38, %v837_v38  ;;  %856 = vst.msk [vmem:[#allocation2 + $0x10] sm:$0xf] %vm841_vm12, %v848_v42  ;;  %v1184_v17 = vshrl.u32 %v1177_v55, 16  ;;  %v1187_v3 = vshll.u32 %v1177_v55, 16 }
 0x189   : > { %v840_v1 = vmul.f32 %v5401_v58, %v5932_v11  ;;  %v851_v61 = vpack.c.bf16 %v838_v48, %v838_v48  ;;  %857 = vst.msk [vmem:[#allocation2 + $0x14] sm:$0xf] %vm841_vm12, %v849_v49  ;;  %v943_v4 = vor.u32 %v942_v60, %v5998_v23  ;;  %v7552_v11 = vmov 0 }
 0x18a   : > { %v852_v0 = vpack.c.bf16 %v839_v34, %v839_v34  ;;  %858 = vst.msk [vmem:[#allocation2 + $0x18] sm:$0xf] %vm841_vm12, %v850_v59  ;;  %v7553_v11 = vsel %vm6085_vm5, 4294967295, %v7552_v11  ;;  %v948_v56 = vrot.slane %v946_v62, 5  ;;  %v952_v7 = vrot.slane %v950_v63, 4 }
 0x18b   : > { %v853_v10 = vpack.c.bf16 %v840_v1, %v840_v1  ;;  %859 = vst.msk [vmem:[#allocation2 + $0x1c] sm:$0xf] %vm841_vm12, %v851_v61  ;;  %v956_v2 = vshll.u32 %v6072_v57, 16  ;;  %v7554_v23 = vmov 0  ;;  %v6099_v12 = vrot.slane %v1184_v17, 3 }
 0x18c   : > { %860 = vst.msk [vmem:[#allocation2 + $0x20] sm:$0xf] %vm841_vm12, %v852_v0  ;;  %v7555_v23 = vsel %vm6095_vm6, 4294967295, %v7554_v23  ;;  %v6101_v14 = vrot.slane %v1187_v3, 4  ;;  %v944_v15 = vrot.slane %v943_v4, 4  ;;  %v960_v16 = vshrl.u32 %v6072_v57, 16 }
 0x18d   : > { %v5143_v20 = vld [vmem:[#allocation2 + $0x4] sm:$0xff]  ;;  %861 = vst.msk [vmem:[#allocation2 + $0x24] sm:$0xf] %vm841_vm12, %v853_v10  ;;  %v953_v53 = vor.u32 %v952_v7, %v948_v56  ;;  %v6105_v22 = vrot.slane %v956_v2, 5  ;;  %vm6115_vm14 = vcmp.lt.s32.totalorder %v497_v39, 7  ;;  %vm6127_vm8 = vcmp.lt.s32.totalorder %v504_v43, 7 }
 0x18e   : > { %v864_v9 = vld [vmem:[#allocation2 + $0x8] sm:$0xf]  ;;  %v865_v24 = vld [vmem:[#allocation2 + $0xc] sm:$0xf]  ;;  %v1190_v6 = vor.u32 %v6101_v14, %v6099_v12  ;;  %v949_v26 = vsel %vm5994_vm7, %v944_v15, %v948_v56  ;;  %4616 = vmatmul.msk.bf16.vlgmr.msra.gmra.mxu2 %vm7461_vm0, %v5143_v20  ;;  %vm1317_vm4 = vmpackc.low %vm6115_vm14, %vm6115_vm14  ;;  %vm6133_vm9 = vcmp.lt.s32.totalorder %v511_v44, 7  ;;  %vm6143_vm13 = vcmp.lt.s32.totalorder %v518_v47, 7 }
 0x18f   : > { %v1050_v25 = vsel %vm6085_vm5, %v864_v9, 0  ;;  %v1051_v29 = vsel %vm6095_vm6, %v865_v24, 0  ;;  %v954_v31 = vrot.slane %v953_v53, 4  ;;  %v1013_v13 = vunpack.c.l.b16 %v949_v26  ;;  %v866_v38 = vld [vmem:[#allocation2 + $0x10] sm:$0xf]  ;;  %vm1318_vm14 = vmpackc.low %vm6127_vm8, %vm6127_vm8  ;;  %v5166_v43 = vld [vmem:[#allocation4 + $0x78] sm:$0xff] }
 0x190   : > { %v1170_v30 = vunpack.c.l.b16 %v1050_v25  ;;  %v1171_v33 = vunpack.c.l.b16 %v1051_v29  ;;  %v1014_v42 = vunpack.c.h.b16 %v949_v26  ;;  %v867_v46 = vld [vmem:[#allocation2 + $0x14] sm:$0xf]  ;;  %v1325_v36 = vsel %vm1317_vm4, 65537, %v5583_v50  ;;  %vm1319_vm2 = vmpackc.low %vm6133_vm9, %vm6133_vm9  ;;  %1748 = vmatpush.bf16.msrb.mxu1 %v5166_v43  ;;  %v5164_v24 = vld [vmem:[#allocation4 + $0x68] sm:$0xff] }
 0x191   : > { %v959_v19 = vsel %vm5994_vm7, %v954_v31, %v6105_v22  ;;  %vm1017_vm11 = vcmp.ne.s32.totalorder %v1013_v13, %v5970_v54  ;;  %v5169_v47 = vld [vmem:[#allocation4 + $0x90] sm:$0xff]  ;;  %v7564_v27 = vmov 0  ;;  %v1326_v58 = vsel %vm1318_vm14, 65537, %v5583_v50 }
 0x192   : > { %v1178_v44 = vpack.c.b16 %v1171_v33, %v1170_v30  ;;  %vm1018_vm3 = vcmp.ne.s32.totalorder %v1014_v42, %v5983_v8  ;;  %v1020_v48 = vunpack.c.l.b16 %v959_v19  ;;  %v1021_v49 = vunpack.c.h.b16 %v959_v19  ;;  %1851 = vmatpush.bf16.msrb.mxu2 %v5169_v47  ;;  %v869_v21 = vld [vmem:[#allocation2 + $0x1c] sm:$0xf] }
 0x193   : > { %vm6155_vm1 = vmpackc.low %vm1018_vm3, %vm1017_vm11  ;;  %v1327_v34 = vsel %vm1319_vm2, 65537, %v5583_v50  ;;  %vm1333_vm4 = vsmask.f32 256  ;;  %vm1334_vm8 = vsmask.f32 4368  ;;  %v7566_v60 = vmov 0 }
 0x194   : > { %v7565_v27 = vsel %vm6155_vm1, 4294967295, %v7564_v27  ;;  %v1192_v59 = vshrl.u32 %v1178_v44, 16  ;;  %v1195_v55 = vshll.u32 %v1178_v44, 16  ;;  %vm1024_vm0 = vcmp.ne.s32.totalorder %v1020_v48, %v5970_v54  ;;  %vm1320_vm3 = vmpackc.low %vm6143_vm13, %vm6143_vm13  ;;  %1749 = vmatpush.bf16.msrb.mxu1 %v5165_v37  ;;  %v1292_v37 = vld [vmem:[#allocation2 + $0x4] sm:$0xf] }
 0x195   : > { %vm1025_vm12 = vcmp.ne.s32.totalorder %v1021_v49, %v5983_v8  ;;  %v1052_v1 = vsel %vm6155_vm1, %v866_v38, 0  ;;  %v1328_v61 = vsel %vm1320_vm3, 65537, %v5583_v50  ;;  %v1337_v62 = vshrl.u32 %v1325_v36, 16  ;;  %vm6181_vm2 = vmor %vm1333_vm4, %vm1334_vm8  ;;  %v5144_v49 = vld [vmem:[#allocation2 + $0xc] sm:$0xff] }
 0x196   : > { %vm6166_vm9 = vmpackc.low %vm1025_vm12, %vm1024_vm0  ;;  %v1340_v63 = vshll.u32 %v1325_v36, 16  ;;  %v1194_v0 = vrot.slane %v1192_v59, 3  ;;  %v1197_v17 = vrot.slane %v1195_v55, 4  ;;  %v1172_v4 = vunpack.c.l.b16 %v1052_v1 }
 0x197   : > { %v7567_v60 = vsel %vm6166_vm9, 4294967295, %v7566_v60  ;;  %v1053_v3 = vsel %vm6166_vm9, %v867_v46, 0  ;;  %v1339_v56 = vrot.slane %v1337_v62, 7  ;;  %v1345_v7 = vshrl.u32 %v1326_v58, 16 }
 0x198   : > { %7568 = vst [vmem:[#allocation17_spill] sm:$0xff] %v7567_v60  ;;  %v1173_v10 = vunpack.c.l.b16 %v1053_v3  ;;  %v1348_v2 = vshll.u32 %v1326_v58, 16  ;;  %v1198_v15 = vor.u32 %v1197_v17, %v1194_v0  ;;  %v1354_v20 = vshrl.u32 %v1327_v34, 16  ;;  %1750 = vmatpush.bf16.msrb.mxu1 %v5164_v24 }
 0x199   : > { %v1357_v9 = vshll.u32 %v1327_v34, 16  ;;  %v1363_v53 = vshrl.u32 %v1328_v61, 16  ;;  %v1342_v26 = vor.u32 %v1340_v63, %v1339_v56  ;;  %v1343_v28 = vrot.slane %v1339_v56, 4  ;;  %v6216_v56 = vld [vmem:[#allocation2 + $0x10] sm:$0xf] }
 0x19a   : > { %v1179_v25 = vpack.c.b16 %v1173_v10, %v1172_v4  ;;  %v1347_v29 = vrot.slane %v1345_v7, 7  ;;  %vm7569_vm0 = vsmask.f32 4352  ;;  %v1356_v13 = vrot.slane %v1354_v20, 7  ;;  %v6209_v4 = vld [vmem:[#allocation2 + $0xc] sm:$0xf] }
 0x19b   : > { %v1199_v30 = vsel %vm7569_vm0, %v1190_v6, %v1198_v15  ;;  %v6185_v33 = vrot.slane %v1363_v53, 7  ;;  %v1366_v38 = vshll.u32 %v1328_v61, 16  ;;  %vm7572_vm12 = vcmask 523264   ;;  %v6200_v61 = vld [vmem:[#allocation2 + $0x8] sm:$0xf]  ;;  %vm7576_vm3 = vmmov %vm7569_vm0 }
 0x19c   : > { %4636 = vmatmul.msk.bf16.vlgmr.msra.gmra.mxu1 %vm7572_vm12, %v1199_v30  ;;  %v1201_v42 = vshrl.u32 %v1179_v25, 16  ;;  %v1204_v39 = vshll.u32 %v1179_v25, 16  ;;  %v1350_v45 = vor.u32 %v1348_v2, %v1347_v29  ;;  %v1352_v46 = vrot.slane %v1347_v29, 4  ;;  %vm7573_vm14 = vmmov %vm7572_vm12 }
 0x19d   : > { %v1359_v19 = vor.u32 %v1357_v9, %v1356_v13  ;;  %v1361_v12 = vrot.slane %v1356_v13, 4  ;;  %v1368_v14 = vor.u32 %v1366_v38, %v6185_v33  ;;  %v1407_v6 = vunpack.c.l.b16 %v1342_v26  ;;  %1751 = vmatpush.bf16.msrb.mxu1 %v5163_v35 }
 0x19e   : > { %v1203_v36 = vrot.slane %v1201_v42, 3  ;;  %v1206_v43 = vrot.slane %v1204_v39, 4  ;;  %v1351_v44 = vsel %vm6181_vm2, %v1343_v28, %v1350_v45  ;;  %v1408_v48 = vunpack.c.h.b16 %v1342_v26  ;;  %4617 = vmatmul.msk.bf16.gmra.mxu2 %vm7573_vm14, %v5144_v49 }
 0x19f   : > { %v1360_v47 = vsel %vm6181_vm2, %v1352_v46, %v1359_v19  ;;  %v1369_v58 = vsel %vm6181_vm2, %v1361_v12, %v1368_v14  ;;  %vm1411_vm11 = vcmp.ne.s32.totalorder %v1407_v6, %v5970_v54  ;;  %v1414_v34 = vunpack.c.l.b16 %v1351_v44 }
 0x1a0   : > { %v6196_v59 = vor.u32 %v1206_v43, %v1203_v36  ;;  %vm1412_vm13 = vcmp.ne.s32.totalorder %v1408_v48, %v5983_v8  ;;  %v1415_v55 = vunpack.c.h.b16 %v1351_v44  ;;  %v1421_v1 = vunpack.c.l.b16 %v1360_v47 }
 0x1a1   : > { %vm6202_vm4 = vmpackc.low %vm1412_vm13, %vm1411_vm11  ;;  %vm1418_vm8 = vcmp.ne.s32.totalorder %v1414_v34, %v5970_v54  ;;  %v1422_v63 = vunpack.c.h.b16 %v1360_v47  ;;  %v1428_v0 = vunpack.c.l.b16 %v1369_v58  ;;  %v1429_v17 = vunpack.c.h.b16 %v1369_v58 }
 0x1a2   : > { %v1208_v3 = vsel %vm7576_vm3, %v1198_v15, %v6196_v59  ;;  %vm1419_vm0 = vcmp.ne.s32.totalorder %v1415_v55, %v5983_v8  ;;  %vm1425_vm12 = vcmp.ne.s32.totalorder %v1421_v1, %v5970_v54  ;;  %v1470_v10 = vsel %vm6202_vm4, %v1292_v37, 0  ;;  %vm7577_vm11 = vmmov %vm7573_vm14 }
 0x1a3   : > { %4637 = vmatmul.msk.bf16.vlgmr.msra.gmra.mxu3 %vm7577_vm11, %v1208_v3  ;;  %vm6218_vm13 = vmpackc.low %vm1419_vm0, %vm1418_vm8  ;;  %v7578_v7 = vmov 0  ;;  %vm1426_vm14 = vcmp.ne.s32.totalorder %v1422_v63, %v5983_v8  ;;  %vm1432_vm3 = vcmp.ne.s32.totalorder %v1428_v0, %v5970_v54  ;;  %vm1433_vm9 = vcmp.ne.s32.totalorder %v1429_v17, %v5983_v8  ;;  %v5145_v3 = vld [vmem:[#allocation2 + $0x14] sm:$0xff] }
 0x1a4   : > { %v7579_v7 = vsel %vm6218_vm13, 4294967295, %v7578_v7  ;;  %v1497_v2 = vunpack.c.l.b16 %v1470_v10  ;;  %vm6225_vm1 = vmpackc.low %vm1426_vm14, %vm1425_vm12  ;;  %v1471_v20 = vsel %vm6218_vm13, %v6200_v61, 0  ;;  %v6233_v9 = vadd.s32 48, %v5848_v32 }
 0x1a5   : > { %v6236_v53 = vadd.s32 56, %v5848_v32  ;;  %vm6238_vm8 = vmpackc.low %vm1433_vm9, %vm1432_vm3  ;;  %v7582_v24 = vmov 0  ;;  %v1472_v25 = vsel %vm6225_vm1, %v6209_v4, 0  ;;  %v1498_v26 = vunpack.c.l.b16 %v1471_v20  ;;  %v5168_v32 = vld [vmem:[#allocation4 + $0x88] sm:$0xff] }
 0x1a6   : > { %v7583_v24 = vsel %vm6238_vm8, 4294967295, %v7582_v24  ;;  %v962_v28 = vrot.slane %v960_v16, 4  ;;  %vm6249_vm0 = vcmp.lt.s32.totalorder %v525_v51, 7  ;;  %v1473_v30 = vsel %vm6238_vm8, %v6216_v56, 0  ;;  %1852 = vmatpush.bf16.msrb.mxu2 %v5168_v32 }
 0x1a7   : > { %v1499_v13 = vunpack.c.l.b16 %v1472_v25  ;;  %v539_v38 = vand.u32 7, %v6233_v9  ;;  %v546_v42 = vand.u32 7, %v6236_v53  ;;  %vm1321_vm9 = vmpackc.low %vm6249_vm0, %vm6249_vm0  ;;  %v1500_v57 = vunpack.c.l.b16 %v1473_v30 }
 0x1a8   : > { %v1506_v40 = vpack.c.b16 %v1498_v26, %v1497_v2  ;;  %v963_v51 = vor.u32 %v962_v28, %v6105_v22  ;;  %vm602_vm12 = vcmp.lt.s32.totalorder %v532_v52, 7  ;;  %v1329_v39 = vsel %vm1321_vm9, 65537, %v5583_v50  ;;  %v1621_v26 = vld [vmem:[#allocation2 + $0x4] sm:$0x8] }
 0x1a9   : > { %vm595_vm14 = vcmp.ge.s32.totalorder %v539_v38, 1  ;;  %vm6268_vm3 = vcmp.ge.s32.totalorder %v546_v42, 1  ;;  %vm1322_vm11 = vmpackc.low %vm602_vm12, %vm602_vm12  ;;  %v1370_v45 = vrot.slane %v6185_v33, 4  ;;  %v1507_v46 = vpack.c.b16 %v1500_v57, %v1499_v13  ;;  %v868_v13 = vld [vmem:[#allocation2 + $0x18] sm:$0xf] }
 0x1aa   : > { %v1513_v22 = vshrl.u32 %v1506_v40, 16  ;;  %v1515_v19 = vshll.u32 %v1506_v40, 16  ;;  %vm893_vm0 = vmpackc.low %vm595_vm14, %vm595_vm14  ;;  %v964_v41 = vrot.slane %v963_v51, 4  ;;  %v1330_v12 = vsel %vm1322_vm11, 65537, %v5583_v50 }
 0x1ab   : > { %vm894_vm8 = vmpackc.low %vm6268_vm3, %vm6268_vm3  ;;  %v901_v52 = vsel %vm893_vm0, 65537, %v5583_v50  ;;  %v1372_v14 = vshrl.u32 %v1329_v39, 16  ;;  %v1375_v6 = vshll.u32 %v1329_v39, 16  ;;  %v1520_v36 = vshll.u32 %v1507_v46, 16 }
 0x1ac   : > { %v1517_v35 = vrot.slane %v1515_v19, 1  ;;  %v6280_v43 = vsel %vm894_vm8, 65537, %v5583_v50  ;;  %v966_v33 = vshll.u32 %v901_v52, 16  ;;  %v970_v44 = vshrl.u32 %v901_v52, 16 }
 0x1ad   : > { %v976_v48 = vshll.u32 %v6280_v43, 16  ;;  %v1374_v49 = vrot.slane %v1372_v14, 7  ;;  %v1381_v37 = vshrl.u32 %v1330_v12, 16  ;;  %v1522_v58 = vrot.slane %v1520_v36, 1 }
 0x1ae   : > { %v1518_v47 = vor.u32 %v1517_v35, %v1513_v22  ;;  %v968_v34 = vrot.slane %v966_v33, 5  ;;  %v1384_v55 = vshll.u32 %v1330_v12, 16  ;;  %v972_v1 = vrot.slane %v970_v44, 4 }
 0x1af   : > { %v6283_v63 = vrot.slane %v976_v48, 5  ;;  %v1377_v0 = vor.u32 %v1375_v6, %v1374_v49  ;;  %v1379_v17 = vrot.slane %v1374_v49, 4  ;;  %vm7588_vm11 = vsmask.f32 7424  ;;  %v6323_v48 = vld [vmem:[#allocation2 + $0x18] sm:$0xf] }
 0x1b0   : > { %v1523_v10 = vsel %vm7588_vm11, %v1518_v47, %v1522_v58  ;;  %v969_v2 = vsel %vm5994_vm7, %v964_v41, %v968_v34  ;;  %v6288_v20 = vrot.slane %v1381_v37, 7  ;;  %v1524_v25 = vshrl.u32 %v1507_v46, 16  ;;  %v6299_v46 = vld [vmem:[#allocation2 + $0x14] sm:$0xf] }
 0x1b1   : > { %vm7589_vm8 = vcmask 523264   ;;  %v973_v28 = vor.u32 %v972_v1, %v968_v34  ;;  %v1027_v29 = vunpack.c.l.b16 %v969_v2  ;;  %v1028_v32 = vunpack.c.h.b16 %v969_v2 }
 0x1b2   : > { %4656 = vmatmul.msk.bf16.vlgmr.msra.gmra.mxu0 %vm7589_vm8, %v1523_v10  ;;  %v1378_v30 = vsel %vm6181_vm2, %v1370_v45, %v1377_v0  ;;  %vm7590_vm9 = vmmov %vm7589_vm8  ;;  %v1386_v57 = vor.u32 %v1384_v55, %v6288_v20  ;;  %v6295_v16 = vor.u32 %v1524_v25, %v1522_v58  ;;  %v1623_v22 = vsel %vm6011_vm10, %v1621_v26, 0  ;;  %v5177_v55 = vld [vmem:[#allocation4 + $0xb8] sm:$0xff]  ;;  %v5167_v10 = vld [vmem:[#allocation4 + $0x80] sm:$0xff] }
 0x1b3   : > { %4618 = vmatmul.msk.bf16.gmra.mxu2 %vm7590_vm9, %v5145_v3  ;;  %v1435_v40 = vunpack.c.l.b16 %v1378_v30  ;;  %v1436_v51 = vunpack.c.h.b16 %v1378_v30  ;;  %v974_v39 = vrot.slane %v973_v28, 4  ;;  %vm1031_vm12 = vcmp.ne.s32.totalorder %v1027_v29, %v5970_v54  ;;  %2009 = vmatpush.bf16.msrb.mxu3 %v5177_v55  ;;  %v5176_v26 = vld [vmem:[#allocation4 + $0xb0] sm:$0xff] }
 0x1b4   : > { %vm1032_vm14 = vcmp.ne.s32.totalorder %v1028_v32, %v5983_v8  ;;  %v7591_v45 = vmov 0  ;;  %v1387_v19 = vsel %vm6181_vm2, %v1379_v17, %v1386_v57  ;;  %v1624_v41 = vsel %vm6023_vm15, %v6200_v61, 0  ;;  %1853 = vmatpush.bf16.msrb.mxu2 %v5167_v10 }
 0x1b5   : > { %vm6303_vm3 = vmpackc.low %vm1032_vm14, %vm1031_vm12  ;;  %vm1439_vm0 = vcmp.ne.s32.totalorder %v1435_v40, %v5970_v54  ;;  %vm1440_vm11 = vcmp.ne.s32.totalorder %v1436_v51, %v5983_v8  ;;  %v979_v52 = vsel %vm5994_vm7, %v974_v39, %v6283_v63  ;;  %v7594_v14 = vmov 0 }
 0x1b6   : > { %v7592_v45 = vsel %vm6303_vm3, 4294967295, %v7591_v45  ;;  %v1054_v12 = vsel %vm6303_vm3, %v868_v13, 0  ;;  %vm6319_vm8 = vmpackc.low %vm1440_vm11, %vm1439_vm0  ;;  %v1442_v6 = vunpack.c.l.b16 %v1387_v19  ;;  %v1443_v35 = vunpack.c.h.b16 %v1387_v19 }
 0x1b7   : > { %7593 = vst [vmem:[#allocation18_spill] sm:$0xff] %v7592_v45  ;;  %v7595_v14 = vsel %vm6319_vm8, 4294967295, %v7594_v14  ;;  %v1034_v36 = vunpack.c.l.b16 %v979_v52  ;;  %v1035_v33 = vunpack.c.h.b16 %v979_v52  ;;  %v1174_v44 = vunpack.c.l.b16 %v1054_v12  ;;  %2010 = vmatpush.bf16.msrb.mxu3 %v5176_v26 }
 0x1b8   : > { %7596 = vst [vmem:[#allocation19_spill] sm:$0xff] %v7595_v14  ;;  %v1474_v61 = vsel %vm6319_vm8, %v6299_v46, 0  ;;  %vm1446_vm7 = vcmp.ne.s32.totalorder %v1442_v6, %v5970_v54  ;;  %vm1447_vm9 = vcmp.ne.s32.totalorder %v1443_v35, %v5983_v8  ;;  %v1625_v37 = vsel %vm6085_vm5, %v6209_v4, 0 }
 0x1b9   : > { %v1501_v49 = vunpack.c.l.b16 %v1474_v61  ;;  %vm1038_vm12 = vcmp.ne.s32.totalorder %v1034_v36, %v5970_v54  ;;  %vm1039_vm14 = vcmp.ne.s32.totalorder %v1035_v33, %v5983_v8  ;;  %vm6335_vm0 = vmpackc.low %vm1447_vm9, %vm1446_vm7  ;;  %v7597_v47 = vmov 0  ;;  %v5146_v36 = vld [vmem:[#allocation2 + $0x1c] sm:$0xff] }
 0x1ba   : > { %v7598_v47 = vsel %vm6335_vm0, 4294967295, %v7597_v47  ;;  %v1626_v58 = vsel %vm6095_vm6, %v6216_v56, 0  ;;  %v1650_v34 = vunpack.c.l.b16 %v1623_v22  ;;  %vm6342_vm11 = vmpackc.low %vm1039_vm14, %vm1038_vm12  ;;  %v7600_v1 = vmov 0 }
 0x1bb   : > { %7599 = vst [vmem:[#allocation20_spill] sm:$0xff] %v7598_v47  ;;  %v7601_v1 = vsel %vm6342_vm11, 4294967295, %v7600_v1  ;;  %v1475_v4 = vsel %vm6335_vm0, %v6323_v48, 0  ;;  %v1651_v0 = vunpack.c.l.b16 %v1624_v41  ;;  %v1652_v17 = vunpack.c.l.b16 %v1625_v37  ;;  %v5175_v41 = vld [vmem:[#allocation4 + $0xa8] sm:$0xff] }
 0x1bc   : > { %7602 = vst [vmem:[#allocation21_spill] sm:$0xff] %v7601_v1  ;;  %v1653_v3 = vunpack.c.l.b16 %v1626_v58  ;;  %v1055_v2 = vsel %vm6342_vm11, %v869_v21, 0  ;;  %v1502_v25 = vunpack.c.l.b16 %v1475_v4  ;;  %v980_v56 = vshrl.u32 %v6280_v43, 16  ;;  %2011 = vmatpush.bf16.msrb.mxu3 %v5175_v41  ;;  %v5190_v41 = vld [vmem:[#allocation4 + $0x118] sm:$0xff] }
 0x1bd   : > { %vm603_vm7 = vcmp.lt.s32.totalorder %v539_v38, 7  ;;  %v1175_v28 = vunpack.c.l.b16 %v1055_v2  ;;  %v1659_v29 = vpack.c.b16 %v1651_v0, %v1650_v34  ;;  %vm6356_vm9 = vcmp.lt.s32.totalorder %v546_v42, 7  ;;  %v870_v0 = vld [vmem:[#allocation2 + $0x20] sm:$0xf]  ;;  %2430 = vmatpush.bf16.msra.mxu2 %v5190_v41 }
 0x1be   : > { %v1660_v32 = vpack.c.b16 %v1653_v3, %v1652_v17  ;;  %vm1323_vm12 = vmpackc.low %vm603_vm7, %vm603_vm7  ;;  %v6360_v13 = vpack.c.b16 %v1502_v25, %v1501_v49  ;;  %v982_v57 = vrot.slane %v980_v56, 4  ;;  %v1388_v38 = vrot.slane %v6288_v20, 4  ;;  %v5174_v2 = vld [vmem:[#allocation4 + $0xa0] sm:$0xff] }
 0x1bf   : > { %vm1324_vm14 = vmpackc.low %vm6356_vm9, %vm6356_vm9  ;;  %v1331_v9 = vsel %vm1323_vm12, 65537, %v5583_v50  ;;  %v1180_v43 = vpack.c.b16 %v1175_v28, %v1174_v44  ;;  %v1665_v40 = vshrl.u32 %v1659_v29, 16  ;;  %v1668_v53 = vshll.u32 %v1659_v29, 16 }
 0x1c0   : > { %v1673_v42 = vshrl.u32 %v1660_v32, 16  ;;  %v1528_v51 = vshll.u32 %v6360_v13, 16  ;;  %v1676_v39 = vshll.u32 %v1660_v32, 16  ;;  %v983_v22 = vor.u32 %v982_v57, %v6283_v63  ;;  %v1298_v57 = vld [vmem:[#allocation2 + $0x1c] sm:$0xf]  ;;  %2012 = vmatpush.bf16.msrb.mxu3 %v5174_v2 }
 0x1c1   : > { %v1332_v19 = vsel %vm1324_vm14, 65537, %v5583_v50  ;;  %v1210_v52 = vshrl.u32 %v1180_v43, 16  ;;  %v1213_v12 = vshll.u32 %v1180_v43, 16  ;;  %v1667_v6 = vrot.slane %v1665_v40, 3  ;;  %v1883_v2 = vld [vmem:[#allocation2 + $0x8] sm:$0xf] }
 0x1c2   : > { %v1670_v35 = vrot.slane %v1668_v53, 4  ;;  %v6370_v33 = vrot.slane %v1528_v51, 1  ;;  %v1675_v20 = vrot.slane %v1673_v42, 3  ;;  %v1678_v44 = vrot.slane %v1676_v39, 4 }
 0x1c3   : > { %v984_v61 = vrot.slane %v983_v22, 4  ;;  %v1212_v21 = vrot.slane %v1210_v52, 3  ;;  %v1215_v49 = vrot.slane %v1213_v12, 4  ;;  %v1390_v58 = vshrl.u32 %v1331_v9, 16 }
 0x1c4   : > { %v1671_v37 = vor.u32 %v1670_v35, %v1667_v6  ;;  %vm7605_vm7 = vcmask 523264   ;;  %vm7606_vm9 = vsmask.f32 7424  ;;  %v6376_v63 = vor.u32 %v1678_v44, %v1675_v20  ;;  %v5186_v6 = vld [vmem:[#allocation4 + $0xf8] sm:$0xff] }
 0x1c5   : > { %4619 = vmatmul.msk.bf16.gmra.mxu2 %vm7605_vm7, %v5146_v36  ;;  %v1531_v50 = vsel %vm7606_vm9, %v6295_v16, %v6370_v33  ;;  %v1041_v34 = vunpack.c.l.b16 %v984_v61  ;;  %v1042_v55 = vunpack.c.h.b16 %v984_v61  ;;  %v6378_v4 = vor.u32 %v1215_v49, %v1212_v21  ;;  %vm7607_vm12 = vmmov %vm7605_vm7  ;;  %v5181_v36 = vld [vmem:[#allocation4 + $0xd0] sm:$0xff]  ;;  %v1299_v61 = vld [vmem:[#allocation2 + $0x20] sm:$0xf]  ;;  %2271 = vmatpush.bf16.msra.mxu1 %v5186_v6 }
 0x1c6   : > { %4657 = vmatmul.msk.bf16.gmra.mxu0 %vm7607_vm12, %v1531_v50  ;;  %v1392_v17 = vrot.slane %v1390_v58, 7  ;;  %v1393_v3 = vshll.u32 %v1331_v9, 16  ;;  %v1399_v10 = vshrl.u32 %v1332_v19, 16  ;;  %vm7608_vm14 = vsmask.f32 4352  ;;  %vm7610_vm8 = vmmov %vm7607_vm12 }
 0x1c7   : > { %v1680_v25 = vsel %vm7608_vm14, %v1671_v37, %v6376_v63  ;;  %vm1045_vm7 = vcmp.ne.s32.totalorder %v1041_v34, %v5970_v54  ;;  %vm1046_vm9 = vcmp.ne.s32.totalorder %v1042_v55, %v5983_v8  ;;  %v1402_v16 = vshll.u32 %v1332_v19, 16  ;;  %vm7609_vm0 = vmmov %vm7608_vm14  ;;  %v5182_v19 = vld [vmem:[#allocation4 + $0xd8] sm:$0xff] }
 0x1c8   : > { %v1217_v56 = vsel %vm7609_vm0, %v6196_v59, %v6378_v4  ;;  %4676 = vmatmul.msk.bf16.vlgmr.msrb.gmra.mxu1 %vm7610_vm8, %v1680_v25  ;;  %vm6389_vm12 = vmpackc.low %vm1046_vm9, %vm1045_vm7  ;;  %v7611_v26 = vmov 0  ;;  %v1395_v28 = vor.u32 %v1393_v3, %v1392_v17  ;;  %v1397_v29 = vrot.slane %v1392_v17, 4  ;;  %2169 = vmatpush.bf16.msrb.mxu0 %v5182_v19  ;;  %v5180_v25 = vld [vmem:[#allocation4 + $0xc8] sm:$0xff]  ;;  %v5179_v19 = vld [vmem:[#allocation4 + $0xc0] sm:$0xff] }
 0x1c9   : > { %v7612_v26 = vsel %vm6389_vm12, 4294967295, %v7611_v26  ;;  %v1401_v32 = vrot.slane %v1399_v10, 7  ;;  %vm7614_vm10 = vmmov %vm7610_vm8  ;;  %v1056_v30 = vsel %vm6389_vm12, %v870_v0, 0  ;;  %vm7615_vm14 = vnez %v7565_v27 }
 0x1ca   : > { %7613 = vst [vmem:[#allocation22_spill] sm:$0xff] %v7612_v26  ;;  %4638 = vmatmul.msk.bf16.gmra.mxu3 %vm7614_vm10, %v1217_v56  ;;  %v1627_v9 = vsel %vm7615_vm14, %v6299_v46, 0  ;;  %vm7616_vm8 = vnez %v7567_v60  ;;  %v1176_v43 = vunpack.c.l.b16 %v1056_v30  ;;  %v1396_v40 = vsel %vm6181_vm2, %v1388_v38, %v1395_v28 }
 0x1cb   : > { %v1628_v59 = vsel %vm7616_vm8, %v6323_v48, 0  ;;  %v1404_v53 = vor.u32 %v1402_v16, %v1401_v32  ;;  %v1654_v42 = vunpack.c.l.b16 %v1627_v9  ;;  %v1449_v51 = vunpack.c.l.b16 %v1396_v40 }
 0x1cc   : > { %v1450_v39 = vunpack.c.h.b16 %v1396_v40  ;;  %v1655_v22 = vunpack.c.l.b16 %v1628_v59  ;;  %v1181_v52 = vpack.c.b16 %v1176_v43, %v1176_v43  ;;  %v1406_v12 = vrot.slane %v1401_v32, 4  ;;  %2170 = vmatpush.bf16.msrb.mxu0 %v5181_v36  ;;  %v5155_v32 = vld [vmem:[#allocation2 + $0x8] sm:$0xff] }
 0x1cd   : > { %v1405_v46 = vsel %vm6181_vm2, %v1397_v29, %v1404_v53  ;;  %v1629_v48 = vsel %vm6303_vm3, %v1298_v57, 0  ;;  %vm1453_vm10 = vcmp.ne.s32.totalorder %v1449_v51, %v5970_v54  ;;  %v7617_v31 = vmov 0  ;;  %v6427_v29 = vld [vmem:[#allocation2 + $0xc] sm:$0xf]  ;;  %v6433_v53 = vld [vmem:[#allocation2 + $0x10] sm:$0xf] }
 0x1ce   : > { %vm1454_vm0 = vcmp.ne.s32.totalorder %v1450_v39, %v5983_v8  ;;  %v1456_v38 = vunpack.c.l.b16 %v1405_v46  ;;  %v1457_v35 = vunpack.c.h.b16 %v1405_v46  ;;  %v1219_v20 = vshrl.u32 %v1181_v52, 16 }
 0x1cf   : > { %v1222_v44 = vshll.u32 %v1181_v52, 16  ;;  %vm6410_vm7 = vmpackc.low %vm1454_vm0, %vm1453_vm10  ;;  %v1661_v21 = vpack.c.b16 %v1655_v22, %v1654_v42  ;;  %v1463_v49 = vunpack.c.l.b16 %v1406_v12  ;;  %v1464_v58 = vunpack.c.h.b16 %v1406_v12  ;;  %v6435_v42 = vld [vmem:[#allocation2 + $0x14] sm:$0xf]  ;;  %v1300_v52 = vld [vmem:[#allocation2 + $0x24] sm:$0x1] }
 0x1d0   : > { %v7618_v31 = vsel %vm6410_vm7, 4294967295, %v7617_v31  ;;  %vm1460_vm2 = vcmp.ne.s32.totalorder %v1456_v38, %v5970_v54  ;;  %vm1461_vm9 = vcmp.ne.s32.totalorder %v1457_v35, %v5983_v8  ;;  %v1476_v37 = vsel %vm6410_vm7, %v1298_v57, 0  ;;  %2171 = vmatpush.bf16.msrb.mxu0 %v5180_v25 }
 0x1d1   : > { %7619 = vst [vmem:[#allocation23_spill] sm:$0xff] %v7618_v31  ;;  %v1221_v50 = vrot.slane %v1219_v20, 3  ;;  %v1224_v34 = vrot.slane %v1222_v44, 4  ;;  %vm6418_vm3 = vmpackc.low %vm1461_vm9, %vm1460_vm2  ;;  %v7620_v55 = vmov 0  ;;  %v1503_v0 = vunpack.c.l.b16 %v1476_v37  ;;  %v5189_v37 = vld [vmem:[#allocation4 + $0x110] sm:$0xff] }
 0x1d2   : > { %v7621_v55 = vsel %vm6418_vm3, 4294967295, %v7620_v55  ;;  %v1682_v17 = vshrl.u32 %v1661_v21, 16  ;;  %v1477_v3 = vsel %vm6418_vm3, %v1299_v61, 0  ;;  %v1685_v10 = vshll.u32 %v1661_v21, 16  ;;  %2431 = vmatpush.bf16.msra.mxu2 %v5189_v37 }
 0x1d3   : > { %7622 = vst [vmem:[#allocation24_spill] sm:$0xff] %v7621_v55  ;;  %v1504_v16 = vunpack.c.l.b16 %v1477_v3  ;;  %vm1467_vm10 = vcmp.ne.s32.totalorder %v1463_v49, %v5970_v54  ;;  %v1630_v28 = vsel %vm6342_vm11, %v1299_v61, 0  ;;  %vm1468_vm0 = vcmp.ne.s32.totalorder %v1464_v58, %v5983_v8 }
 0x1d4   : > { %v1684_v56 = vrot.slane %v1682_v17, 3  ;;  %v1687_v30 = vrot.slane %v1685_v10, 4  ;;  %v1656_v57 = vunpack.c.l.b16 %v1629_v48  ;;  %v1657_v9 = vunpack.c.l.b16 %v1630_v28  ;;  %vm6451_vm9 = vmpackc.low %vm1468_vm0, %vm1467_vm10  ;;  %2172 = vmatpush.bf16.msrb.mxu0 %v5179_v19 }
 0x1d5   : > { %v1225_v59 = vor.u32 %v1224_v34, %v1221_v50  ;;  %v6430_v43 = vpack.c.b16 %v1504_v16, %v1503_v0  ;;  %v1532_v40 = vshrl.u32 %v6360_v13, 16  ;;  %v1892_v51 = vsel %vm6202_vm4, %v1883_v2, 0  ;;  %v1622_v34 = vld [vmem:[#allocation2 + $0x24] sm:$0xf]  ;;  %v5184_v0 = vld [vmem:[#allocation4 + $0xe8] sm:$0xff] }
 0x1d6   : > { %vm7623_vm2 = vcmask 523264   ;;  %v6440_v39 = vor.u32 %v1687_v30, %v1684_v56  ;;  %v1893_v22 = vsel %vm6218_vm13, %v6427_v29, 0  ;;  %v7624_v46 = vmov 0  ;;  %v2042_v56 = vld [vmem:[#allocation2 + $0x8] sm:$0x8] }
 0x1d7   : > { %4712 = vmatmul.msk.bf16.vlgmr.msrb.gmra.mxu2 %vm7623_vm2, %v5155_v32  ;;  %v1534_v41 = vor.u32 %v1532_v40, %v6370_v33  ;;  %v1536_v13 = vshll.u32 %v6430_v43, 16  ;;  %v7625_v46 = vsel %vm6451_vm9, 4294967295, %v7624_v46  ;;  %v1662_v12 = vpack.c.b16 %v1657_v9, %v1656_v57  ;;  %v5183_v32 = vld [vmem:[#allocation4 + $0xe0] sm:$0xff]  ;;  %v5156_v40 = vld [vmem:[#allocation2 + $0x10] sm:$0xff] }
 0x1d8   : > { %7626 = vst [vmem:[#allocation25_spill] sm:$0xff] %v7625_v46  ;;  %vm7627_vm2 = vsmask.f32 4352  ;;  %v1894_v33 = vsel %vm6225_vm1, %v6433_v53, 0  ;;  %vm7628_vm11 = vnez %v7583_v24  ;;  %v1919_v54 = vunpack.c.l.b16 %v1892_v51  ;;  %v2483_v46 = vld [vmem:[%s7446_s6 + $0x40] sm:$0xff] }
 0x1d9   : > { %v1689_v48 = vsel %vm7627_vm2, %v6376_v63, %v6440_v39  ;;  %v1895_v6 = vsel %vm7628_vm11, %v6435_v42, 0  ;;  %vm7629_vm13 = vmmov %vm7627_vm2  ;;  %v1538_v38 = vrot.slane %v1536_v13, 1  ;;  %vm7630_vm10 = vcmask 523264  }
 0x1da   : > { %v1226_v8 = vsel %vm7629_vm13, %v6378_v4, %v1225_v59  ;;  %4677 = vmatmul.msk.bf16.gmra.mxu1 %vm7630_vm10, %v1689_v48  ;;  %v1920_v35 = vunpack.c.l.b16 %v1893_v22  ;;  %vm7631_vm0 = vmmov %vm7630_vm10  ;;  %v1478_v63 = vsel %vm6451_vm9, %v1300_v52, 0  ;;  %vm7632_vm2 = vsmask.f32 7424  ;;  %v5185_v4 = vld [vmem:[#allocation4 + $0xf0] sm:$0xff] }
 0x1db   : > { %4639 = vmatmul.msk.bf16.gmra.mxu3 %vm7631_vm0, %v1226_v8  ;;  %v1539_v36 = vsel %vm7632_vm2, %v1534_v41, %v1538_v38  ;;  %v1921_v20 = vunpack.c.l.b16 %v1894_v33  ;;  %v1922_v44 = vunpack.c.l.b16 %v1895_v6  ;;  %vm7633_vm11 = vmmov %vm7631_vm0  ;;  %v1691_v21 = vshrl.u32 %v1662_v12, 16  ;;  %2272 = vmatpush.bf16.msra.mxu1 %v5185_v4  ;;  %v1887_v41 = vld [vmem:[#allocation2 + $0x18] sm:$0xf] }
 0x1dc   : > { %v1928_v61 = vpack.c.b16 %v1920_v35, %v1919_v54  ;;  %4658 = vmatmul.msk.bf16.gmra.mxu0 %vm7633_vm11, %v1539_v36  ;;  %v1694_v49 = vshll.u32 %v1662_v12, 16  ;;  %v1505_v58 = vunpack.c.l.b16 %v1478_v63  ;;  %v1631_v16 = vsel %vm6389_vm12, %v1622_v34, 0  ;;  %vm7635_vm11 = vmmov %vm7631_vm0 }
 0x1dd   : > { %v6472_v17 = vpack.c.b16 %v1922_v44, %v1921_v20  ;;  %v1693_v3 = vrot.slane %v1691_v21, 3  ;;  %v2045_v28 = vsel %vm6023_vm15, %v6427_v29, 0  ;;  %v2046_v9 = vsel %vm6085_vm5, %v6433_v53, 0  ;;  %v1888_v29 = vld [vmem:[#allocation2 + $0x1c] sm:$0xf] }
 0x1de   : > { %v1936_v50 = vshll.u32 %v1928_v61, 16  ;;  %v1696_v10 = vrot.slane %v1694_v49, 4  ;;  %v1510_v2 = vpack.c.b16 %v1505_v58, %v1505_v58  ;;  %v1934_v30 = vshrl.u32 %v1928_v61, 16  ;;  %v5188_v58 = vld [vmem:[#allocation4 + $0x108] sm:$0xff] }
 0x1df   : > { %2273 = vmatpush.bf16.msra.mxu1 %v5184_v0  ;;  %v1941_v57 = vshll.u32 %v6472_v17, 16  ;;  %v2047_v59 = vsel %vm6095_vm6, %v6435_v42, 0  ;;  %v1540_v51 = vshrl.u32 %v6430_v43, 16  ;;  %v1658_v19 = vunpack.c.l.b16 %v1631_v16  ;;  %vm7639_vm6 = vmmov %vm7635_vm11  ;;  %2432 = vmatpush.bf16.msra.mxu2 %v5188_v58 }
 0x1e0   : > { %v1938_v25 = vrot.slane %v1936_v50, 1  ;;  %v1697_v22 = vor.u32 %v1696_v10, %v1693_v3  ;;  %vm7634_vm13 = vnez %v7541_v5  ;;  %v1544_v52 = vshll.u32 %v1510_v2, 16  ;;  %vm7641_vm5 = vmmov %vm7639_vm6 }
 0x1e1   : > { %v2044_v13 = vsel %vm7634_vm13, %v2042_v56, 0  ;;  %v1542_v48 = vor.u32 %v1540_v51, %v1538_v38  ;;  %v2072_v53 = vunpack.c.l.b16 %v2045_v28  ;;  %v2073_v33 = vunpack.c.l.b16 %v2046_v9  ;;  %vm7643_vm13 = vmmov %vm7641_vm5  ;;  %v1889_v56 = vld [vmem:[#allocation2 + $0x20] sm:$0xf]  ;;  %v1890_v28 = vld [vmem:[#allocation2 + $0x24] sm:$0xf] }
 0x1e2   : > { %v1939_v12 = vor.u32 %v1938_v25, %v1934_v30  ;;  %v2074_v6 = vunpack.c.l.b16 %v2047_v59  ;;  %v1943_v42 = vrot.slane %v1941_v57, 1  ;;  %vm7636_vm10 = vnez %v7595_v14  ;;  %v5157_v59 = vld [vmem:[#allocation2 + $0x18] sm:$0xff] }
 0x1e3   : > { %2274 = vmatpush.bf16.msra.mxu1 %v5183_v32  ;;  %v1896_v43 = vsel %vm7636_vm10, %v1887_v41, 0  ;;  %vm7637_vm0 = vnez %v7598_v47  ;;  %v2071_v8 = vunpack.c.l.b16 %v2044_v13  ;;  %vm7638_vm2 = vsmask.f32 4352 }
 0x1e4   : > { %v1897_v54 = vsel %vm7637_vm0, %v1888_v29, 0  ;;  %v1698_v35 = vsel %vm7638_vm2, %v6440_v39, %v1697_v22  ;;  %v1663_v63 = vpack.c.b16 %v1658_v19, %v1658_v19  ;;  %v1546_v36 = vrot.slane %v1544_v52, 1 }
 0x1e5   : > { %v1923_v20 = vunpack.c.l.b16 %v1896_v43  ;;  %v1924_v44 = vunpack.c.l.b16 %v1897_v54  ;;  %v2080_v21 = vpack.c.b16 %v2072_v53, %v2071_v8  ;;  %v2081_v49 = vpack.c.b16 %v2074_v6, %v2073_v33  ;;  %v2304_v54 = vld [vmem:[#allocation2 + $0xc] sm:$0xf]  ;;  %v2305_v8 = vld [vmem:[#allocation2 + $0x10] sm:$0xf] }
 0x1e6   : > { %v1700_v4 = vshrl.u32 %v1663_v63, 16  ;;  %v1703_v37 = vshll.u32 %v1663_v63, 16  ;;  %v1945_v25 = vshrl.u32 %v6472_v17, 16  ;;  %v2048_v51 = vsel %vm7615_vm14, %v1887_v41, 0 }
 0x1e7   : > { %4713 = vmatmul.msk.bf16.gmra.mxu2 %vm7635_vm11, %v5156_v40  ;;  %vm7640_vm11 = vsmask.f32 7424  ;;  %v6501_v39 = vpack.c.b16 %v1924_v44, %v1923_v20  ;;  %v2086_v50 = vshrl.u32 %v2080_v21, 16  ;;  %v2089_v34 = vshll.u32 %v2080_v21, 16  ;;  %v2306_v21 = vld [vmem:[#allocation2 + $0x14] sm:$0xf] }
 0x1e8   : > { %v1944_v38 = vsel %vm7640_vm11, %v1939_v12, %v1943_v42  ;;  %vm7642_vm15 = vmmov %vm7640_vm11  ;;  %v2094_v0 = vshrl.u32 %v2081_v49, 16  ;;  %v2097_v3 = vshll.u32 %v2081_v49, 16  ;;  %v1702_v10 = vrot.slane %v1700_v4, 3  ;;  %v2307_v49 = vld [vmem:[#allocation2 + $0x18] sm:$0xf] }
 0x1e9   : > { %v1547_v61 = vsel %vm7642_vm15, %v1542_v48, %v1546_v36  ;;  %v1705_v2 = vrot.slane %v1703_v37, 4  ;;  %v1949_v16 = vshll.u32 %v6501_v39, 16  ;;  %v2088_v32 = vrot.slane %v2086_v50, 3  ;;  %vm7644_vm15 = vmmov %vm7641_vm5  ;;  %v5187_v36 = vld [vmem:[#allocation4 + $0x100] sm:$0xff] }
 0x1ea   : > { %4678 = vmatmul.msk.bf16.gmra.mxu1 %vm7639_vm6, %v1698_v35  ;;  %v2091_v30 = vrot.slane %v2089_v34, 4  ;;  %v2096_v57 = vrot.slane %v2094_v0, 3  ;;  %v2099_v9 = vrot.slane %v2097_v3, 4  ;;  %v2049_v19 = vsel %vm7616_vm8, %v1888_v29, 0  ;;  %2433 = vmatpush.bf16.msra.mxu2 %v5187_v36  ;;  %v1891_v34 = vld [vmem:[#allocation2 + $0x28] sm:$0x1] }
 0x1eb   : > { %4732 = vmatmul.msk.bf16.vlgmr.msrb.gmra.mxu3 %vm7641_vm5, %v1944_v38  ;;  %v1706_v40 = vor.u32 %v1705_v2, %v1702_v10  ;;  %v1947_v13 = vor.u32 %v1945_v25, %v1943_v42  ;;  %v1951_v17 = vrot.slane %v1949_v16, 1  ;;  %v1898_v52 = vsel %vm6410_vm7, %v1889_v56, 0  ;;  %vm7645_vm5 = vmmov %vm7638_vm2  ;;  %v5162_v10 = vld [vmem:[#allocation2 + $0x20] sm:$0xff] }
 0x1ec   : > { %4659 = vmatmul.msk.bf16.gmra.mxu0 %vm7643_vm13, %v1547_v61  ;;  %v1899_v12 = vsel %vm6418_vm3, %v1890_v28, 0  ;;  %v2092_v48 = vor.u32 %v2091_v30, %v2088_v32  ;;  %v2100_v53 = vor.u32 %v2099_v9, %v2096_v57  ;;  %v2075_v33 = vunpack.c.l.b16 %v2048_v51  ;;  %vm7646_vm13 = vmmov %vm7640_vm11 }
 0x1ed   : > { %v2076_v6 = vunpack.c.l.b16 %v2049_v19  ;;  %v1707_v43 = vsel %vm7645_vm5, %v1697_v22, %v1706_v40  ;;  %v1952_v41 = vsel %vm7646_vm13, %v1947_v13, %v1951_v17  ;;  %vm7647_vm2 = vmmov %vm7639_vm6  ;;  %v1925_v29 = vunpack.c.l.b16 %v1898_v52  ;;  %v5171_v19 = vld [vmem:[#allocation2 + $0xc] sm:$0xff] }
 0x1ee   : > { %v1926_v42 = vunpack.c.l.b16 %v1899_v12  ;;  %vm7648_vm11 = vmmov %vm7645_vm5  ;;  %v2313_v38 = vsel %vm6202_vm4, %v2304_v54, 0  ;;  %vm7650_vm5 = vnez %v7579_v7  ;;  %v1953_v58 = vshrl.u32 %v6501_v39, 16 }
 0x1ef   : > { %v2101_v35 = vsel %vm7648_vm11, %v2092_v48, %v2100_v53  ;;  %v2082_v63 = vpack.c.b16 %v2076_v6, %v2075_v33  ;;  %v2314_v22 = vsel %vm7650_vm5, %v2305_v8, 0  ;;  %v2340_v4 = vunpack.c.l.b16 %v2313_v38  ;;  %v2043_v38 = vld [vmem:[#allocation2 + $0x28] sm:$0xf] }
 0x1f0   : > { %v1931_v20 = vpack.c.b16 %v1926_v42, %v1925_v29  ;;  %v2341_v37 = vunpack.c.l.b16 %v2314_v22  ;;  %v2315_v2 = vsel %vm6225_vm1, %v2306_v21, 0  ;;  %vm7652_vm13 = vnez %v7592_v45 }
 0x1f1   : > { %v2103_v44 = vshrl.u32 %v2082_v63, 16  ;;  %v2106_v61 = vshll.u32 %v2082_v63, 16  ;;  %v2050_v16 = vsel %vm7652_vm13, %v1889_v56, 0  ;;  %v1955_v57 = vor.u32 %v1953_v58, %v1951_v17  ;;  %v2309_v63 = vld [vmem:[#allocation2 + $0x20] sm:$0xf] }
 0x1f2   : > { %v1957_v50 = vshll.u32 %v1931_v20, 16  ;;  %v2349_v30 = vpack.c.b16 %v2341_v37, %v2340_v4  ;;  %v1900_v39 = vsel %vm6451_vm9, %v1891_v34, 0  ;;  %v2342_v9 = vunpack.c.l.b16 %v2315_v2 }
 0x1f3   : > { %v2105_v0 = vrot.slane %v2103_v44, 3  ;;  %v2108_v3 = vrot.slane %v2106_v61, 4  ;;  %v2077_v13 = vunpack.c.l.b16 %v2050_v16  ;;  %v1961_v22 = vshrl.u32 %v1931_v20, 16 }
 0x1f4   : > { %v1959_v40 = vrot.slane %v1957_v50, 1  ;;  %v2357_v12 = vshll.u32 %v2349_v30, 16  ;;  %v2052_v4 = vsel %vm6389_vm12, %v2043_v38, 0  ;;  %vm7665_vm12 = vsmask.f32 4352 }
 0x1f5   : > { %v2109_v51 = vor.u32 %v2108_v3, %v2105_v0  ;;  %v5172_v3 = vld [vmem:[#allocation2 + $0x14] sm:$0xff]  ;;  %v2312_v38 = vld [vmem:[#allocation2 + $0x2c] sm:$0x1] }
 0x1f6   : > { %v2359_v6 = vrot.slane %v2357_v12, 1  ;;  %v1963_v58 = vor.u32 %v1961_v22, %v1959_v40  ;;  %v2310_v12 = vld [vmem:[#allocation2 + $0x24] sm:$0xf] }
 0x1f7   : > { %4714 = vmatmul.msk.bf16.gmra.mxu2 %vm7644_vm15, %v5157_v59  ;;  %vm7649_vm15 = vmmov %vm7647_vm2 }
 0x1f8   : > { %vm7654_vm11 = vmmov %vm7649_vm15 }
 0x1f9   : > { %vm7656_vm13 = vmmov %vm7654_vm11 }
 0x1fa   : > { %4679 = vmatmul.msk.bf16.gmra.mxu1 %vm7639_vm6, %v1707_v43  ;;  %vm7651_vm6 = vnez %v7583_v24 }
 0x1fb   : > { %4733 = vmatmul.msk.bf16.gmra.mxu3 %vm7647_vm2, %v1952_v41  ;;  %v2316_v25 = vsel %vm7651_vm6, %v2307_v49, 0  ;;  %vm7653_vm2 = vnez %v7601_v1  ;;  %v2355_v41 = vshrl.u32 %v2349_v30, 16  ;;  %v2318_v49 = vsel %vm7637_vm0, %v2309_v63, 0 }
 0x1fc   : > { %4752 = vmatmul.msk.bf16.vlgmr.msrb.gmra.mxu0 %vm7649_vm15, %v2101_v35  ;;  %v2051_v32 = vsel %vm7653_vm2, %v1890_v28, 0  ;;  %v2343_v59 = vunpack.c.l.b16 %v2316_v25  ;;  %vm7655_vm15 = vsmask.f32 7424  ;;  %v1927_v28 = vunpack.c.l.b16 %v1900_v39  ;;  %vm7657_vm2 = vmmov %vm7654_vm11  ;;  %v2308_v35 = vld [vmem:[#allocation2 + $0x1c] sm:$0xf] }
 0x1fd   : > { %v2078_v52 = vunpack.c.l.b16 %v2051_v32  ;;  %v1960_v56 = vsel %vm7655_vm15, %v1955_v57, %v1959_v40  ;;  %vm7659_vm8 = vmmov %vm7657_vm2  ;;  %v2360_v8 = vor.u32 %v2359_v6, %v2355_v41  ;;  %v2345_v20 = vunpack.c.l.b16 %v2318_v49 }
 0x1fe   : > { %v2350_v17 = vpack.c.b16 %v2343_v59, %v2342_v9  ;;  %v1932_v43 = vpack.c.b16 %v1927_v28, %v1927_v28 }
 0x1ff   : > { %v2083_v33 = vpack.c.b16 %v2078_v52, %v2077_v13 }
 0x200   : > { %v2362_v29 = vshll.u32 %v2350_v17, 16  ;;  %v1965_v36 = vshll.u32 %v1932_v43, 16  ;;  %v2366_v39 = vshrl.u32 %v2350_v17, 16 }
 0x201   : > { %v2112_v42 = vshrl.u32 %v2083_v33, 16  ;;  %v2115_v54 = vshll.u32 %v2083_v33, 16 }
 0x202   : > { %v2364_v44 = vrot.slane %v2362_v29, 1  ;;  %v1967_v50 = vrot.slane %v1965_v36, 1 }
 0x203   : > { %v2114_v61 = vrot.slane %v2112_v42, 3  ;;  %v2117_v21 = vrot.slane %v2115_v54, 4  ;;  %v5173_v42 = vld [vmem:[#allocation2 + $0x1c] sm:$0xff] }
 0x204   : > { %v2368_v52 = vor.u32 %v2366_v39, %v2364_v44 }
 0x205   : > { %v2118_v0 = vor.u32 %v2117_v21, %v2114_v61  ;;  %v2321_v61 = vsel %vm6451_vm9, %v2312_v38, 0 }
 0x207   : > { %4715 = vmatmul.msk.bf16.gmra.mxu2 %vm7654_vm11, %v5162_v10  ;;  %vm7658_vm11 = vsmask.f32 4352  ;;  %v2079_v10 = vunpack.c.l.b16 %v2052_v4  ;;  %v2119_v32 = vsel %vm7665_vm12, %v2109_v51, %v2118_v0  ;;  %v2348_v4 = vunpack.c.l.b16 %v2321_v61 }
 0x208   : > { %v2110_v48 = vsel %vm7658_vm11, %v2100_v53, %v2109_v51  ;;  %v2317_v53 = vsel %vm7636_vm10, %v2308_v35, 0  ;;  %v2319_v51 = vsel %vm6410_vm7, %v2310_v12, 0 }
 0x209   : > { %v2344_v34 = vunpack.c.l.b16 %v2317_v53  ;;  %v2084_v30 = vpack.c.b16 %v2079_v10, %v2079_v10  ;;  %v2346_v43 = vunpack.c.l.b16 %v2319_v51 }
 0x20a   : > { %4788 = vmatmul.msk.bf16.vlgmr.msra.gmra.mxu1 %vm7656_vm13, %v5171_v19  ;;  %vm7661_vm13 = vmmov %vm7657_vm2 }
 0x20b   : > { %4734 = vmatmul.msk.bf16.gmra.mxu3 %vm7657_vm2, %v1960_v56  ;;  %vm7664_vm11 = vmmov %vm7661_vm13  ;;  %v2351_v16 = vpack.c.b16 %v2345_v20, %v2344_v34  ;;  %v2121_v59 = vshrl.u32 %v2084_v30, 16  ;;  %v2124_v40 = vshll.u32 %v2084_v30, 16  ;;  %v2311_v56 = vld [vmem:[#allocation2 + $0x28] sm:$0xf] }
 0x20c   : > { %4753 = vmatmul.msk.bf16.gmra.mxu0 %vm7659_vm8, %v2110_v48  ;;  %vm7660_vm8 = vmmov %vm7655_vm15  ;;  %v2320_v6 = vsel %vm6418_vm3, %v2311_v56, 0 }
 0x20d   : > { %v2365_v37 = vsel %vm7660_vm8, %v2360_v8, %v2364_v44  ;;  %vm7662_vm2 = vmmov %vm7660_vm8  ;;  %v2370_v9 = vshll.u32 %v2351_v16, 16  ;;  %v2123_v48 = vrot.slane %v2121_v59, 3  ;;  %v2126_v33 = vrot.slane %v2124_v40, 4 }
 0x20e   : > { %v1968_v25 = vsel %vm7662_vm2, %v1963_v58, %v1967_v50  ;;  %vm7663_vm15 = vmmov %vm7661_vm13  ;;  %v2347_v41 = vunpack.c.l.b16 %v2320_v6  ;;  %v2374_v63 = vshrl.u32 %v2351_v16, 16  ;;  %v2353_v50 = vpack.c.b16 %v2348_v4, %v2348_v4 }
 0x20f   : > { %vm7666_vm8 = vmmov %vm7664_vm11  ;;  %v2372_v28 = vrot.slane %v2370_v9, 1  ;;  %v2127_v29 = vor.u32 %v2126_v33, %v2123_v48 }
 0x210   : > { %vm7667_vm12 = vmmov %vm7662_vm2  ;;  %v2352_v8 = vpack.c.b16 %v2347_v41, %v2346_v43 }
 0x211   : > { %v1139_v2 = vpop.f32.mrf.mxu2  ;;  %v2373_v17 = vsel %vm7667_vm12, %v2368_v52, %v2372_v28  ;;  %vm7669_vm2 = vmmov %vm7666_vm8  ;;  %v2376_v44 = vor.u32 %v2374_v63, %v2372_v28 }
 0x212   : > { %v2378_v36 = vshll.u32 %v2352_v8, 16 }
 0x214   : > { %v2380_v53 = vrot.slane %v2378_v36, 1 }
 0x217   : > { %4808 = vmatmul.msk.bf16.vlgmr.msra.gmra.mxu2 %vm7661_vm13, %v2365_v37  ;;  %vm7668_vm13 = vmmov %vm7666_vm8  ;;  %v5178_v37 = vld [vmem:[#allocation2 + $0x24] sm:$0xff] }
 0x219   : > { %v1272_v57 = vpop.f32.mrf.mxu1  ;;  %v6554_v13 = vpop.f32.mrf.mxu2 }
 0x21a   : > { %4789 = vmatmul.msk.bf16.gmra.mxu1 %vm7663_vm15, %v5172_v3  ;;  %v1273_v19 = vadd.f32 %v1272_v57, %v1139_v2  ;;  %vm7670_vm15 = vsmask.f32 4352  ;;  %v2382_v3 = vshrl.u32 %v2352_v8, 16 }
 0x21b   : > { %4735 = vmatmul.msk.bf16.gmra.mxu3 %vm7664_vm11, %v1968_v25  ;;  %v2128_v35 = vsel %vm7670_vm15, %v2118_v0, %v2127_v29  ;;  %vm7671_vm11 = vmmov %vm7669_vm2  ;;  %v2386_v0 = vshll.u32 %v2353_v50, 16 }
 0x21c   : > { %4754 = vmatmul.msk.bf16.gmra.mxu0 %vm7666_vm8, %v2119_v32  ;;  %vm7672_vm8 = vmmov %vm7667_vm12  ;;  %v2384_v25 = vor.u32 %v2382_v3, %v2380_v53 }
 0x21d   : > { %v2381_v49 = vsel %vm7672_vm8, %v2376_v44, %v2380_v53  ;;  %vm7673_vm12 = vmmov %vm7669_vm2  ;;  %v2388_v16 = vrot.slane %v2386_v0, 1 }
 0x21e   : > { %vm7676_vm15 = vmmov %vm7671_vm11 }
 0x221   : > { %v1144_v54 = vpop.f32.mrf.mxu2  ;;  %v6572_v20 = vpop.f32.mrf.mxu1 }
 0x226   : > { %v1277_v10 = vpop.f32.mrf.mxu3 }
 0x227   : > { %4809 = vmatmul.msk.bf16.gmra.mxu2 %vm7668_vm13, %v2373_v17  ;;  %vm7674_vm13 = vmmov %vm7669_vm2  ;;  %v1278_v33 = vadd.f32 %v1277_v10, %v1144_v54 }
 0x229   : > { %v1146_v22 = vpop.f32.mrf.mxu2 }
 0x22a   : > { %4790 = vmatmul.msk.bf16.gmra.mxu1 %vm7669_vm2, %v5173_v42  ;;  %vm7675_vm2 = vmmov %vm7672_vm8 }
 0x22b   : > { %v2389_v30 = vsel %vm7675_vm2, %v2384_v25, %v2388_v16 }
 0x22c   : > { %4755 = vmatmul.msk.bf16.gmra.mxu0 %vm7671_vm11, %v2128_v35  ;;  %vm7677_vm11 = vcmask 261120  }
 0x22d   : > { %vm7678_vm8 = vmmov %vm7677_vm11 }
 0x22e   : > { %v1279_v40 = vpop.f32.mrf.mxu3  ;;  %vm7681_vm2 = vmmov %vm7678_vm8 }
 0x22f   : > { %v1593_v21 = vpop.f32.mrf.mxu0  ;;  %v1280_v52 = vadd.f32 %v1279_v40, %v1146_v22 }
 0x230   : > { %v1613_v57 = vadd.f32 %v1593_v21, %v1273_v19 }
 0x236   : > { %v1149_v58 = vpop.f32.mrf.mxu2 }
 0x237   : > { %4810 = vmatmul.msk.bf16.gmra.mxu2 %vm7673_vm12, %v2381_v49  ;;  %v6570_v34 = vpop.f32.mrf.mxu0  ;;  %vm7679_vm12 = vmmov %vm7678_vm8 }
 0x23a   : > { %4791 = vmatmul.msk.bf16.gmra.mxu1 %vm7674_vm13, %v5178_v37  ;;  %vm7680_vm13 = vmmov %vm7678_vm8 }
 0x23e   : > { %v1151_v2 = vpop.f32.mrf.mxu2 }
 0x243   : > { %v1598_v32 = vpop.f32.mrf.mxu0 }
 0x244   : > { %v1615_v51 = vadd.f32 %v1598_v32, %v1278_v33 }
 0x245   : > { %v1753_v39 = vpop.f32.mrf.mxu1 }
 0x246   : > { %v1773_v9 = vadd.f32 %v1753_v39, %v1613_v57 }
 0x247   : > { %4811 = vmatmul.msk.bf16.gmra.mxu2 %vm7676_vm15, %v2389_v30  ;;  %vm7682_vm15 = vmmov %vm7681_vm2 }
 0x248   : > { %v6576_v59 = vpop.f32.mrf.mxu2 }
 0x24b   : > { %v1600_v12 = vpop.f32.mrf.mxu0 }
 0x24c   : > { %v6578_v56 = vadd.f32 %v1600_v12, %v1280_v52 }
 0x24d   : > { %v6580_v28 = vpop.f32.mrf.mxu1  ;;  %v1282_v6 = vpop.f32.mrf.mxu3 }
 0x24e   : > { %v1283_v22 = vadd.f32 %v1282_v6, %v1149_v58 }
 0x250   : > { %v6582_v48 = vpop.f32.mrf.mxu2 }
 0x255   : > { %v1284_v8 = vpop.f32.mrf.mxu3 }
 0x256   : > { %v1285_v35 = vadd.f32 %v1284_v8, %v1151_v2 }
 0x257   : > { %v1758_v17 = vpop.f32.mrf.mxu1 }
 0x258   : > { %v1775_v19 = vadd.f32 %v1758_v17, %v1615_v51 }
 0x259   : > { %v1603_v41 = vpop.f32.mrf.mxu0 }
 0x25a   : > { %v1855_v43 = vpop.f32.mrf.mxu2  ;;  %v1617_v44 = vadd.f32 %v1603_v41, %v1283_v22  ;;  %v2487_v22 = vld [vmem:[%s7446_s6 + $0x60] sm:$0xff] }
 0x25b   : > { %v6584_v29 = vadd.f32 %v1855_v43, %v1773_v9  ;;  %v2489_v43 = vld [vmem:[%s7446_s6 + $0x70] sm:$0xff] }
 0x25e   : > { %v6594_v49 = vpop.f32.mrf.mxu3 }
 0x25f   : > { %v6586_v42 = vpop.f32.mrf.mxu1 }
 0x261   : > { %v1605_v36 = vpop.f32.mrf.mxu0 }
 0x262   : > { %v6588_v63 = vpop.f32.mrf.mxu2  ;;  %v6590_v38 = vadd.f32 %v1605_v36, %v1285_v35  ;;  %v2488_v35 = vld [vmem:[%s7446_s6 + $0x68] sm:$0xff] }
 0x266   : > { %v6604_v3 = vpop.f32.mrf.mxu3 }
 0x267   : > { %v1763_v54 = vpop.f32.mrf.mxu1 }
 0x268   : > { %v1777_v61 = vadd.f32 %v1763_v54, %v1617_v44  ;;  %v2486_v54 = vld [vmem:[%s7446_s6 + $0x58] sm:$0xff] }
 0x269   : > { %v6598_v37 = vpop.f32.mrf.mxu0 }
 0x26a   : > { %v1860_v21 = vpop.f32.mrf.mxu2 }
 0x26b   : > { %v6592_v53 = vadd.f32 %v1860_v21, %v1775_v19  ;;  %v2490_v19 = vld [vmem:[%s7446_s6 + $0x78] sm:$0xff] }
 0x26c   : > { %2526 = vmatpush.msra.mxu3 %v2490_v19  ;;  %4812 = vmatpush.xpose.msk.msra.mxu0 %vm7677_vm11, %v2490_v19  ;;  %v1275_v19 = vadd.f32 %v6572_v20, %v6554_v13  ;;  %v6677_v13 = vld [vmem:[%s7446_s6 + $0x30] sm:$0xff]  ;;  %vm7683_vm11 = vmmov %vm7681_vm2 }
 0x26e   : > { %v2014_v32 = vpop.f32.mrf.mxu3  ;;  %2527 = vmatpush.msra.mxu3 %v2489_v43  ;;  %v1614_v55 = vadd.f32 %v6570_v34, %v1275_v19 }
 0x26f   : > { %v6596_v4 = vpop.f32.mrf.mxu1  ;;  %v2034_v14 = vadd.f32 %v2014_v32, %v6584_v29  ;;  %v6706_v29 = vld [vmem:[%s7446_s6 + $0x20] sm:$0xff] }
 0x270   : > { %2528 = vmatpush.msra.mxu3 %v2488_v35  ;;  %4813 = vmatpush.xpose.msk.msra.mxu0 %vm7678_vm8, %v2489_v43  ;;  %v1774_v20 = vadd.f32 %v6580_v28, %v1614_v55  ;;  %v1776_v55 = vadd.f32 %v6586_v42, %v6578_v56  ;;  %v1778_v56 = vadd.f32 %v6596_v4, %v6590_v38  ;;  %vm7684_vm8 = vmmov %vm7681_vm2 }
 0x271   : > { %v6608_v2 = vpop.f32.mrf.mxu0 }
 0x272   : > { %v6600_v50 = vpop.f32.mrf.mxu2  ;;  %2529 = vmatpush.msra.mxu3 %v2487_v22  ;;  %v1876_v34 = vadd.f32 %v6588_v63, %v1774_v20 }
 0x273   : > { %v1878_v47 = vadd.f32 %v6600_v50, %v1776_v55  ;;  %v6723_v50 = vld [vmem:[%s7446_s6 + $0x10] sm:$0xff] }
 0x274   : > { %2530 = vmatpush.msra.mxu3 %v2486_v54  ;;  %4814 = vmatpush.xpose.msk.msra.mxu0 %vm7679_vm12, %v2488_v35  ;;  %v2482_v35 = vld [vmem:[%s7446_s6 + $0x38] sm:$0xff]  ;;  %vm7685_vm12 = vmmov %vm7681_vm2 }
 0x276   : > { %v2016_v9 = vpop.f32.mrf.mxu3 }
 0x277   : > { %v6602_v0 = vpop.f32.mrf.mxu1  ;;  %v2035_v28 = vadd.f32 %v2016_v9, %v1876_v34 }
 0x278   : > { %4815 = vmatpush.xpose.msk.msra.mxu0 %vm7680_vm13, %v2487_v22  ;;  %v6684_v22 = vld [vmem:[%s7446_s6 + $0x28] sm:$0xff]  ;;  %vm7686_vm13 = vmmov %vm7681_vm2 }
 0x279   : > { %v6614_v30 = vpop.f32.mrf.mxu0 }
 0x27a   : > { %v1865_v10 = vpop.f32.mrf.mxu2 }
 0x27b   : > { %v6606_v58 = vadd.f32 %v1865_v10, %v1777_v61  ;;  %v2485_v61 = vld [vmem:[%s7446_s6 + $0x50] sm:$0xff]  ;;  %v2484_v10 = vld [vmem:[%s7446_s6 + $0x48] sm:$0xff] }
 0x27c   : > { %2531 = vmatpush.msra.mxu3 %v2485_v61  ;;  %4816 = vmatpush.xpose.msk.msra.mxu0 %vm7681_vm2, %v2486_v54  ;;  %v1288_v54 = vadd.f32 %v6594_v49, %v6576_v59  ;;  %v2194_v49 = vadd.f32 %v6614_v30, %v2034_v14 }
 0x27e   : > { %v2019_v33 = vpop.f32.mrf.mxu3  ;;  %2532 = vmatpush.msra.mxu3 %v2484_v10 }
 0x27f   : > { %v6610_v25 = vpop.f32.mrf.mxu1  ;;  %v2036_v63 = vadd.f32 %v2019_v33, %v6592_v53  ;;  %v6711_v53 = vld [vmem:[%s7446_s6 + $0x18] sm:$0xff] }
 0x280   : > { %2533 = vmatpush.msra.mxu3 %v2483_v46  ;;  %4817 = vmatpush.xpose.msk.msra.mxu0 %vm7682_vm15, %v2485_v61  ;;  %v1619_v61 = vadd.f32 %v6598_v37, %v1288_v54  ;;  %vm7687_vm15 = vmmov %vm7681_vm2 }
 0x281   : > { %v2176_v40 = vpop.f32.mrf.mxu0 }
 0x282   : > { %v6612_v16 = vpop.f32.mrf.mxu2  ;;  %2534 = vmatpush.msra.mxu3 %v2482_v35  ;;  %v2195_v42 = vadd.f32 %v2176_v40, %v2035_v28  ;;  %v1779_v9 = vadd.f32 %v6602_v0, %v1619_v61 }
 0x283   : > { %v1880_v59 = vadd.f32 %v6612_v16, %v1778_v56 }
 0x284   : > { %2535 = vmatpush.msra.mxu3 %v6677_v13  ;;  %4818 = vmatpush.xpose.msk.msra.mxu0 %vm7683_vm11, %v2484_v10  ;;  %vm7688_vm11 = vmmov %vm7681_vm2 }
 0x286   : > { %v2021_v41 = vpop.f32.mrf.mxu3  ;;  %2536 = vmatpush.msra.mxu3 %v6684_v22 }
 0x287   : > { %v6616_v57 = vpop.f32.mrf.mxu1  ;;  %v2037_v34 = vadd.f32 %v2021_v41, %v1878_v47 }
 0x288   : > { %2537 = vmatpush.msra.mxu3 %v6706_v29  ;;  %4819 = vmatpush.xpose.msk.msra.mxu0 %vm7684_vm8, %v2483_v46  ;;  %v2296_v0 = vadd.f32 %v6616_v57, %v2194_v49  ;;  %v1290_v46 = vadd.f32 %v6604_v3, %v6582_v48  ;;  %vm7689_vm8 = vmmov %vm7681_vm2 }
 0x289   : > { %v6624_v51 = vpop.f32.mrf.mxu0 }
 0x28a   : > { %v6618_v39 = vpop.f32.mrf.mxu2  ;;  %v2196_v38 = vadd.f32 %v6624_v51, %v2036_v63  ;;  %2538 = vmatpush.msra.mxu3 %v6711_v53  ;;  %v1620_v48 = vadd.f32 %v6608_v2, %v1290_v46 }
 0x28b   : > { %v1881_v37 = vadd.f32 %v6618_v39, %v1779_v9  ;;  %v6735_v39 = vld [vmem:[%s7446_s6 + $0x8] sm:$0xff] }
 0x28c   : > { %2539 = vmatpush.msra.mxu3 %v6723_v50  ;;  %4820 = vmatpush.xpose.msk.msra.mxu0 %vm7685_vm12, %v2482_v35  ;;  %vm7690_vm12 = vmmov %vm7681_vm2 }
 0x28e   : > { %v2024_v43 = vpop.f32.mrf.mxu3  ;;  %2540 = vmatpush.msra.mxu3 %v6735_v39 }
 0x28f   : > { %v6620_v52 = vpop.f32.mrf.mxu1  ;;  %v2038_v47 = vadd.f32 %v2024_v43, %v6606_v58 }
 0x290   : > { %v2297_v4 = vadd.f32 %v6620_v52, %v2195_v42  ;;  %v5363_v52 = vld [vmem:[%s7445_s5] ss:$0 sm:$0xff]  ;;  %4821 = vmatpush.xpose.msk.msra.mxu0 %vm7686_vm13, %v6677_v13  ;;  %vm7691_vm13 = vmmov %vm7681_vm2 }
 0x291   : > { %v6642_v36 = vpop.f32.mrf.mxu0 }
 0x292   : > { %v6622_v12 = vpop.f32.mrf.mxu2  ;;  %v2197_v58 = vadd.f32 %v6642_v36, %v2037_v34 }
 0x294   : > { %4822 = vmatpush.xpose.msk.msra.mxu0 %vm7681_vm2, %v6684_v22  ;;  %vm7692_vm2 = vcmask 1040384  }
 0x296   : > { %v2026_v19 = vpop.f32.mrf.mxu3 }
 0x297   : > { %v6628_v17 = vpop.f32.mrf.mxu1  ;;  %v2039_v30 = vadd.f32 %v2026_v19, %v1880_v59 }
 0x298   : > { %v2298_v14 = vadd.f32 %v6628_v17, %v2196_v38  ;;  %4823 = vmatpush.xpose.msk.msra.mxu0 %vm7687_vm15, %v6706_v29  ;;  %vm7693_vm15 = vmmov %vm7689_vm8 }
 0x299   : > { %v2184_v26 = vpop.f32.mrf.mxu0 }
 0x29a   : > { %v6626_v6 = vpop.f32.mrf.mxu2  ;;  %v2198_v3 = vadd.f32 %v2184_v26, %v2038_v47 }
 0x29b   : > { %v2455_v57 = vadd.f32 %v6626_v6, %v2296_v0  ;;  %v6749_v6 = vld [vmem:[%s7446_s6] sm:$0xff] }
 0x29c   : > { %2541 = vmatpush.msra.mxu3 %v6749_v6  ;;  %4824 = vmatpush.xpose.msk.msra.mxu0 %vm7688_vm11, %v6711_v53 }
 0x29d   : > { %v6756_v26 = vadd.f32 %v5363_v52, %v2455_v57 }
 0x29e   : > { %v2029_v16 = vpop.f32.mrf.mxu3 }
 0x29f   : > { %v6647_v44 = vpop.f32.mrf.mxu1  ;;  %v2040_v41 = vadd.f32 %v2029_v16, %v1881_v37  ;;  %v2504_v63 = vmul.f32 %v6756_v26, %v6756_v26 }
 0x2a0   : > { %v2299_v17 = vadd.f32 %v6647_v44, %v2197_v58  ;;  %4825 = vmatpush.xpose.msk.msra.mxu0 %vm7689_vm8, %v6723_v50 }
 0x2a1   : > { %v2186_v45 = vpop.f32.mrf.mxu0 }
 0x2a2   : > { %v6636_v8 = vpop.f32.mrf.mxu2  ;;  %v2199_v10 = vadd.f32 %v2186_v45, %v2039_v30 }
 0x2a3   : > { %v2456_v32 = vadd.f32 %v6636_v8, %v2297_v4 }
 0x2a4   : > { %4826 = vmatpush.xpose.msk.msra.mxu0 %vm7690_vm12, %v6735_v39  ;;  %v5584_v39 = vmov 256.0  }
 0x2a5   : > { %v6751_v36 = vadd.f32 %v5363_v52, %v2456_v32  ;;  %5402 = vrcp.f32 %v5584_v39  ;;  %v5197_v39 = vld [vmem:[#allocation7 + $0x30] sm:$0xff] }
 0x2a6   : > { %v2031_v54 = vpop.f32.mrf.mxu3 }
 0x2a7   : > { %v6672_v31 = vpop.f32.mrf.mxu1  ;;  %v2505_v45 = vmul.f32 %v6751_v36, %v6751_v36 }
 0x2a8   : > { %v2300_v43 = vadd.f32 %v6672_v31, %v2198_v3  ;;  %4827 = vmatpush.xpose.msk.msra.mxu0 %vm7691_vm13, %v6749_v6 }
 0x2a9   : > { %v2189_v40 = vpop.f32.mrf.mxu0  ;;  %v2512_v9 = vadd.f32 %v2505_v45, %v2504_v63 }
 0x2aa   : > { %v6656_v21 = vpop.f32.mrf.mxu2  ;;  %v2200_v35 = vadd.f32 %v2189_v40, %v2040_v41 }
 0x2ab   : > { %v2457_v33 = vadd.f32 %v6656_v21, %v2298_v14  ;;  %v1780_v21 = vadd.f32 %v6610_v25, %v1620_v48 }
 0x2ad   : > { %v6758_v44 = vadd.f32 %v5363_v52, %v2457_v33  ;;  %v1882_v19 = vadd.f32 %v6622_v12, %v1780_v21 }
 0x2af   : > { %v2288_v20 = vpop.f32.mrf.mxu1  ;;  %v2506_v61 = vmul.f32 %v6758_v44, %v6758_v44  ;;  %v2041_v12 = vadd.f32 %v2031_v54, %v1882_v19  ;;  %v5403_v54 = vpop.eup %5402 }
 0x2b0   : > { %v2301_v55 = vadd.f32 %v2288_v20, %v2199_v10  ;;  %v2618_v63 = vmul.f32 256.0, %v5403_v54  ;;  %vm2622_vm11 = vweird.f32 %v5403_v54 }
 0x2b1   : > { %v2191_v42 = vpop.f32.mrf.mxu0  ;;  %v2513_v4 = vadd.f32 %v2512_v9, %v2506_v61 }
 0x2b2   : > { %v2442_v1 = vpop.f32.mrf.mxu2  ;;  %v2201_v22 = vadd.f32 %v2191_v42, %v2041_v12  ;;  %v2619_v61 = vsub.f32 1.0, %v2618_v63 }
 0x2b3   : > { %v2458_v2 = vadd.f32 %v2442_v1, %v2299_v17 }
 0x2b5   : > { %v6766_v31 = vadd.f32 %v5363_v52, %v2458_v2 }
 0x2b7   : > { %v2291_v8 = vpop.f32.mrf.mxu1  ;;  %v2507_v59 = vmul.f32 %v6766_v31, %v6766_v31 }
 0x2b8   : > { %v2302_v25 = vadd.f32 %v2291_v8, %v2200_v35 }
 0x2b9   : > { %v2514_v16 = vadd.f32 %v2513_v4, %v2507_v59 }
 0x2ba   : > { %v2445_v60 = vpop.f32.mrf.mxu2 }
 0x2bb   : > { %v2459_v28 = vadd.f32 %v2445_v60, %v2300_v43  ;;  %v2491_v60 = vadd.f32 %v6751_v36, %v6756_v26 }
 0x2bd   : > { %v6776_v20 = vadd.f32 %v5363_v52, %v2459_v28  ;;  %v2492_v34 = vadd.f32 %v2491_v60, %v6758_v44 }
 0x2bf   : > { %v2293_v38 = vpop.f32.mrf.mxu1  ;;  %v2493_v47 = vadd.f32 %v2492_v34, %v6766_v31  ;;  %v2508_v37 = vmul.f32 %v6776_v20, %v6776_v20 }
 0x2c0   : > { %v2303_v14 = vadd.f32 %v2293_v38, %v2201_v22 }
 0x2c1   : > { %v2494_v32 = vadd.f32 %v2493_v47, %v6776_v20  ;;  %v2515_v29 = vadd.f32 %v2514_v16, %v2508_v37 }
 0x2c2   : > { %v2447_v51 = vpop.f32.mrf.mxu2 }
 0x2c3   : > { %v2460_v1 = vadd.f32 %v2447_v51, %v2301_v55 }
 0x2c5   : > { %v6781_v49 = vadd.f32 %v5363_v52, %v2460_v1 }
 0x2c7   : > { %v2509_v46 = vmul.f32 %v6781_v49, %v6781_v49  ;;  %v2495_v30 = vadd.f32 %v2494_v32, %v6781_v49  ;;  %v2641_v32 = vld [vmem:[%s7447_s7] sm:$0x1] }
 0x2c9   : > { %v2516_v33 = vadd.f32 %v2515_v29, %v2509_v46  ;;  %v2648_v29 = vld [vmem:[%s7448_s8] sm:$0x1] }
 0x2ca   : > { %v2450_v13 = vpop.f32.mrf.mxu2 }
 0x2cb   : > { %v2461_v56 = vadd.f32 %v2450_v13, %v2302_v25  ;;  %v2620_v13 = vmul.f32 %v5403_v54, %v2619_v61 }
 0x2cd   : > { %v6788_v0 = vadd.f32 %v5363_v52, %v2461_v56  ;;  %v2621_v6 = vadd.f32 %v5403_v54, %v2620_v13 }
 0x2cf   : > { %v2510_v40 = vmul.f32 %v6788_v0, %v6788_v0  ;;  %v2496_v51 = vadd.f32 %v2495_v30, %v6788_v0  ;;  %v2623_v12 = vsel %vm2622_vm11, %v5403_v54, %v2621_v6  ;;  %vm7510_vm11 = vcmask 1042432  }
 0x2d1   : > { %v2517_v3 = vadd.f32 %v2516_v33, %v2510_v40 }
 0x2d2   : > { %v2452_v58 = vpop.f32.mrf.mxu2 }
 0x2d3   : > { %v2462_v57 = vadd.f32 %v2452_v58, %v2303_v14 }
 0x2d5   : > { %v6799_v48 = vadd.f32 %v5363_v52, %v2462_v57 }
 0x2d7   : > { %v2497_v17 = vadd.f32 %v2496_v51, %v6799_v48  ;;  %v2511_v53 = vmul.f32 %v6799_v48, %v6799_v48 }
 0x2d9   : > { %v2498_v41 = vrot.slane %v2497_v17, 4  ;;  %v2518_v8 = vadd.f32 %v2517_v3, %v2511_v53 }
 0x2db   : > { %v2499_v21 = vadd.f32 %v2498_v41, %v2497_v17  ;;  %v2519_v10 = vrot.slane %v2518_v8, 4 }
 0x2dd   : > { %v2500_v43 = vrot.slane %v2499_v21, 2  ;;  %v2520_v2 = vadd.f32 %v2519_v10, %v2518_v8 }
 0x2df   : > { %v2501_v52 = vadd.f32 %v2500_v43, %v2499_v21  ;;  %v2521_v50 = vrot.slane %v2520_v2, 2 }
 0x2e1   : > { %v2502_v35 = vrot.slane %v2501_v52, 1  ;;  %v2522_v19 = vadd.f32 %v2521_v50, %v2520_v2 }
 0x2e3   : > { %v2523_v55 = vrot.slane %v2522_v19, 1  ;;  %v2503_v28 = vadd.f32 %v2502_v35, %v2501_v52 }
 0x2e5   : > { %v2524_v45 = vadd.f32 %v2523_v55, %v2522_v19  ;;  %v5198_v19 = vld [vmem:[#allocation7 + $0x38] sm:$0xff] }
 0x2e6   : > { %3757 = vmatpush.bf16.msrb.mxu2 %v5198_v19 }
 0x2e7   : > { %v2525_v25 = vsel %vm7692_vm2, %v2503_v28, %v2524_v45  ;;  %vm7694_vm2 = vnez %v7541_v5 }
 0x2e8   : > { %2542 = vmatmul.f32.vlgmr.msra.gmra.mxu3 %v2525_v25  ;;  %v5221_v25 = vld [vmem:[#allocation7 + $0xf0] sm:$0xff] }
 0x2ea   : > { %3758 = vmatpush.bf16.msrb.mxu2 %v5197_v39  ;;  %v5193_v39 = vld [vmem:[#allocation7 + $0x10] sm:$0xff] }
 0x36b   : > { %v2543_v1 = vpop.f32.mrf.mxu3 }
 0x36c   : > { %4828 = vmatmul.msk.f32.vlgmr.msra.gmra.mxu0 %vm7693_vm15, %v2543_v1  ;;  %v5238_v1 = vld [vmem:[#allocation7 + $0x178] sm:$0xff]  ;;  %vm7695_vm15 = vnez %v7543_v18  ;;  %v5266_v18 = vld [vmem:[%s7451_s11 + $0x18] sm:$0xff] }
 0x36d   : > { %3440 = vmatpush.bf16.msrb.mxu0 %v5238_v1 }
 0x3e9   : > { %v2614_v60 = vpop.f32.mrf.mxu0 }
 0x3ea   : > { %v2624_v56 = vmul.f32 %v2623_v12, %v2614_v60  ;;  %v5230_v60 = vld [vmem:[#allocation7 + $0x138] sm:$0xff] }
 0x3eb   : > { %3411 = vmatpush.bf16.msrb.mxu3 %v5230_v60 }
 0x3ec   : > { %v2625_v42 = vmul.f32 %v2624_v56, %v2624_v56 }
 0x3ee   : > { %v2627_v9 = vrot.slane %v2625_v42, 7  ;;  %v5220_v42 = vld [vmem:[#allocation7 + $0xe8] sm:$0xff] }
 0x3f0   : > { %v2629_v34 = vsub.f32 %v2624_v56, %v2627_v9  ;;  %v5237_v9 = vld [vmem:[#allocation7 + $0x170] sm:$0xff] }
 0x3f1   : > { %3441 = vmatpush.bf16.msrb.mxu0 %v5237_v9 }
 0x3f2   : > { %v2630_v59 = vadd.f32 1e-06, %v2629_v34 }
 0x3f4   : > { %5404 = vrsqrt.f32 %v2630_v59  ;;  %vm2637_vm12 = vweird.f32 %v2630_v59 }
 0x3fa   : > { %v5405_v38 = vpop.eup %5404 }
 0x3fb   : > { %v2632_v4 = vmul.f32 %v5405_v38, %v2630_v59  ;;  %vm2638_vm8 = vweird.f32 %v5405_v38  ;;  %v5196_v59 = vld [vmem:[#allocation7 + $0x28] sm:$0xff] }
 0x3fc   : > { %vm2639_vm13 = vmor %vm2637_vm12, %vm2638_vm8  ;;  %3759 = vmatpush.bf16.msrb.mxu2 %v5196_v59  ;;  %v5192_v59 = vld [vmem:[#allocation7 + $0x8] sm:$0xff]  ;;  %vm7696_vm8 = vnez %v7553_v11  ;;  %vm7697_vm12 = vnez %v7555_v23  ;;  %v5261_v23 = vld [vmem:[#allocation7 + $0x230] sm:$0xff] }
 0x3fd   : > { %v2633_v22 = vmul.f32 %v5405_v38, %v2632_v4 }
 0x3ff   : > { %v2634_v47 = vmul.f32 0.5, %v2633_v22  ;;  %v5236_v22 = vld [vmem:[#allocation7 + $0x168] sm:$0xff] }
 0x400   : > { %3442 = vmatpush.bf16.msrb.mxu0 %v5236_v22 }
 0x401   : > { %v2635_v37 = vsub.f32 1.5, %v2634_v47  ;;  %v5219_v47 = vld [vmem:[#allocation7 + $0xe0] sm:$0xff] }
 0x403   : > { %v2636_v14 = vmul.f32 %v5405_v38, %v2635_v37 }
 0x405   : > { %v2640_v16 = vsel %vm2639_vm13, %v5405_v38, %v2636_v14  ;;  %v5229_v38 = vld [vmem:[#allocation7 + $0x130] sm:$0xff]  ;;  %v5195_v14 = vld [vmem:[#allocation7 + $0x20] sm:$0xff]  ;;  %vm7698_vm13 = vsmask.f32 4352 }
 0x406   : > { %2643 = vst [vmem:[#allocation1] sm:$0xff] %v2640_v16  ;;  %3412 = vmatpush.bf16.msrb.mxu3 %v5229_v38  ;;  %v5228_v16 = vld [vmem:[#allocation7 + $0x128] sm:$0xff]  ;;  %3760 = vmatpush.bf16.msrb.mxu2 %v5195_v14  ;;  %v5225_v38 = vld [vmem:[#allocation7 + $0x110] sm:$0xff] }
 0x40a   : > { %3413 = vmatpush.bf16.msrb.mxu3 %v5228_v16 }
 0x40d   : > { %v2645_v46 = vld [vmem:[#allocation1 + $0x1] ss:$9 sm:$0xff] }
 0x40e   : > { %v2647_v58 = vmul.f32 %v2645_v46, %v2641_v32 }
 0x410   : > { %v2649_v30 = vmul.f32 %v2647_v58, %v2624_v56  ;;  %v2652_v40 = vperm.slane %v2647_v58, 0  ;;  %v5235_v58 = vld [vmem:[#allocation7 + $0x160] sm:$0xff] }
 0x411   : > { %3443 = vmatpush.bf16.msrb.mxu0 %v5235_v58  ;;  %v5215_v58 = vld [vmem:[#allocation7 + $0xc0] sm:$0xff] }
 0x412   : > { %v2650_v57 = vsub.f32 %v2648_v29, %v2649_v30  ;;  %v2654_v33 = vmul.f32 %v2652_v40, %v6756_v26  ;;  %v2655_v51 = vmul.f32 %v2652_v40, %v6751_v36  ;;  %v2656_v3 = vmul.f32 %v2652_v40, %v6758_v44 }
 0x413   : > { %v2657_v17 = vmul.f32 %v2652_v40, %v6766_v31  ;;  %v2658_v41 = vmul.f32 %v2652_v40, %v6776_v20  ;;  %v2659_v8 = vmul.f32 %v2652_v40, %v6781_v49  ;;  %v2660_v21 = vmul.f32 %v2652_v40, %v6788_v0  ;;  %v5222_v49 = vld [vmem:[#allocation7 + $0xf8] sm:$0xff] }
 0x414   : > { %v2663_v53 = vperm.slane %v2650_v57, 0  ;;  %v2661_v10 = vmul.f32 %v2652_v40, %v6799_v48  ;;  %3382 = vmatpush.bf16.msrb.mxu1 %v5222_v49  ;;  %v6850_v49 = vld [vmem:[#allocation3 + $0x4] sm:$0xf] }
 0x416   : > { %v6826_v43 = vadd.f32 %v2663_v53, %v2654_v33  ;;  %v6828_v2 = vadd.f32 %v2663_v53, %v2655_v51  ;;  %v6830_v26 = vadd.f32 %v2663_v53, %v2656_v3  ;;  %v6832_v36 = vadd.f32 %v2663_v53, %v2657_v17  ;;  %v5218_v33 = vld [vmem:[#allocation7 + $0xd8] sm:$0xff] }
 0x417   : > { %v6834_v44 = vadd.f32 %v2663_v53, %v2658_v41  ;;  %v6836_v31 = vadd.f32 %v2663_v53, %v2659_v8  ;;  %v6838_v52 = vadd.f32 %v2663_v53, %v2660_v21  ;;  %v6840_v20 = vadd.f32 %v2663_v53, %v2661_v10  ;;  %v5194_v17 = vld [vmem:[#allocation7 + $0x18] sm:$0xff]  ;;  %v5227_v53 = vld [vmem:[#allocation7 + $0x120] sm:$0xff]  ;;  %v2741_v10 = vld [vmem:[#allocation3] sm:$0x8] }
 0x418   : > { %v2673_v0 = vsub.f32 0.0, %v6826_v43  ;;  %v2674_v48 = vsub.f32 0.0, %v6828_v2  ;;  %v2675_v50 = vsub.f32 0.0, %v6830_v26  ;;  %v2676_v35 = vsub.f32 0.0, %v6832_v36  ;;  %3383 = vmatpush.bf16.msrb.mxu1 %v5221_v25  ;;  %v5234_v21 = vld [vmem:[#allocation7 + $0x158] sm:$0xff]  ;;  %3761 = vmatpush.bf16.msrb.mxu2 %v5194_v17 }
 0x419   : > { %v2677_v55 = vsub.f32 0.0, %v6834_v44  ;;  %v2678_v28 = vsub.f32 0.0, %v6836_v31  ;;  %v2679_v45 = vsub.f32 0.0, %v6838_v52  ;;  %v2680_v13 = vsub.f32 0.0, %v6840_v20  ;;  %3414 = vmatpush.bf16.msrb.mxu3 %v5227_v53  ;;  %3444 = vmatpush.bf16.msrb.mxu0 %v5234_v21  ;;  %v5223_v53 = vld [vmem:[#allocation7 + $0x100] sm:$0xff] }
 0x41a   : > { %v2681_v54 = vmul.f32 1.442695, %v2673_v0  ;;  %v2683_v63 = vmul.f32 1.442695, %v2674_v48  ;;  %v2685_v61 = vmul.f32 1.442695, %v2675_v50 }
 0x41b   : > { %v2687_v6 = vmul.f32 1.442695, %v2676_v35  ;;  %v2689_v12 = vmul.f32 1.442695, %v2677_v55  ;;  %v2691_v56 = vmul.f32 1.442695, %v2678_v28 }
 0x41c   : > { %5406 = vpow2.f32 %v2681_v54  ;;  %v2693_v34 = vmul.f32 1.442695, %v2679_v45  ;;  %v2695_v4 = vmul.f32 1.442695, %v2680_v13  ;;  %3384 = vmatpush.bf16.msrb.mxu1 %v5220_v42  ;;  %v2750_v50 = vsel %vm7694_vm2, %v2741_v10, 0  ;;  %v5217_v28 = vld [vmem:[#allocation7 + $0xd0] sm:$0xff]  ;;  %3762 = vmatpush.bf16.msrb.mxu2 %v5193_v39 }
 0x41d   : > { %5408 = vpow2.f32 %v2683_v63  ;;  %v2751_v35 = vsel %vm7695_vm15, %v6850_v49, 0  ;;  %v2778_v45 = vunpack.c.l.b16 %v2750_v50  ;;  %v5226_v54 = vld [vmem:[#allocation7 + $0x118] sm:$0xff]  ;;  %v5216_v42 = vld [vmem:[#allocation7 + $0xc8] sm:$0xff] }
 0x41e   : > { %5410 = vpow2.f32 %v2685_v61  ;;  %v2779_v25 = vunpack.c.l.b16 %v2751_v35  ;;  %v5233_v61 = vld [vmem:[#allocation7 + $0x150] sm:$0xff]  ;;  %3415 = vmatpush.bf16.msrb.mxu3 %v5226_v54 }
 0x41f   : > { %5412 = vpow2.f32 %v2687_v6  ;;  %3445 = vmatpush.bf16.msrb.mxu0 %v5233_v61 }
 0x420   : > { %5414 = vpow2.f32 %v2689_v12  ;;  %3385 = vmatpush.bf16.msrb.mxu1 %v5219_v47  ;;  %v2787_v12 = vpack.c.b16 %v2779_v25, %v2778_v45  ;;  %3763 = vmatpush.bf16.msrb.mxu2 %v5192_v59 }
 0x421   : > { %5416 = vpow2.f32 %v2691_v56 }
 0x422   : > { %v5407_v37 = vpop.eup %5406  ;;  %5418 = vpow2.f32 %v2693_v34  ;;  %v3470_v16 = vshrl.u32 %v2787_v12, 16  ;;  %3416 = vmatpush.bf16.msrb.mxu3 %v5225_v38 }
 0x423   : > { %v5409_v32 = vpop.eup %5408  ;;  %5420 = vpow2.f32 %v2695_v4  ;;  %v2697_v46 = vadd.f32 1.0, %v5407_v37  ;;  %v5232_v37 = vld [vmem:[#allocation7 + $0x148] sm:$0xff] }
 0x424   : > { %v5411_v29 = vpop.eup %5410  ;;  %v2698_v30 = vadd.f32 1.0, %v5409_v32  ;;  %3386 = vmatpush.bf16.msrb.mxu1 %v5218_v33  ;;  %3446 = vmatpush.bf16.msrb.mxu0 %v5232_v37 }
 0x425   : > { %v5413_v40 = vpop.eup %5412  ;;  %v2699_v57 = vadd.f32 1.0, %v5411_v29  ;;  %5422 = vrcp.f32 %v2697_v46 }
 0x426   : > { %v5415_v51 = vpop.eup %5414  ;;  %v2700_v3 = vadd.f32 1.0, %v5413_v40  ;;  %5424 = vrcp.f32 %v2698_v30  ;;  %v5224_v40 = vld [vmem:[#allocation7 + $0x108] sm:$0xff] }
 0x427   : > { %v5417_v41 = vpop.eup %5416  ;;  %v2701_v8 = vadd.f32 1.0, %v5415_v51  ;;  %5426 = vrcp.f32 %v2699_v57  ;;  %v2928_v57 = vld [vmem:[#allocation3 + $0x4] sm:$0x8]  ;;  %v5231_v51 = vld [vmem:[#allocation7 + $0x140] sm:$0xff]  ;;  %3417 = vmatpush.bf16.msrb.mxu3 %v5224_v40 }
 0x428   : > { %v5419_v0 = vpop.eup %5418  ;;  %v2702_v48 = vadd.f32 1.0, %v5417_v41  ;;  %5428 = vrcp.f32 %v2700_v3  ;;  %3387 = vmatpush.bf16.msrb.mxu1 %v5217_v28  ;;  %v6865_v3 = vrot.slane %v3470_v16, 3  ;;  %3447 = vmatpush.bf16.msrb.mxu0 %v5231_v51  ;;  %v5206_v41 = vld [vmem:[#allocation7 + $0x78] sm:$0xff] }
 0x429   : > { %v5421_v19 = vpop.eup %5420  ;;  %v2703_v55 = vadd.f32 1.0, %v5419_v0  ;;  %5430 = vrcp.f32 %v2701_v8 }
 0x42a   : > { %v2704_v1 = vadd.f32 1.0, %v5421_v19  ;;  %5432 = vrcp.f32 %v2702_v48 }
 0x42b   : > { %v5423_v63 = vpop.eup %5422  ;;  %5434 = vrcp.f32 %v2703_v55  ;;  %v5205_v55 = vld [vmem:[#allocation7 + $0x70] sm:$0xff]  ;;  %3418 = vmatpush.bf16.msrb.mxu3 %v5223_v53 }
 0x42c   : > { %v5425_v13 = vpop.eup %5424  ;;  %5436 = vrcp.f32 %v2704_v1  ;;  %v2713_v6 = vmul.f32 %v5423_v63, %v6826_v43  ;;  %3388 = vmatpush.bf16.msrb.mxu1 %v5216_v42 }
 0x42d   : > { %v5427_v60 = vpop.eup %5426  ;;  %v2714_v56 = vmul.f32 %v5425_v13, %v6828_v2  ;;  %v3473_v2 = vshll.u32 %v2787_v12, 16  ;;  %v5213_v12 = vld [vmem:[#allocation7 + $0xb0] sm:$0xff] }
 0x42e   : > { %v5429_v9 = vpop.eup %5428  ;;  %v2715_v34 = vmul.f32 %v5427_v60, %v6830_v26 }
 0x42f   : > { %v5431_v4 = vpop.eup %5430  ;;  %v2716_v22 = vmul.f32 %v5429_v9, %v6832_v36  ;;  %v5271_v47 = vpack.c.bf16 %v2714_v56, %v2713_v6  ;;  %v5191_v36 = vld [vmem:[#allocation7] sm:$0xff] }
 0x430   : > { %v5433_v43 = vpop.eup %5432  ;;  %v2717_v14 = vmul.f32 %v5431_v4, %v6834_v44  ;;  %3389 = vmatpush.bf16.msrb.mxu1 %v5215_v58  ;;  %3764 = vmatpush.bf16.msrb.mxu2 %v5191_v36 }
 0x431   : > { %v5435_v32 = vpop.eup %5434  ;;  %v2718_v46 = vmul.f32 %v5433_v43, %v6836_v31  ;;  %5288 = vst [vmem:[#allocation3 + $0x8] sm:$0xff] %v5271_v47   ;;  %v5276_v26 = vpack.c.bf16 %v2716_v22, %v2715_v34  ;;  %v6867_v31 = vrot.slane %v3473_v2, 4 }
 0x432   : > { %v5437_v29 = vpop.eup %5436  ;;  %v2719_v30 = vmul.f32 %v5435_v32, %v6838_v52  ;;  %v2930_v52 = vsel %vm7694_vm2, %v2928_v57, 0 }
 0x433   : > { %v2720_v33 = vmul.f32 %v5437_v29, %v6840_v20  ;;  %5289 = vst [vmem:[#allocation3 + $0x10] sm:$0xff] %v5276_v26   ;;  %v5281_v44 = vpack.c.bf16 %v2718_v46, %v2717_v14  ;;  %v5214_v20 = vld [vmem:[#allocation7 + $0xb8] sm:$0xff]  ;;  %v2958_v10 = vunpack.c.l.b16 %v2930_v52  ;;  %v3476_v0 = vor.u32 %v6867_v31, %v6865_v3 }
 0x434   : > { %3786 = vmatpush.bf16.msra.mxu1 %v5206_v41  ;;  %3815 = vmatpush.bf16.msra.mxu3 %v5214_v20 }
 0x435   : > { %5290 = vst [vmem:[#allocation3 + $0x18] sm:$0xff] %v5281_v44   ;;  %v5286_v17 = vpack.c.bf16 %v2720_v33, %v2719_v30 }
 0x437   : > { %5291 = vst [vmem:[#allocation3 + $0x20] sm:$0xff] %v5286_v17  }
 0x438   : > { %v6871_v8 = vld [vmem:[#allocation3 + $0x8] sm:$0xf]  ;;  %v6873_v21 = vld [vmem:[#allocation3 + $0xc] sm:$0xf]  ;;  %3787 = vmatpush.bf16.msra.mxu1 %v5205_v55  ;;  %3816 = vmatpush.bf16.msra.mxu3 %v5213_v12  ;;  %v5204_v12 = vld [vmem:[#allocation7 + $0x68] sm:$0xff] }
 0x439   : > { %v2931_v48 = vsel %vm7695_vm15, %v6871_v8, 0  ;;  %v2932_v50 = vsel %vm7696_vm8, %v6873_v21, 0  ;;  %v2752_v35 = vsel %vm7696_vm8, %v6871_v8, 0  ;;  %v2753_v19 = vsel %vm7697_vm12, %v6873_v21, 0 }
 0x43a   : > { %v6889_v28 = vld [vmem:[#allocation3 + $0x10] sm:$0xf]  ;;  %v2959_v45 = vunpack.c.l.b16 %v2931_v48  ;;  %v2960_v25 = vunpack.c.l.b16 %v2932_v50  ;;  %v2780_v1 = vunpack.c.l.b16 %v2752_v35  ;;  %v2781_v39 = vunpack.c.l.b16 %v2753_v19  ;;  %v6891_v54 = vld [vmem:[#allocation3 + $0x14] sm:$0xf] }
 0x43b   : > { %v2933_v63 = vsel %vm7697_vm12, %v6889_v28, 0  ;;  %v2940_v61 = vsel %vm6202_vm4, %v6871_v8, 0  ;;  %v2941_v13 = vsel %vm7650_vm5, %v6873_v21, 0  ;;  %v2942_v6 = vsel %vm6225_vm1, %v6889_v28, 0 }
 0x43c   : > { %v2961_v60 = vunpack.c.l.b16 %v2933_v63  ;;  %v2967_v56 = vpack.c.b16 %v2959_v45, %v2958_v10  ;;  %v2788_v42 = vpack.c.b16 %v2781_v39, %v2780_v1  ;;  %v2943_v9 = vsel %vm7651_vm6, %v6891_v54, 0  ;;  %v6922_v45 = vld [vmem:[#allocation3 + $0x18] sm:$0xf]  ;;  %vm7699_vm6 = vmmov %vm7698_vm13  ;;  %3788 = vmatpush.bf16.msra.mxu1 %v5204_v12 }
 0x43d   : > { %v3022_v34 = vunpack.c.l.b16 %v2940_v61  ;;  %v3023_v59 = vunpack.c.l.b16 %v2941_v13  ;;  %v3024_v38 = vunpack.c.l.b16 %v2942_v6  ;;  %v3025_v4 = vunpack.c.l.b16 %v2943_v9  ;;  %v5212_v6 = vld [vmem:[#allocation7 + $0xa8] sm:$0xff] }
 0x43e   : > { %v2968_v22 = vpack.c.b16 %v2961_v60, %v2960_v25  ;;  %v3095_v47 = vshrl.u32 %v2967_v56, 16  ;;  %v3098_v37 = vshll.u32 %v2967_v56, 16  ;;  %v3478_v43 = vshrl.u32 %v2788_v42, 16  ;;  %v7700_v56 = vld [vmem:[#allocation17_spill] sm:$0xff]  ;;  %3817 = vmatpush.bf16.msra.mxu3 %v5212_v6 }
 0x43f   : > { %v3481_v14 = vshll.u32 %v2788_v42, 16  ;;  %v3031_v16 = vpack.c.b16 %v3023_v59, %v3022_v34  ;;  %v3032_v2 = vpack.c.b16 %v3025_v4, %v3024_v38  ;;  %v2801_v32 = vunpack.c.l.b16 %v6871_v8  ;;  %v6945_v59 = vld [vmem:[#allocation3 + $0x1c] sm:$0xf]  ;;  %v5254_v38 = vld [vmem:[#allocation7 + $0x1f8] sm:$0xff] }
 0x440   : > { %v3097_v46 = vrot.slane %v3095_v47, 3  ;;  %v3100_v26 = vrot.slane %v3098_v37, 4  ;;  %v3103_v58 = vshrl.u32 %v2968_v22, 16  ;;  %v3106_v29 = vshll.u32 %v2968_v22, 16  ;;  %4288 = vmatpush.bf16.msra.mxu2 %v5254_v38 }
 0x441   : > { %v3480_v30 = vrot.slane %v3478_v43, 3  ;;  %v3483_v36 = vrot.slane %v3481_v14, 4  ;;  %v3036_v40 = vrot.slane %v3031_v16, 5  ;;  %v6909_v57 = vrot.slane %v3032_v2, 5  ;;  %v5211_v43 = vld [vmem:[#allocation7 + $0xa0] sm:$0xff] }
 0x442   : > { %v3101_v33 = vor.u32 %v3100_v26, %v3097_v46  ;;  %v3105_v44 = vrot.slane %v3103_v58, 3  ;;  %v3108_v51 = vrot.slane %v3106_v29, 4  ;;  %v2802_v3 = vunpack.c.l.b16 %v6873_v21  ;;  %v5203_v14 = vld [vmem:[#allocation7 + $0x60] sm:$0xff]  ;;  %3818 = vmatpush.bf16.msra.mxu3 %v5211_v43 }
 0x443   : > { %v6912_v31 = vor.u32 %v3483_v36, %v3480_v30  ;;  %v3038_v17 = vsel %vm7510_vm11, %v3036_v40, %v6909_v57  ;;  %v3129_v52 = vshrl.u32 %v3036_v40, 16  ;;  %v3132_v53 = vshll.u32 %v3036_v40, 16  ;;  %3789 = vmatpush.bf16.msra.mxu1 %v5203_v14 }
 0x444   : > { %v6916_v20 = vor.u32 %v3108_v51, %v3105_v44  ;;  %v3137_v41 = vshrl.u32 %v3038_v17, 16  ;;  %v3140_v10 = vshll.u32 %v3038_v17, 16  ;;  %v2803_v48 = vunpack.c.l.b16 %v6889_v28  ;;  %v7702_v44 = vld [vmem:[#allocation19_spill] sm:$0xff]  ;;  %v7703_v17 = vld [vmem:[#allocation20_spill] sm:$0xff] }
 0x445   : > { %v3485_v50 = vsel %vm7698_vm13, %v3476_v0, %v6912_v31  ;;  %v3131_v35 = vrot.slane %v3129_v52, 3  ;;  %v3134_v19 = vrot.slane %v3132_v53, 4  ;;  %v2804_v55 = vunpack.c.l.b16 %v6891_v54  ;;  %v5246_v53 = vld [vmem:[#allocation7 + $0x1b8] sm:$0xff] }
 0x446   : > { %v3110_v25 = vsel %vm7699_vm6, %v3101_v33, %v6916_v20  ;;  %3765 = vmatmul.bf16.vlgmr.msrb.gmra.mxu2 %v3485_v50  ;;  %v3139_v1 = vrot.slane %v3137_v41, 3  ;;  %v3142_v39 = vrot.slane %v3140_v10, 4  ;;  %v2974_v61 = vpack.c.b16 %v2802_v3, %v2801_v32  ;;  %v5253_v41 = vld [vmem:[#allocation7 + $0x1f0] sm:$0xff]  ;;  %4259 = vmatpush.bf16.msra.mxu0 %v5246_v53 }
 0x447   : > { %3390 = vmatmul.bf16.vlgmr.msrb.gmra.mxu1 %v3110_v25  ;;  %v3135_v63 = vor.u32 %v3134_v19, %v3131_v35  ;;  %v2975_v0 = vpack.c.b16 %v2804_v55, %v2803_v48  ;;  %v2934_v13 = vsel %vm7615_vm14, %v6891_v54, 0  ;;  %vm7701_vm6 = vnez %v7700_v56  ;;  %4289 = vmatpush.bf16.msra.mxu2 %v5253_v41 }
 0x448   : > { %v6937_v60 = vor.u32 %v3142_v39, %v3139_v1  ;;  %v2935_v42 = vsel %vm7701_vm6, %v6922_v45, 0  ;;  %v2962_v9 = vunpack.c.l.b16 %v2934_v13  ;;  %v2754_v34 = vsel %vm7615_vm14, %v6889_v28, 0 }
 0x449   : > { %v2979_v4 = vshrl.u32 %v2974_v61, 16  ;;  %v2982_v22 = vshll.u32 %v2974_v61, 16  ;;  %v2987_v47 = vshrl.u32 %v2975_v0, 16  ;;  %v2990_v37 = vshll.u32 %v2975_v0, 16 }
 0x44a   : > { %v3144_v16 = vsel %vm7698_vm13, %v3135_v63, %v6937_v60  ;;  %v2963_v2 = vunpack.c.l.b16 %v2935_v42  ;;  %v2755_v46 = vsel %vm7701_vm6, %v6891_v54, 0  ;;  %v2782_v26 = vunpack.c.l.b16 %v2754_v34 }
 0x44b   : > { %3448 = vmatmul.bf16.vlgmr.msrb.gmra.mxu0 %v3144_v16  ;;  %v2981_v58 = vrot.slane %v2979_v4, 4  ;;  %v2984_v29 = vrot.slane %v2982_v22, 5  ;;  %v2989_v30 = vrot.slane %v2987_v47, 4  ;;  %v2992_v36 = vrot.slane %v2990_v37, 5 }
 0x44c   : > { %v2969_v40 = vpack.c.b16 %v2963_v2, %v2962_v9  ;;  %v2783_v33 = vunpack.c.l.b16 %v2755_v46  ;;  %v2944_v51 = vsel %vm7636_vm10, %v6922_v45, 0  ;;  %v2945_v52 = vsel %vm7637_vm0, %v6945_v59, 0 }
 0x44d   : > { %v2985_v10 = vor.u32 %v2984_v29, %v2981_v58  ;;  %v6958_v50 = vor.u32 %v2992_v36, %v2989_v30  ;;  %v3026_v35 = vunpack.c.l.b16 %v2944_v51  ;;  %v3027_v19 = vunpack.c.l.b16 %v2945_v52  ;;  %v6968_v29 = vld [vmem:[#allocation3 + $0x20] sm:$0xf] }
 0x44e   : > { %v3146_v25 = vshrl.u32 %v2969_v40, 16  ;;  %v3149_v1 = vshll.u32 %v2969_v40, 16  ;;  %v2789_v39 = vpack.c.b16 %v2783_v33, %v2782_v26  ;;  %v2805_v63 = vunpack.c.l.b16 %v6922_v45 }
 0x44f   : > { %vm7704_vm13 = vsmask.f32 3328  ;;  %v3112_v0 = vshrl.u32 %v2985_v10, 16  ;;  %v3115_v13 = vshll.u32 %v2985_v10, 16  ;;  %v3033_v6 = vpack.c.b16 %v3027_v19, %v3026_v35  ;;  %v7709_v35 = vld [vmem:[#allocation21_spill] sm:$0xff] }
 0x450   : > { %v2994_v61 = vsel %vm7704_vm13, %v2985_v10, %v6958_v50  ;;  %v3148_v9 = vrot.slane %v3146_v25, 3  ;;  %v3151_v34 = vrot.slane %v3149_v1, 4  ;;  %v3521_v22 = vshrl.u32 %v2789_v39, 16  ;;  %v7707_v10 = vld [vmem:[#allocation18_spill] sm:$0xff]  ;;  %v6995_v25 = vld [vmem:[#allocation3 + $0x24] sm:$0xf] }
 0x451   : > { %v3120_v12 = vshrl.u32 %v2994_v61, 16  ;;  %v3123_v42 = vshll.u32 %v2994_v61, 16  ;;  %v3114_v38 = vrot.slane %v3112_v0, 3  ;;  %v3117_v4 = vrot.slane %v3115_v13, 4  ;;  %v5210_v13 = vld [vmem:[#allocation7 + $0x98] sm:$0xff] }
 0x452   : > { %v3524_v47 = vshll.u32 %v2789_v39, 16  ;;  %v6963_v14 = vor.u32 %v3151_v34, %v3148_v9  ;;  %v6965_v16 = vrot.slane %v3033_v6, 5  ;;  %v3523_v46 = vrot.slane %v3521_v22, 3  ;;  %v5202_v6 = vld [vmem:[#allocation7 + $0x58] sm:$0xff]  ;;  %3819 = vmatpush.bf16.msra.mxu3 %v5210_v13 }
 0x453   : > { %v3122_v37 = vrot.slane %v3120_v12, 3  ;;  %v3125_v43 = vrot.slane %v3123_v42, 4  ;;  %v3118_v2 = vor.u32 %v3117_v4, %v3114_v38  ;;  %v7515_v58 = vunpack.c.l.b16 %v6945_v59  ;;  %v5245_v12 = vld [vmem:[#allocation7 + $0x1b0] sm:$0xff]  ;;  %v5252_v4 = vld [vmem:[#allocation7 + $0x1e8] sm:$0xff]  ;;  %3790 = vmatpush.bf16.msra.mxu1 %v5202_v6 }
 0x454   : > { %v3526_v26 = vrot.slane %v3524_v47, 4  ;;  %vm7705_vm13 = vsmask.f32 4352  ;;  %v3040_v40 = vsel %vm7510_vm11, %v6909_v57, %v6965_v16  ;;  %vm7708_vm10 = vnez %v7707_v10  ;;  %4260 = vmatpush.bf16.msra.mxu0 %v5245_v12  ;;  %4290 = vmatpush.bf16.msra.mxu2 %v5252_v4  ;;  %v5243_v4 = vld [vmem:[#allocation7 + $0x1a0] sm:$0xff] }
 0x455   : > { %v6970_v30 = vor.u32 %v3125_v43, %v3122_v37  ;;  %v3153_v36 = vsel %vm7705_vm13, %v6916_v20, %v6963_v14  ;;  %v3164_v51 = vshrl.u32 %v3040_v40, 16  ;;  %v3167_v52 = vshll.u32 %v3040_v40, 16  ;;  %vm7706_vm0 = vmmov %vm7705_vm13  ;;  %v5209_v43 = vld [vmem:[#allocation7 + $0x90] sm:$0xff] }
 0x456   : > { %v6978_v33 = vor.u32 %v3526_v26, %v3523_v46  ;;  %v2976_v53 = vpack.c.b16 %v7515_v58, %v2805_v63  ;;  %v2936_v20 = vsel %vm7708_vm10, %v6945_v59, 0  ;;  %vm7710_vm13 = vnez %v7709_v35  ;;  %vm7711_vm11 = vmmov %vm7706_vm0  ;;  %3820 = vmatpush.bf16.msra.mxu3 %v5209_v43 }
 0x457   : > { %v3127_v41 = vsel %vm7706_vm0, %v3118_v2, %v6970_v30  ;;  %v2937_v57 = vsel %vm7710_vm13, %v6968_v29, 0  ;;  %v2756_v19 = vsel %vm7708_vm10, %v6922_v45, 0  ;;  %3395 = vmatmul.bf16.gmra.mxu1 %v3153_v36  ;;  %v3166_v39 = vrot.slane %v3164_v51, 3  ;;  %v5201_v2 = vld [vmem:[#allocation7 + $0x50] sm:$0xff]  ;;  %v7713_v51 = vld [vmem:[#allocation24_spill] sm:$0xff] }
 0x458   : > { %3419 = vmatmul.bf16.vlgmr.msrb.gmra.mxu3 %v3127_v41  ;;  %v3528_v1 = vsel %vm7711_vm11, %v6912_v31, %v6978_v33  ;;  %v3169_v61 = vrot.slane %v3167_v52, 4  ;;  %v2996_v0 = vshrl.u32 %v2976_v53, 16  ;;  %v2999_v42 = vshll.u32 %v2976_v53, 16  ;;  %v7712_v36 = vld [vmem:[#allocation23_spill] sm:$0xff]  ;;  %v5244_v53 = vld [vmem:[#allocation7 + $0x1a8] sm:$0xff]  ;;  %v5251_v41 = vld [vmem:[#allocation7 + $0x1e0] sm:$0xff]  ;;  %3791 = vmatpush.bf16.msra.mxu1 %v5201_v2 }
 0x459   : > { %3770 = vmatmul.bf16.gmra.mxu2 %v3528_v1  ;;  %v2964_v9 = vunpack.c.l.b16 %v2936_v20  ;;  %v2965_v34 = vunpack.c.l.b16 %v2937_v57  ;;  %v2757_v38 = vsel %vm7710_vm13, %v6945_v59, 0  ;;  %v2784_v37 = vunpack.c.l.b16 %v2756_v19  ;;  %4261 = vmatpush.bf16.msra.mxu0 %v5244_v53 }
 0x45a   : > { %v7003_v22 = vor.u32 %v3169_v61, %v3166_v39  ;;  %v2998_v47 = vrot.slane %v2996_v0, 4  ;;  %v2785_v31 = vunpack.c.l.b16 %v2757_v38  ;;  %v3001_v46 = vrot.slane %v2999_v42, 5  ;;  %4291 = vmatpush.bf16.msra.mxu2 %v5251_v41 }
 0x45b   : > { %v2970_v26 = vpack.c.b16 %v2965_v34, %v2964_v9  ;;  %v2946_v40 = vsel %vm6410_vm7, %v6968_v29, 0  ;;  %v2947_v52 = vsel %vm6418_vm3, %v6995_v25, 0  ;;  %v7514_v13 = vunpack.c.l.b16 %v6968_v29 }
 0x45c   : > { %v3171_v20 = vsel %vm7706_vm0, %v6937_v60, %v7003_v22  ;;  %v2790_v57 = vpack.c.b16 %v2785_v31, %v2784_v37  ;;  %v3028_v19 = vunpack.c.l.b16 %v2946_v40  ;;  %v3029_v1 = vunpack.c.l.b16 %v2947_v52 }
 0x45d   : > { %3453 = vmatmul.bf16.gmra.mxu0 %v3171_v20  ;;  %v7014_v39 = vor.u32 %v3001_v46, %v2998_v47  ;;  %v3173_v61 = vshrl.u32 %v2970_v26, 16  ;;  %v3176_v0 = vshll.u32 %v2970_v26, 16  ;;  %v7513_v9 = vunpack.c.l.b16 %v6995_v25  ;;  %v5250_v47 = vld [vmem:[#allocation7 + $0x1d8] sm:$0xff] }
 0x45e   : > { %v3548_v6 = vshrl.u32 %v2790_v57, 16  ;;  %v3551_v42 = vshll.u32 %v2790_v57, 16  ;;  %v3034_v12 = vpack.c.b16 %v3029_v1, %v3028_v19  ;;  %vm7714_vm11 = vsmask.f32 3328  ;;  %4262 = vmatpush.bf16.msra.mxu0 %v5243_v4  ;;  %4292 = vmatpush.bf16.msra.mxu2 %v5250_v47 }
 0x45f   : > { %v3003_v60 = vsel %vm7714_vm11, %v6958_v50, %v7014_v39  ;;  %v3175_v34 = vrot.slane %v3173_v61, 3  ;;  %v3178_v38 = vrot.slane %v3176_v0, 4  ;;  %v2977_v43 = vpack.c.b16 %v7513_v9, %v7514_v13  ;;  %v7715_v50 = vld [vmem:[#allocation22_spill] sm:$0xff]  ;;  %v7720_v9 = vld [vmem:[#allocation25_spill] sm:$0xff] }
 0x460   : > { %v3155_v37 = vshrl.u32 %v3003_v60, 16  ;;  %v3158_v31 = vshll.u32 %v3003_v60, 16  ;;  %v3550_v46 = vrot.slane %v3548_v6, 3  ;;  %v3553_v26 = vrot.slane %v3551_v42, 4  ;;  %v5242_v6 = vld [vmem:[#allocation7 + $0x198] sm:$0xff]  ;;  %v5249_v42 = vld [vmem:[#allocation7 + $0x1d0] sm:$0xff] }
 0x461   : > { %v7021_v40 = vor.u32 %v3178_v38, %v3175_v34  ;;  %v7023_v52 = vrot.slane %v3034_v12, 5  ;;  %vm7716_vm0 = vnez %v7715_v50  ;;  %v2800_v53 = vunpack.c.l.b16 %v6850_v49 }
 0x462   : > { %v2938_v2 = vsel %vm7716_vm0, %v6995_v25, 0  ;;  %v3157_v41 = vrot.slane %v3155_v37, 3  ;;  %v3160_v20 = vrot.slane %v3158_v31, 4  ;;  %v7033_v19 = vor.u32 %v3553_v26, %v3550_v46  ;;  %v2939_v37 = vld [vmem:[#allocation3 + $0x28] sm:$0x1]  ;;  %4263 = vmatpush.bf16.msra.mxu0 %v5242_v6  ;;  %4293 = vmatpush.bf16.msra.mxu2 %v5249_v42  ;;  %v5248_v42 = vld [vmem:[#allocation7 + $0x1c8] sm:$0xff] }
 0x463   : > { %v2966_v57 = vunpack.c.l.b16 %v2938_v2  ;;  %vm7717_vm11 = vcmask 1042432   ;;  %v3005_v61 = vshrl.u32 %v2977_v43, 16  ;;  %v3008_v0 = vshll.u32 %v2977_v43, 16 }
 0x464   : > { %v3042_v1 = vsel %vm7717_vm11, %v6965_v16, %v7023_v52  ;;  %v7038_v12 = vor.u32 %v3160_v20, %v3157_v41  ;;  %vm7718_vm3 = vsmask.f32 4352  ;;  %v2758_v16 = vsel %vm7716_vm0, %v6968_v29, 0 }
 0x465   : > { %v3180_v60 = vsel %vm7718_vm3, %v6963_v14, %v7021_v40  ;;  %v3191_v34 = vshrl.u32 %v3042_v1, 16  ;;  %v3194_v38 = vshll.u32 %v3042_v1, 16  ;;  %v3007_v31 = vrot.slane %v3005_v61, 4  ;;  %vm7719_vm11 = vmmov %vm7718_vm3 }
 0x466   : > { %v3010_v46 = vrot.slane %v3008_v0, 5  ;;  %v2971_v26 = vpack.c.b16 %v2966_v57, %v2966_v57  ;;  %v3162_v4 = vsel %vm7719_vm11, %v6970_v30, %v7038_v12  ;;  %v2786_v2 = vunpack.c.l.b16 %v2758_v16  ;;  %4294 = vmatpush.bf16.msra.mxu2 %v5248_v42  ;;  %vm7728_vm7 = vmmov %vm7718_vm3 }
 0x467   : > { %v3193_v47 = vrot.slane %v3191_v34, 3  ;;  %v3196_v43 = vrot.slane %v3194_v38, 4  ;;  %v2948_v1 = vsel %vm6451_vm9, %v2939_v37, 0  ;;  %3400 = vmatmul.bf16.gmra.mxu1 %v3180_v60  ;;  %v3555_v57 = vsel %vm7718_vm3, %v6978_v33, %v7033_v19  ;;  %v5208_v34 = vld [vmem:[#allocation7 + $0x88] sm:$0xff]  ;;  %vm7727_vm9 = vmmov %vm7718_vm3 }
 0x468   : > { %v3011_v41 = vor.u32 %v3010_v46, %v3007_v31  ;;  %v3200_v20 = vshrl.u32 %v2971_v26, 16  ;;  %v3203_v14 = vshll.u32 %v2971_v26, 16  ;;  %3424 = vmatmul.bf16.gmra.mxu3 %v3162_v4  ;;  %v2791_v30 = vpack.c.b16 %v2786_v2, %v2786_v2  ;;  %v5200_v38 = vld [vmem:[#allocation7 + $0x48] sm:$0xff]  ;;  %v5241_v31 = vld [vmem:[#allocation7 + $0x190] sm:$0xff] }
 0x469   : > { %v7054_v61 = vor.u32 %v3196_v43, %v3193_v47  ;;  %v3030_v0 = vunpack.c.l.b16 %v2948_v1  ;;  %v2809_v37 = vpack.c.b16 %v2803_v48, %v2802_v3  ;;  %v7064_v6 = vpack.c.b16 %v2805_v63, %v2804_v55  ;;  %3775 = vmatmul.bf16.gmra.mxu2 %v3555_v57  ;;  %3821 = vmatpush.bf16.msra.mxu3 %v5208_v34  ;;  %v5199_v3 = vld [vmem:[#allocation7 + $0x40] sm:$0xff]  ;;  %v5240_v2 = vld [vmem:[#allocation7 + $0x188] sm:$0xff] }
 0x46a   : > { %vm7721_vm11 = vsmask.f32 3328  ;;  %v2808_v60 = vpack.c.b16 %v2801_v32, %v2800_v53  ;;  %v3575_v16 = vshrl.u32 %v2791_v30, 16  ;;  %v3209_v4 = vshrl.u32 %v3011_v41, 16  ;;  %3792 = vmatpush.bf16.msra.mxu1 %v5200_v38  ;;  %v5207_v48 = vld [vmem:[#allocation7 + $0x80] sm:$0xff]  ;;  %4264 = vmatpush.bf16.msra.mxu0 %v5241_v31 }
 0x46b   : > { %v3012_v33 = vsel %vm7721_vm11, %v7014_v39, %v3011_v41  ;;  %v3202_v47 = vrot.slane %v3200_v20, 3  ;;  %v3205_v43 = vrot.slane %v3203_v14, 4  ;;  %v3578_v55 = vshll.u32 %v2791_v30, 16  ;;  %v5247_v39 = vld [vmem:[#allocation7 + $0x1c0] sm:$0xff] }
 0x46c   : > { %v3182_v46 = vshrl.u32 %v3012_v33, 16  ;;  %v3185_v26 = vshll.u32 %v3012_v33, 16  ;;  %v3035_v63 = vpack.c.b16 %v3030_v0, %v3030_v0  ;;  %v3198_v32 = vsel %vm7718_vm3, %v7003_v22, %v7054_v61  ;;  %4295 = vmatpush.bf16.msra.mxu2 %v5247_v39 }
 0x46d   : > { %v3212_v57 = vshll.u32 %v3011_v41, 16  ;;  %3458 = vmatmul.bf16.gmra.mxu0 %v3198_v32  ;;  %v3577_v34 = vrot.slane %v3575_v16, 3  ;;  %v3580_v38 = vrot.slane %v3578_v55, 4  ;;  %v2813_v13 = vshrl.u32 %v2808_v60, 16  ;;  %3822 = vmatpush.bf16.msra.mxu3 %v5207_v48 }
 0x46e   : > { %v3184_v53 = vrot.slane %v3182_v46, 3  ;;  %v3187_v1 = vrot.slane %v3185_v26, 4  ;;  %v3043_v33 = vrot.slane %v3035_v63, 5  ;;  %v3211_v20 = vrot.slane %v3209_v4, 3  ;;  %3793 = vmatpush.bf16.msra.mxu1 %v5199_v3  ;;  %4265 = vmatpush.bf16.msra.mxu0 %v5240_v2  ;;  %v5239_v46 = vld [vmem:[#allocation7 + $0x180] sm:$0xff] }
 0x46f   : > { %v3214_v14 = vrot.slane %v3212_v57, 4  ;;  %v2816_v30 = vshll.u32 %v2808_v60, 16  ;;  %v2821_v0 = vshrl.u32 %v2809_v37, 16  ;;  %vm7722_vm11 = vcmask 1042432  }
 0x470   : > { %v3044_v31 = vsel %vm7722_vm11, %v7023_v52, %v3043_v33  ;;  %v2815_v22 = vrot.slane %v2813_v13, 4  ;;  %v2824_v42 = vshll.u32 %v2809_v37, 16  ;;  %v3188_v41 = vor.u32 %v3187_v1, %v3184_v53  ;;  %vm7725_vm11 = vmmov %vm7718_vm3 }
 0x471   : > { %v3206_v26 = vor.u32 %v3205_v43, %v3202_v47  ;;  %v3218_v16 = vshrl.u32 %v3044_v31, 16  ;;  %v3221_v55 = vshll.u32 %v3044_v31, 16  ;;  %v3581_v63 = vor.u32 %v3580_v38, %v3577_v34  ;;  %v3844_v43 = vld [vmem:[#allocation3 + $0x8] sm:$0x8]  ;;  %4422 = vmatpush.bf16.msrb.mxu3 %v5266_v18 }
 0x472   : > { %v2818_v32 = vrot.slane %v2816_v30, 5  ;;  %v2823_v4 = vrot.slane %v2821_v0, 4  ;;  %v2826_v57 = vrot.slane %v2824_v42, 5  ;;  %v3215_v60 = vor.u32 %v3214_v14, %v3211_v20  ;;  %4266 = vmatpush.bf16.msra.mxu0 %v5239_v46 }
 0x473   : > { %v3220_v3 = vrot.slane %v3218_v16, 3  ;;  %v3223_v48 = vrot.slane %v3221_v55, 4  ;;  %v2830_v58 = vshrl.u32 %v7064_v6, 16  ;;  %v7723_v52 = vunpack.c.l.b16 %v6945_v59 }
 0x474   : > { %v7724_v2 = vunpack.c.l.b16 %v6968_v29  ;;  %v2819_v37 = vor.u32 %v2818_v32, %v2815_v22  ;;  %v2827_v39 = vor.u32 %v2826_v57, %v2823_v4  ;;  %v2833_v47 = vshll.u32 %v7064_v6, 16 }
 0x475   : > { %v3189_v53 = vsel %vm7718_vm3, %v7038_v12, %v3188_v41  ;;  %v3207_v1 = vsel %vm7725_vm11, %v7021_v40, %v3206_v26  ;;  %v3224_v34 = vor.u32 %v3223_v48, %v3220_v3  ;;  %v2832_v38 = vrot.slane %v2830_v58, 4  ;;  %v5262_v26 = vld [vmem:[#allocation7 + $0x238] sm:$0xff] }
 0x476   : > { %v7080_v13 = vpack.c.b16 %v7724_v2, %v7723_v52  ;;  %vm7726_vm0 = vsmask.f32 3328  ;;  %v3487_v20 = vshrl.u32 %v2819_v37, 16  ;;  %v3490_v14 = vshll.u32 %v2819_v37, 16  ;;  %4317 = vmatpush.bf16.msrb.mxu1 %v5262_v26 }
 0x477   : > { %v2828_v33 = vsel %vm7726_vm0, %v2819_v37, %v2827_v39  ;;  %v2835_v30 = vrot.slane %v2833_v47, 5  ;;  %v3582_v0 = vsel %vm7727_vm9, %v7033_v19, %v3581_v63  ;;  %v7091_v31 = vsel %vm7728_vm7, %v3188_v41, %v3215_v60  ;;  %3405 = vmatmul.bf16.gmra.mxu1 %v3207_v1  ;;  %vm7729_vm7 = vmmov %vm7718_vm3 }
 0x478   : > { %v3495_v6 = vshrl.u32 %v2828_v33, 16  ;;  %v3846_v12 = vsel %vm7694_vm2, %v3844_v43, 0  ;;  %v3498_v22 = vshll.u32 %v2828_v33, 16  ;;  %v3847_v58 = vsel %vm7695_vm15, %v6873_v21, 0  ;;  %3429 = vmatmul.bf16.gmra.mxu3 %v3189_v53  ;;  %vm7730_vm9 = vmmov %vm7726_vm0 }
 0x479   : > { %v7095_v42 = vor.u32 %v2835_v30, %v2832_v38  ;;  %v3848_v40 = vsel %vm7696_vm8, %v6889_v28, 0  ;;  %v3225_v19 = vsel %vm7729_vm7, %v7054_v61, %v3224_v34  ;;  %v4007_v46 = vshrl.u32 %v2827_v39, 16  ;;  %3780 = vmatmul.bf16.gmra.mxu2 %v3582_v0  ;;  %vm7741_vm7 = vmmov %vm7718_vm3 }
 0x47a   : > { %v4010_v41 = vshll.u32 %v2827_v39, 16  ;;  %v3849_v5 = vsel %vm7697_vm12, %v6891_v54, 0  ;;  %v7111_v16 = vrot.slane %v3487_v20, 3  ;;  %v3492_v11 = vrot.slane %v3490_v14, 4  ;;  %4318 = vmatpush.bf16.msrb.mxu1 %v5261_v23  ;;  %vm7735_vm12 = vmmov %vm7718_vm3 }
 0x47b   : > { %v2837_v55 = vsel %vm7730_vm9, %v2827_v39, %v7095_v42  ;;  %v3882_v63 = vunpack.c.l.b16 %v3846_v12  ;;  %v3497_v61 = vrot.slane %v3495_v6, 3  ;;  %v3883_v57 = vunpack.c.l.b16 %v3847_v58  ;;  %vm7742_vm9 = vmmov %vm7718_vm3 }
 0x47c   : > { %v3530_v32 = vshrl.u32 %v2837_v55, 16  ;;  %v3533_v4 = vshll.u32 %v2837_v55, 16  ;;  %v3500_v3 = vrot.slane %v3498_v22, 4  ;;  %v3884_v48 = vunpack.c.l.b16 %v3848_v40 }
 0x47d   : > { %v3885_v60 = vunpack.c.l.b16 %v3849_v5  ;;  %v2760_v52 = vsel %vm6202_vm4, %v6850_v49, 0  ;;  %v4009_v37 = vrot.slane %v4007_v46, 3  ;;  %v4012_v47 = vrot.slane %v4010_v41, 4  ;;  %3463 = vmatmul.bf16.gmra.mxu0 %v3225_v19 }
 0x47e   : > { %v3532_v2 = vrot.slane %v3530_v32, 3  ;;  %v3891_v43 = vpack.c.b16 %v3883_v57, %v3882_v63  ;;  %v2761_v53 = vsel %vm7650_vm5, %v6871_v8, 0  ;;  %v2762_v1 = vsel %vm6225_vm1, %v6873_v21, 0 }
 0x47f   : > { %v3892_v39 = vpack.c.b16 %v3885_v60, %v3884_v48  ;;  %vm7731_vm2 = vnez %v7583_v24  ;;  %v3535_v38 = vrot.slane %v3533_v4, 4  ;;  %v2856_v20 = vunpack.c.l.b16 %v2760_v52 }
 0x480   : > { %v2763_v34 = vsel %vm7731_vm2, %v6889_v28, 0  ;;  %v3990_v49 = vshrl.u32 %v3891_v43, 16  ;;  %v3993_v33 = vshll.u32 %v3891_v43, 16  ;;  %v2857_v0 = vunpack.c.l.b16 %v2761_v53 }
 0x481   : > { %v3998_v14 = vshrl.u32 %v3892_v39, 16  ;;  %v4001_v30 = vshll.u32 %v3892_v39, 16  ;;  %v2858_v6 = vunpack.c.l.b16 %v2762_v1  ;;  %v3493_v12 = vor.u32 %v3492_v11, %v7111_v16  ;;  %v5260_v1 = vld [vmem:[#allocation7 + $0x228] sm:$0xff] }
 0x482   : > { %v7128_v8 = vor.u32 %v3500_v3, %v3497_v61  ;;  %v3992_v22 = vrot.slane %v3990_v49, 3  ;;  %v2859_v58 = vunpack.c.l.b16 %v2763_v34  ;;  %v3995_v21 = vrot.slane %v3993_v33, 4  ;;  %v7162_v34 = vld [vmem:[#allocation3 + $0x28] sm:$0xf]  ;;  %4319 = vmatpush.bf16.msrb.mxu1 %v5260_v1 }
 0x483   : > { %v4000_v40 = vrot.slane %v3998_v14, 3  ;;  %v4003_v19 = vrot.slane %v4001_v30, 4  ;;  %v2865_v46 = vpack.c.b16 %v2857_v0, %v2856_v20  ;;  %v4013_v28 = vor.u32 %v4012_v47, %v4009_v37 }
 0x484   : > { %v2866_v41 = vpack.c.b16 %v2859_v58, %v2858_v6  ;;  %v2839_v5 = vshrl.u32 %v7080_v13, 16  ;;  %v2842_v18 = vshll.u32 %v7080_v13, 16  ;;  %v7132_v26 = vor.u32 %v3535_v38, %v3532_v2 }
 0x485   : > { %v2871_v55 = vrot.slane %v2865_v46, 5  ;;  %v3850_v16 = vsel %vm7615_vm14, %v6922_v45, 0  ;;  %v3851_v11 = vsel %vm7701_vm6, %v6945_v59, 0  ;;  %v3996_v57 = vor.u32 %v3995_v21, %v3992_v22  ;;  %vm7736_vm6 = vmmov %vm7718_vm3 }
 0x486   : > { %v2872_v63 = vrot.slane %v2866_v41, 5  ;;  %v2841_v61 = vrot.slane %v2839_v5, 4  ;;  %v2844_v32 = vrot.slane %v2842_v18, 5  ;;  %v3886_v4 = vunpack.c.l.b16 %v3850_v16 }
 0x487   : > { %v7140_v23 = vor.u32 %v4003_v19, %v4000_v40  ;;  %v3504_v3 = vshrl.u32 %v2871_v55, 16  ;;  %v3887_v13 = vunpack.c.l.b16 %v3851_v11  ;;  %vm7732_vm15 = vcmask 1042432  }
 0x488   : > { %v2873_v48 = vsel %vm7732_vm15, %v2871_v55, %v2872_v63  ;;  %v7143_v60 = vor.u32 %v2844_v32, %v2841_v61  ;;  %vm7733_vm14 = vnez %v7702_v44  ;;  %vm7734_vm8 = vnez %v7703_v17  ;;  %3434 = vmatmul.bf16.gmra.mxu3 %v7091_v31 }
 0x489   : > { %v2764_v27 = vsel %vm7733_vm14, %v6891_v54, 0  ;;  %v2765_v56 = vsel %vm7734_vm8, %v6922_v45, 0  ;;  %v3502_v52 = vsel %vm7735_vm12, %v3493_v12, %v7128_v8  ;;  %v4014_v2 = vsel %vm7736_vm6, %v4013_v28, %v7132_v26  ;;  %v5265_v45 = vld [vmem:[%s7451_s11 + $0x10] sm:$0xff]  ;;  %vm7744_vm12 = vmmov %vm7726_vm0 }
 0x48a   : > { %v3507_v37 = vshll.u32 %v2871_v55, 16  ;;  %v3512_v47 = vshrl.u32 %v2873_v48, 16  ;;  %3794 = vmatmul.bf16.vlgmr.msra.gmra.mxu1 %v3502_v52  ;;  %v2846_v43 = vsel %vm7726_vm0, %v7095_v42, %v7143_v60  ;;  %v3893_v54 = vpack.c.b16 %v3887_v13, %v3886_v4  ;;  %4296 = vmatmul.bf16.vlgmr.msra.gmra.mxu2 %v4014_v2  ;;  %v5259_v42 = vld [vmem:[#allocation7 + $0x220] sm:$0xff]  ;;  %vm7745_vm6 = vmmov %vm7718_vm3 }
 0x48b   : > { %v2860_v39 = vunpack.c.l.b16 %v2764_v27  ;;  %v2861_v53 = vunpack.c.l.b16 %v2765_v56  ;;  %v3515_v38 = vshll.u32 %v2873_v48, 16  ;;  %v4005_v31 = vsel %vm7718_vm3, %v3996_v57, %v7140_v23  ;;  %4423 = vmatpush.bf16.msrb.mxu3 %v5265_v45  ;;  %4320 = vmatpush.bf16.msrb.mxu1 %v5259_v42  ;;  %v5264_v42 = vld [vmem:[%s7451_s11 + $0x8] sm:$0xff] }
 0x48c   : > { %v3506_v49 = vrot.slane %v3504_v3, 3  ;;  %v3557_v33 = vshrl.u32 %v2846_v43, 16  ;;  %v3560_v14 = vshll.u32 %v2846_v43, 16  ;;  %v4033_v30 = vshrl.u32 %v3893_v54, 16 }
 0x48d   : > { %v2867_v20 = vpack.c.b16 %v2861_v53, %v2860_v39  ;;  %v3897_v0 = vunpack.c.l.b16 %v7162_v34  ;;  %v3852_v6 = vsel %vm7708_vm10, %v6968_v29, 0  ;;  %v3509_v12 = vrot.slane %v3507_v37, 4  ;;  %4267 = vmatmul.bf16.vlgmr.msra.gmra.mxu0 %v4005_v31  ;;  %vm7738_vm10 = vmmov %vm7732_vm15 }
 0x48e   : > { %v3514_v22 = vrot.slane %v3512_v47, 3  ;;  %v4036_v58 = vshll.u32 %v3893_v54, 16  ;;  %v3517_v40 = vrot.slane %v3515_v38, 4  ;;  %v7737_v19 = vunpack.c.l.b16 %v6995_v25  ;;  %vm7743_vm15 = vmmov %vm7718_vm3 }
 0x48f   : > { %v2874_v21 = vrot.slane %v2867_v20, 5  ;;  %v3853_v28 = vsel %vm7710_vm13, %v6995_v25, 0  ;;  %v3888_v41 = vunpack.c.l.b16 %v3852_v6  ;;  %v3559_v5 = vrot.slane %v3557_v33, 3  ;;  %vm7746_vm0 = vmmov %vm7738_vm10  ;;  %4424 = vmatpush.bf16.msrb.mxu3 %v5264_v42 }
 0x490   : > { %v3898_v46 = vpack.c.b16 %v3897_v0, %v7737_v19  ;;  %v3889_v18 = vunpack.c.l.b16 %v3853_v28  ;;  %v3562_v55 = vrot.slane %v3560_v14, 4  ;;  %v4035_v10 = vrot.slane %v4033_v30, 3  ;;  %v5258_v14 = vld [vmem:[#allocation7 + $0x218] sm:$0xff]  ;;  %v2759_v30 = vld [vmem:[#allocation3 + $0x24] sm:$0x1] }
 0x491   : > { %v4038_v61 = vrot.slane %v4036_v58, 4  ;;  %v2875_v32 = vsel %vm7738_vm10, %v2872_v63, %v2874_v21  ;;  %vm7739_vm11 = vnez %v7712_v36  ;;  %v3510_v3 = vor.u32 %v3509_v12, %v3506_v49  ;;  %4321 = vmatpush.bf16.msrb.mxu1 %v5258_v14 }
 0x492   : > { %v3900_v16 = vshrl.u32 %v3898_v46, 16  ;;  %v3903_v11 = vshll.u32 %v3898_v46, 16  ;;  %v3894_v4 = vpack.c.b16 %v3889_v18, %v3888_v41  ;;  %v2766_v57 = vsel %vm7739_vm11, %v6945_v59, 0 }
 0x493   : > { %v7179_v13 = vor.u32 %v3517_v40, %v3514_v22  ;;  %vm7740_vm13 = vnez %v7713_v51  ;;  %v2862_v52 = vunpack.c.l.b16 %v2766_v57  ;;  %v7184_v2 = vor.u32 %v3562_v55, %v3559_v5 }
 0x494   : > { %v3902_v35 = vrot.slane %v3900_v16, 4  ;;  %v3905_v25 = vrot.slane %v3903_v11, 5  ;;  %v4051_v48 = vshrl.u32 %v3894_v4, 16  ;;  %v4054_v27 = vshll.u32 %v3894_v4, 16 }
 0x495   : > { %v2767_v56 = vsel %vm7740_vm13, %v6968_v29, 0  ;;  %v3539_v63 = vshrl.u32 %v2875_v32, 16  ;;  %v3542_v37 = vshll.u32 %v2875_v32, 16  ;;  %v4039_v43 = vor.u32 %v4038_v61, %v4035_v10 }
 0x496   : > { %v2863_v47 = vunpack.c.l.b16 %v2767_v56  ;;  %v7186_v54 = vor.u32 %v3905_v25, %v3902_v35  ;;  %v4053_v59 = vrot.slane %v4051_v48, 3  ;;  %v4056_v39 = vrot.slane %v4054_v27, 4  ;;  %v3855_v25 = vld [vmem:[#allocation3 + $0xc] sm:$0xf]  ;;  %v3856_v48 = vld [vmem:[#allocation3 + $0x10] sm:$0xf] }
 0x497   : > { %v3537_v45 = vsel %vm7741_vm7, %v7128_v8, %v7132_v26  ;;  %v3519_v29 = vsel %vm7742_vm9, %v3510_v3, %v7179_v13  ;;  %v3541_v38 = vrot.slane %v3539_v63, 3  ;;  %v3544_v31 = vrot.slane %v3542_v37, 4  ;;  %vm7748_vm7 = vmmov %vm7718_vm3  ;;  %v3857_v27 = vld [vmem:[#allocation3 + $0x14] sm:$0xf]  ;;  %v3858_v56 = vld [vmem:[#allocation3 + $0x18] sm:$0xf] }
 0x498   : > { %v2868_v53 = vpack.c.b16 %v2863_v47, %v2862_v52  ;;  %v7191_v1 = vor.u32 %v4056_v39, %v4053_v59  ;;  %3823 = vmatmul.bf16.vlgmr.msra.gmra.mxu3 %v3519_v29  ;;  %v3564_v33 = vsel %vm7743_vm15, %v7132_v26, %v7184_v2  ;;  %v3907_v20 = vsel %vm7744_vm12, %v7143_v60, %v7186_v54  ;;  %v5257_v26 = vld [vmem:[#allocation7 + $0x210] sm:$0xff]  ;;  %vm7749_vm9 = vmmov %vm7746_vm0  ;;  %v5255_v29 = vld [vmem:[#allocation7 + $0x200] sm:$0xff] }
 0x499   : > { %v4040_v22 = vsel %vm7718_vm3, %v7140_v23, %v4039_v43  ;;  %v3545_v58 = vor.u32 %v3544_v31, %v3541_v38  ;;  %v4060_v40 = vshrl.u32 %v3907_v20, 16  ;;  %vm7747_vm10 = vnez %v7720_v9  ;;  %4322 = vmatpush.bf16.msrb.mxu1 %v5257_v26  ;;  %vm7751_vm12 = vmmov %vm7718_vm3 }
 0x49a   : > { %v2876_v49 = vrot.slane %v2868_v53, 5  ;;  %3799 = vmatmul.bf16.gmra.mxu1 %v3537_v45  ;;  %v7203_v8 = vsel %vm7745_vm6, %v4039_v43, %v7191_v1  ;;  %4301 = vmatmul.bf16.gmra.mxu2 %v3564_v33  ;;  %v2768_v19 = vsel %vm7747_vm10, %v2759_v30, 0  ;;  %v4063_v46 = vshll.u32 %v3907_v20, 16  ;;  %vm7752_vm6 = vmmov %vm7718_vm3 }
 0x49b   : > { %v2864_v5 = vunpack.c.l.b16 %v2768_v19  ;;  %v4062_v55 = vrot.slane %v4060_v40, 3  ;;  %vm7750_vm15 = vnez %v7715_v50  ;;  %v3546_v52 = vsel %vm7751_vm12, %v7179_v13, %v3545_v58  ;;  %v5263_v50 = vld [vmem:[%s7451_s11] sm:$0xff] }
 0x49c   : > { %v2877_v0 = vsel %vm7746_vm0, %v2874_v21, %v2876_v49  ;;  %v4065_v10 = vrot.slane %v4063_v46, 4  ;;  %v3854_v57 = vsel %vm7750_vm15, %v7162_v34, 0  ;;  %v5256_v34 = vld [vmem:[#allocation7 + $0x208] sm:$0xff]  ;;  %v3864_v43 = vsel %vm6202_vm4, %v3855_v25, 0  ;;  %vm7753_vm0 = vmmov %vm7718_vm3  ;;  %4425 = vmatpush.bf16.msrb.mxu3 %v5263_v50 }
 0x49d   : > { %v3566_v6 = vshrl.u32 %v2877_v0, 16  ;;  %v3569_v12 = vshll.u32 %v2877_v0, 16  ;;  %4272 = vmatmul.bf16.gmra.mxu0 %v4040_v22  ;;  %v2869_v21 = vpack.c.b16 %v2864_v5, %v2864_v5  ;;  %v3890_v63 = vunpack.c.l.b16 %v3854_v57  ;;  %4323 = vmatpush.bf16.msrb.mxu1 %v5256_v34  ;;  %v3859_v46 = vld [vmem:[#allocation3 + $0x1c] sm:$0xf]  ;;  %vm7755_vm4 = vmmov %vm7753_vm0 }
 0x49e   : > { %v4066_v4 = vor.u32 %v4065_v10, %v4062_v55  ;;  %v3865_v13 = vsel %vm7650_vm5, %v3856_v48, 0  ;;  %v3866_v39 = vsel %vm6225_vm1, %v3857_v27, 0  ;;  %v3867_v53 = vsel %vm7731_vm2, %v3858_v56, 0  ;;  %vm7754_vm1 = vmmov %vm7753_vm0  ;;  %v3861_v56 = vld [vmem:[#allocation3 + $0x24] sm:$0xf] }
 0x49f   : > { %v3568_v28 = vrot.slane %v3566_v6, 3  ;;  %v3571_v41 = vrot.slane %v3569_v12, 4  ;;  %v2878_v11 = vrot.slane %v2869_v21, 5  ;;  %v3584_v45 = vshrl.u32 %v7143_v60, 16  ;;  %vm7756_vm5 = vmmov %vm7749_vm9 }
 0x4a0   : > { %v4067_v47 = vsel %vm7752_vm6, %v7184_v2, %v4066_v4  ;;  %v3587_v62 = vshll.u32 %v7143_v60, 16  ;;  %v4087_v38 = vshrl.u32 %v7186_v54, 16  ;;  %v4090_v31 = vshll.u32 %v7186_v54, 16  ;;  %vm7757_vm2 = vmmov %vm7753_vm0 }
 0x4a1   : > { %v3572_v18 = vor.u32 %v3571_v41, %v3568_v28  ;;  %v2879_v23 = vsel %vm7749_vm9, %v2876_v49, %v2878_v11  ;;  %v3895_v49 = vpack.c.b16 %v3890_v63, %v3890_v63  ;;  %v3917_v7 = vunpack.c.l.b16 %v3864_v43  ;;  %4324 = vmatpush.bf16.msrb.mxu1 %v5255_v29  ;;  %v3860_v28 = vld [vmem:[#allocation3 + $0x20] sm:$0xf]  ;;  %vm7760_vm3 = vmmov %vm7753_vm0 }
 0x4a2   : > { %v3593_v61 = vshrl.u32 %v2879_v23, 16  ;;  %v3596_v32 = vshll.u32 %v2879_v23, 16  ;;  %v3919_v20 = vunpack.c.l.b16 %v3866_v39  ;;  %v3920_v15 = vunpack.c.l.b16 %v3867_v53  ;;  %vm7765_vm9 = vmmov %vm7756_vm5 }
 0x4a3   : > { %v3573_v16 = vsel %vm7748_vm7, %v3545_v58, %v3572_v18  ;;  %v3586_v24 = vrot.slane %v3584_v45, 3  ;;  %v3589_v42 = vrot.slane %v3587_v62, 4  ;;  %v4089_v14 = vrot.slane %v4087_v38, 3  ;;  %v5438_v38 = vld [vmem:[%s5735_s20] sm:$0xff]  ;;  %vm7766_vm15 = vmmov %vm7753_vm0 }
 0x4a4   : > { %v3595_v3 = vrot.slane %v3593_v61, 3  ;;  %v3598_v35 = vrot.slane %v3596_v32, 4  ;;  %v4092_v30 = vrot.slane %v4090_v31, 4  ;;  %v4078_v0 = vshrl.u32 %v3895_v49, 16 }
 0x4a5   : > { %v4081_v6 = vshll.u32 %v3895_v49, 16  ;;  %v3927_v60 = vpack.c.b16 %v3920_v15, %v3919_v20  ;;  %v3590_v26 = vor.u32 %v3589_v42, %v3586_v24  ;;  %v3868_v21 = vsel %vm7733_vm14, %v3859_v46, 0  ;;  %vm7758_vm14 = vmmov %vm7753_vm0 }
 0x4a6   : > { %v3599_v37 = vor.u32 %v3598_v35, %v3595_v3  ;;  %v4093_v22 = vor.u32 %v4092_v30, %v4089_v14  ;;  %v4080_v58 = vrot.slane %v4078_v0, 3  ;;  %v3869_v55 = vsel %vm7734_vm8, %v3860_v28, 0  ;;  %vm7759_vm8 = vmmov %vm7756_vm5 }
 0x4a7   : > { %v4083_v54 = vrot.slane %v4081_v6, 4  ;;  %v3932_v19 = vrot.slane %v3927_v60, 5  ;;  %v3922_v32 = vunpack.c.l.b16 %v3869_v55 }
 0x4a8   : > { %3828 = vmatmul.bf16.gmra.mxu3 %v3546_v52  ;;  %v7228_v59 = vsel %vm7753_vm0, %v3572_v18, %v3599_v37  ;;  %v4094_v41 = vsel %vm7755_vm4, %v4066_v4, %v4093_v22  ;;  %v3862_v52 = vld [vmem:[#allocation3 + $0x28] sm:$0xf]  ;;  %v3870_v37 = vsel %vm7739_vm11, %v3861_v56, 0  ;;  %vm7761_vm11 = vcmask 523264  }
 0x4a9   : > { %v4084_v5 = vor.u32 %v4083_v54, %v4080_v58  ;;  %v3923_v43 = vunpack.c.l.b16 %v3870_v37  ;;  %v5440_v54 = vld [vmem:[%s5735_s20 + $0x10] sm:$0xff]  ;;  %vm7764_vm7 = vmmov %vm7761_vm11  ;;  %v5445_v37 = vld [vmem:[%s5735_s20 + $0x38] sm:$0xff] }
 0x4aa   : > { %3804 = vmatmul.bf16.gmra.mxu1 %v3564_v33  ;;  %4306 = vmatmul.bf16.gmra.mxu2 %v4067_v47  ;;  %v3918_v33 = vunpack.c.l.b16 %v3865_v13  ;;  %v3871_v47 = vsel %vm7740_vm13, %v3862_v52, 0  ;;  %vm7762_vm13 = vmmov %vm7756_vm5 }
 0x4ab   : > { %v3924_v13 = vunpack.c.l.b16 %v3871_v47  ;;  %vm7767_vm12 = vmmov %vm7764_vm7 }
 0x4ac   : > { %v3926_v12 = vpack.c.b16 %v3918_v33, %v3917_v7  ;;  %v3863_v33 = vld [vmem:[#allocation3 + $0x2c] sm:$0x1]  ;;  %vm7768_vm6 = vmmov %vm7764_vm7 }
 0x4ad   : > { %4277 = vmatmul.bf16.gmra.mxu0 %v7203_v8  ;;  %v3591_v8 = vsel %vm7754_vm1, %v7184_v2, %v3590_v26  ;;  %v4085_v2 = vsel %vm7757_vm2, %v7191_v1, %v4084_v5  ;;  %v3929_v29 = vpack.c.b16 %v3924_v13, %v3923_v43  ;;  %v3872_v20 = vsel %vm7747_vm10, %v3863_v33, 0  ;;  %vm7763_vm10 = vmmov %vm7753_vm0 }
 0x4ae   : > { %v3931_v40 = vrot.slane %v3926_v12, 5  ;;  %v3925_v30 = vunpack.c.l.b16 %v3872_v20 }
 0x4af   : > { %v3936_v49 = vrot.slane %v3929_v29, 5 }
 0x4b0   : > { %v3933_v18 = vsel %vm7756_vm5, %v3931_v40, %v3932_v19  ;;  %v4016_v10 = vshrl.u32 %v3931_v40, 16  ;;  %v4019_v11 = vshll.u32 %v3931_v40, 16  ;;  %v3930_v60 = vpack.c.b16 %v3925_v30, %v3925_v30  ;;  %v5441_v40 = vld [vmem:[%s5735_s20 + $0x18] sm:$0xff] }
 0x4b1   : > { %v4024_v23 = vshrl.u32 %v3933_v18, 16  ;;  %v4027_v61 = vshll.u32 %v3933_v18, 16 }
 0x4b2   : > { %v4018_v4 = vrot.slane %v4016_v10, 3  ;;  %v4021_v57 = vrot.slane %v4019_v11, 4  ;;  %v3938_v46 = vrot.slane %v3930_v60, 5 }
 0x4b3   : > { %v4026_v3 = vrot.slane %v4024_v23, 3  ;;  %v4029_v35 = vrot.slane %v4027_v61, 4 }
 0x4b4   : > { %v4022_v44 = vor.u32 %v4021_v57, %v4018_v4  ;;  %v5442_v4 = vld [vmem:[%s5735_s20 + $0x20] sm:$0xff]  ;;  %v5443_v57 = vld [vmem:[%s5735_s20 + $0x28] sm:$0xff] }
 0x4b5   : > { %v4030_v48 = vor.u32 %v4029_v35, %v4026_v3  ;;  %v4368_v3 = vpack.c.bf16 %v5443_v57, %v5442_v4 }
 0x4b7   : > { %v4031_v63 = vsel %vm7758_vm14, %v4022_v44, %v4030_v48 }
 0x4b8   : > { %3833 = vmatmul.bf16.gmra.mxu3 %v3573_v16  ;;  %v3921_v16 = vunpack.c.l.b16 %v3868_v21 }
 0x4ba   : > { %3809 = vmatmul.bf16.gmra.mxu1 %v3591_v8  ;;  %4311 = vmatmul.bf16.gmra.mxu2 %v4094_v41  ;;  %v3928_v25 = vpack.c.b16 %v3922_v32, %v3921_v16  ;;  %v3939_v8 = vsel %vm7765_vm9, %v3936_v49, %v3938_v46 }
 0x4bb   : > { %v4096_v5 = vshrl.u32 %v3939_v8, 16  ;;  %v4099_v18 = vshll.u32 %v3939_v8, 16 }
 0x4bc   : > { %v3934_v27 = vrot.slane %v3928_v25, 5 }
 0x4bd   : > { %4282 = vmatmul.bf16.gmra.mxu0 %v4085_v2  ;;  %v4098_v10 = vrot.slane %v4096_v5, 3  ;;  %v4101_v11 = vrot.slane %v4099_v18, 4 }
 0x4be   : > { %v3935_v1 = vsel %vm7759_vm8, %v3932_v19, %v3934_v27  ;;  %v3937_v51 = vsel %vm7762_vm13, %v3934_v27, %v3936_v49  ;;  %v4367_v19 = vpack.c.bf16 %v5441_v40, %v5440_v54 }
 0x4bf   : > { %v4042_v50 = vshrl.u32 %v3935_v1, 16  ;;  %v4045_v34 = vshll.u32 %v3935_v1, 16  ;;  %v4069_v24 = vshrl.u32 %v3937_v51, 16  ;;  %v4072_v42 = vshll.u32 %v3937_v51, 16  ;;  %v5444_v1 = vld [vmem:[%s5735_s20 + $0x30] sm:$0xff] }
 0x4c0   : > { %v4102_v16 = vor.u32 %v4101_v11, %v4098_v10  ;;  %v4369_v47 = vpack.c.bf16 %v5445_v37, %v5444_v1 }
 0x4c1   : > { %v4044_v53 = vrot.slane %v4042_v50, 3  ;;  %v4047_v45 = vrot.slane %v4045_v34, 4  ;;  %v4071_v6 = vrot.slane %v4069_v24, 3  ;;  %v4074_v12 = vrot.slane %v4072_v42, 4 }
 0x4c3   : > { %v4048_v62 = vor.u32 %v4047_v45, %v4044_v53  ;;  %v4075_v22 = vor.u32 %v4074_v12, %v4071_v6 }
 0x4c4   : > { %v3391_v17 = vpop.f32.mrf.mxu1 }
 0x4c5   : > { %v4049_v36 = vsel %vm7760_vm3, %v4030_v48, %v4048_v62  ;;  %v4076_v28 = vsel %vm7763_vm10, %v4048_v62, %v4075_v22  ;;  %v4103_v25 = vsel %vm7766_vm15, %v4075_v22, %v4102_v16 }
 0x4c8   : > { %3838 = vmatmul.bf16.gmra.mxu3 %v7228_v59  ;;  %v5439_v59 = vld [vmem:[%s5735_s20 + $0x8] sm:$0xff]  ;;  %v3449_v61 = vpop.f32.mrf.mxu0  ;;  %s465_s20 = sand.u32 1, %s5568_s26  }
 0x4c9   : > { %v4366_v31 = vpack.c.bf16 %v5439_v59, %v5438_v38  ;;  %v3766_v23 = vpop.f32.mrf.mxu2  ;;  %s4571_s15 = sshll.u32 %s465_s20, 6  ;;  %s4464_s29 = scalar_lea.sflag [#allocation6], %s465_s20 }
 0x4ca   : > { %4325 = vmatmul.bf16.vlgmr.msrb.gmra.mxu1 %v4031_v63  ;;  %s7356_s16 = scalar_lea.vmem [#allocation9], %s4571_s15 }
 0x4cb   : > { %s4476_s17 = sshll.u32 %s7356_s16, 4  ;;  %s4477_s17 = int_to_ptr.vmem [resolvable:$true] %s4476_s17 }
 0x4cc   : > { %v3393_v39 = vpop.f32.mrf.mxu1 }
 0x4d0   : > { %v3451_v27 = vpop.f32.mrf.mxu0 }
 0x4d1   : > { %v7282_v44 = vpop.f32.mrf.mxu2 }
 0x4d4   : > { %v3396_v7 = vpop.f32.mrf.mxu1 }
 0x4d8   : > { %5133 = vmatmul.msk.bf16.vlgmr.msrb.gmra.mxu3 %vm7761_vm11, %v4366_v31 }
 0x4da   : > { %4330 = vmatmul.bf16.gmra.mxu1 %v4049_v36  ;;  %v3454_v43 = vpop.f32.mrf.mxu0 }
 0x4db   : > { %v3420_v15 = vpop.f32.mrf.mxu3 }
 0x4dc   : > { %v7265_v14 = vadd.f32 %v3420_v15, %v3391_v17  ;;  %v3398_v0 = vpop.f32.mrf.mxu1  ;;  %v7290_v50 = vpop.f32.mrf.mxu2 }
 0x4de   : > { %v3450_v18 = vadd.f32 %v3449_v61, %v7265_v14  ;;  %v7348_v14 = vld [vmem:[%s7452_s12] ss:$0 sm:$0xff] }
 0x4e2   : > { %v7297_v29 = vpop.f32.mrf.mxu0 }
 0x4e3   : > { %v3422_v26 = vpop.f32.mrf.mxu3 }
 0x4e4   : > { %v7267_v58 = vadd.f32 %v3422_v26, %v3393_v39  ;;  %v3401_v9 = vpop.f32.mrf.mxu1  ;;  %v7295_v45 = vpop.f32.mrf.mxu2 }
 0x4e6   : > { %v3452_v57 = vadd.f32 %v3451_v27, %v7267_v58 }
 0x4e8   : > { %5134 = vmatmul.msk.bf16.gmra.mxu3 %vm7764_vm7, %v4367_v19 }
 0x4ea   : > { %4335 = vmatmul.bf16.gmra.mxu1 %v4076_v28  ;;  %v7303_v49 = vpop.f32.mrf.mxu0 }
 0x4eb   : > { %v3425_v41 = vpop.f32.mrf.mxu3 }
 0x4ec   : > { %v7274_v21 = vadd.f32 %v3425_v41, %v3396_v7  ;;  %v3403_v55 = vpop.f32.mrf.mxu1  ;;  %v7301_v31 = vpop.f32.mrf.mxu2 }
 0x4f2   : > { %v7309_v20 = vpop.f32.mrf.mxu0 }
 0x4f3   : > { %v3427_v2 = vpop.f32.mrf.mxu3 }
 0x4f4   : > { %v7276_v32 = vadd.f32 %v3427_v2, %v3398_v0  ;;  %v3406_v35 = vpop.f32.mrf.mxu1  ;;  %v7307_v36 = vpop.f32.mrf.mxu2 }
 0x4f8   : > { %5135 = vmatmul.msk.bf16.gmra.mxu3 %vm7767_vm12, %v4368_v3 }
 0x4fa   : > { %4340 = vmatmul.bf16.gmra.mxu1 %v4103_v25  ;;  %v7317_v0 = vpop.f32.mrf.mxu0 }
 0x4fb   : > { %v3430_v48 = vpop.f32.mrf.mxu3 }
 0x4fc   : > { %v7284_v17 = vadd.f32 %v3430_v48, %v3401_v9  ;;  %v3408_v56 = vpop.f32.mrf.mxu1  ;;  %v7313_v42 = vpop.f32.mrf.mxu2 }
 0x502   : > { %v7325_v26 = vpop.f32.mrf.mxu0 }
 0x503   : > { %v3432_v52 = vpop.f32.mrf.mxu3 }
 0x504   : > { %v7286_v63 = vadd.f32 %v3432_v52, %v3403_v55  ;;  %v7323_v60 = vpop.f32.mrf.mxu2  ;;  %v3767_v55 = vadd.f32 %v3766_v23, %v3450_v18  ;;  %v3769_v23 = vadd.f32 %v7282_v44, %v3452_v57 }
 0x507   : > { %v3795_v34 = vpop.f32.mrf.mxu1 }
 0x508   : > { %5136 = vmatmul.msk.bf16.gmra.mxu3 %vm7768_vm6, %v4369_v47  ;;  %v3796_v2 = vadd.f32 %v3795_v34, %v3767_v55  ;;  %v3455_v47 = vadd.f32 %v3454_v43, %v7274_v21  ;;  %v3457_v43 = vadd.f32 %v7297_v29, %v7276_v32  ;;  %v3460_v32 = vadd.f32 %v7303_v49, %v7284_v17 }
 0x509   : > { %v3462_v49 = vadd.f32 %v7309_v20, %v7286_v63 }
 0x50a   : > { %v4268_v19 = vpop.f32.mrf.mxu0 }
 0x50b   : > { %v3435_v13 = vpop.f32.mrf.mxu3 }
 0x50c   : > { %v7293_v39 = vadd.f32 %v3435_v13, %v3406_v35 }
 0x50d   : > { %v4297_v40 = vpop.f32.mrf.mxu2 }
 0x50e   : > { %v4298_v10 = vadd.f32 %v4297_v40, %v4268_v19  ;;  %v3465_v63 = vadd.f32 %v7317_v0, %v7293_v39 }
 0x50f   : > { %v3797_v53 = vpop.f32.mrf.mxu1 }
 0x510   : > { %v3798_v27 = vadd.f32 %v3797_v53, %v3769_v23  ;;  %v3772_v53 = vadd.f32 %v7290_v50, %v3455_v47 }
 0x512   : > { %v4270_v41 = vpop.f32.mrf.mxu0 }
 0x513   : > { %v3437_v62 = vpop.f32.mrf.mxu3 }
 0x514   : > { %v7299_v38 = vadd.f32 %v3437_v62, %v3408_v56  ;;  %v7343_v56 = vld [vmem:[%s7450_s10] ss:$0 sm:$0xff] }
 0x515   : > { %v4299_v28 = vpop.f32.mrf.mxu2 }
 0x516   : > { %v4300_v61 = vadd.f32 %v4299_v28, %v4270_v41  ;;  %v3467_v39 = vadd.f32 %v7325_v26, %v7299_v38 }
 0x517   : > { %v3800_v59 = vpop.f32.mrf.mxu1 }
 0x518   : > { %v3801_v28 = vadd.f32 %v3800_v59, %v3772_v53 }
 0x51a   : > { %v4273_v35 = vpop.f32.mrf.mxu0 }
 0x51b   : > { %v3824_v7 = vpop.f32.mrf.mxu3 }
 0x51c   : > { %v3825_v3 = vadd.f32 %v3824_v7, %v3796_v2  ;;  %v3774_v2 = vadd.f32 %v7295_v45, %v3457_v43  ;;  %v3777_v45 = vadd.f32 %v7301_v31, %v3460_v32  ;;  %v3779_v31 = vadd.f32 %v7307_v36, %v3462_v49 }
 0x51d   : > { %v4302_v4 = vpop.f32.mrf.mxu2 }
 0x51e   : > { %v4303_v19 = vadd.f32 %v4302_v4, %v4273_v35 }
 0x51f   : > { %v7305_v33 = vpop.f32.mrf.mxu1 }
 0x520   : > { %v3803_v57 = vadd.f32 %v7305_v33, %v3774_v2 }
 0x522   : > { %v4275_v7 = vpop.f32.mrf.mxu0 }
 0x523   : > { %v3826_v51 = vpop.f32.mrf.mxu3 }
 0x524   : > { %v3827_v34 = vadd.f32 %v3826_v51, %v3798_v27 }
 0x525   : > { %v4304_v62 = vpop.f32.mrf.mxu2 }
 0x526   : > { %v4305_v50 = vadd.f32 %v4304_v62, %v4275_v7 }
 0x527   : > { %v7311_v15 = vpop.f32.mrf.mxu1 }
 0x528   : > { %v3806_v33 = vadd.f32 %v7311_v15, %v3777_v45 }
 0x52b   : > { %v3829_v24 = vpop.f32.mrf.mxu3 }
 0x52c   : > { %v3830_v51 = vadd.f32 %v3829_v24, %v3801_v28  ;;  %v3782_v28 = vadd.f32 %v7313_v42, %v3465_v63 }
 0x52f   : > { %v7315_v30 = vpop.f32.mrf.mxu1 }
 0x530   : > { %v3808_v62 = vadd.f32 %v7315_v30, %v3779_v31 }
 0x533   : > { %v7319_v6 = vpop.f32.mrf.mxu3 }
 0x534   : > { %v3832_v29 = vadd.f32 %v7319_v6, %v3803_v57 }
 0x537   : > { %v7321_v12 = vpop.f32.mrf.mxu1 }
 0x53b   : > { %v7327_v22 = vpop.f32.mrf.mxu3 }
 0x53c   : > { %v3835_v6 = vadd.f32 %v7327_v22, %v3806_v33 }
 0x53f   : > { %v7329_v54 = vpop.f32.mrf.mxu1 }
 0x543   : > { %v7331_v46 = vpop.f32.mrf.mxu3 }
 0x544   : > { %v3837_v20 = vadd.f32 %v7331_v46, %v3808_v62 }
 0x547   : > { %v4326_v9 = vpop.f32.mrf.mxu1 }
 0x548   : > { %v4327_v16 = vadd.f32 %v4326_v9, %v4298_v10  ;;  %v4307_v10 = vpop.f32.mrf.mxu2 }
 0x54a   : > { %v4346_v48 = vadd.f32 %v4327_v16, %v3825_v3  ;;  %v4278_v16 = vpop.f32.mrf.mxu0 }
 0x54b   : > { %v7333_v8 = vpop.f32.mrf.mxu3  ;;  %v4308_v23 = vadd.f32 %v4307_v10, %v4278_v16 }
 0x54c   : > { %v4358_v1 = vadd.f32 %v7343_v56, %v4346_v48 }
 0x54f   : > { %v4328_v5 = vpop.f32.mrf.mxu1 }
 0x550   : > { %v4329_v52 = vadd.f32 %v4328_v5, %v4300_v61  ;;  %v4309_v61 = vpop.f32.mrf.mxu2 }
 0x552   : > { %v4347_v40 = vadd.f32 %v4329_v52, %v3827_v34 }
 0x553   : > { %v7336_v11 = vpop.f32.mrf.mxu3 }
 0x554   : > { %v4359_v5 = vadd.f32 %v7343_v56, %v4347_v40 }
 0x557   : > { %v4331_v25 = vpop.f32.mrf.mxu1 }
 0x558   : > { %v4332_v41 = vadd.f32 %v4331_v25, %v4303_v19  ;;  %v4312_v53 = vpop.f32.mrf.mxu2 }
 0x55a   : > { %v4348_v55 = vadd.f32 %v4332_v41, %v3830_v51 }
 0x55b   : > { %v4427_v58 = vpop.f32.mrf.mxu3 }
 0x55c   : > { %v4428_v37 = vadd.f32 %v7348_v14, %v4427_v58  ;;  %v4360_v35 = vadd.f32 %v7343_v56, %v4348_v55 }
 0x55e   : > { %v4447_v13 = vadd.f32 %v4428_v37, %v4358_v1  ;;  %v4280_v37 = vpop.f32.mrf.mxu0 }
 0x55f   : > { %v4333_v44 = vpop.f32.mrf.mxu1 }
 0x560   : > { %4455 = vst [vmem:[%s7356_s16] sm:$0xff] %v4447_v13  ;;  %v4334_v3 = vadd.f32 %v4333_v44, %v4305_v50  ;;  %v4310_v13 = vadd.f32 %v4309_v61, %v4280_v37 }
 0x562   : > { %v4349_v48 = vadd.f32 %v4334_v3, %v3832_v29 }
 0x563   : > { %v4429_v9 = vpop.f32.mrf.mxu3 }
 0x564   : > { %v4430_v21 = vadd.f32 %v7348_v14, %v4429_v9  ;;  %v4361_v52 = vadd.f32 %v7343_v56, %v4349_v48 }
 0x566   : > { %v4448_v18 = vadd.f32 %v4430_v21, %v4359_v5  ;;  %v4283_v19 = vpop.f32.mrf.mxu0  ;;  %v3811_v5 = vadd.f32 %v7321_v12, %v3782_v28  ;;  %v3784_v12 = vadd.f32 %v7323_v60, %v3467_v39 }
 0x567   : > { %v4336_v59 = vpop.f32.mrf.mxu1  ;;  %v4313_v30 = vadd.f32 %v4312_v53, %v4283_v19 }
 0x568   : > { %4456 = vst [vmem:[%s7356_s16 + $0x8] sm:$0xff] %v4448_v18  ;;  %v4337_v27 = vadd.f32 %v4336_v59, %v4308_v23  ;;  %v3840_v0 = vadd.f32 %v7333_v8, %v3811_v5  ;;  %v4314_v18 = vpop.f32.mrf.mxu2  ;;  %v3813_v16 = vadd.f32 %v7329_v54, %v3784_v12 }
 0x56a   : > { %v4350_v34 = vadd.f32 %v4337_v27, %v3835_v6  ;;  %v3842_v26 = vadd.f32 %v7336_v11, %v3813_v16 }
 0x56b   : > { %v4432_v4 = vpop.f32.mrf.mxu3 }
 0x56c   : > { %v4433_v25 = vadd.f32 %v7348_v14, %v4432_v4  ;;  %v4362_v40 = vadd.f32 %v7343_v56, %v4350_v34 }
 0x56e   : > { %v4449_v24 = vadd.f32 %v4433_v25, %v4360_v35  ;;  %v4285_v42 = vpop.f32.mrf.mxu0 }
 0x56f   : > { %v4338_v17 = vpop.f32.mrf.mxu1  ;;  %v4315_v2 = vadd.f32 %v4314_v18, %v4285_v42 }
 0x570   : > { %4457 = vst [vmem:[%s7356_s16 + $0x10] sm:$0xff] %v4449_v24  ;;  %v4339_v7 = vadd.f32 %v4338_v17, %v4310_v13 }
 0x572   : > { %v4351_v36 = vadd.f32 %v4339_v7, %v3837_v20 }
 0x573   : > { %v4434_v58 = vpop.f32.mrf.mxu3 }
 0x574   : > { %v4435_v1 = vadd.f32 %v7348_v14, %v4434_v58  ;;  %v4363_v43 = vadd.f32 %v7343_v56, %v4351_v36 }
 0x576   : > { %v4450_v47 = vadd.f32 %v4435_v1, %v4361_v52 }
 0x577   : > { %v4341_v9 = vpop.f32.mrf.mxu1 }
 0x578   : > { %4458 = vst [vmem:[%s7356_s16 + $0x18] sm:$0xff] %v4450_v47  ;;  %v4342_v21 = vadd.f32 %v4341_v9, %v4313_v30 }
 0x57a   : > { %v4352_v55 = vadd.f32 %v4342_v21, %v3840_v0 }
 0x57b   : > { %v4437_v15 = vpop.f32.mrf.mxu3 }
 0x57c   : > { %v4438_v44 = vadd.f32 %v7348_v14, %v4437_v15  ;;  %v4364_v59 = vadd.f32 %v7343_v56, %v4352_v55 }
 0x57e   : > { %v4451_v22 = vadd.f32 %v4438_v44, %v4362_v40 }
 0x57f   : > { %v4343_v10 = vpop.f32.mrf.mxu1 }
 0x580   : > { %4459 = vst [vmem:[%s7356_s16 + $0x20] sm:$0xff] %v4451_v22  ;;  %v4344_v4 = vadd.f32 %v4343_v10, %v4315_v2 }
 0x582   : > { %v4353_v57 = vadd.f32 %v4344_v4, %v3842_v26 }
 0x583   : > { %v4439_v41 = vpop.f32.mrf.mxu3 }
 0x584   : > { %v4440_v51 = vadd.f32 %v7348_v14, %v4439_v41  ;;  %v4365_v54 = vadd.f32 %v7343_v56, %v4353_v57 }
 0x586   : > { %v4452_v46 = vadd.f32 %v4440_v51, %v4363_v43 }
 0x588   : > { %4460 = vst [vmem:[%s7356_s16 + $0x28] sm:$0xff] %v4452_v46 }
 0x58b   : > { %v4442_v50 = vpop.f32.mrf.mxu3 }
 0x58c   : > { %v4443_v38 = vadd.f32 %v7348_v14, %v4442_v50 }
 0x58e   : > { %v4453_v8 = vadd.f32 %v4443_v38, %v4364_v59 }
 0x590   : > { %4461 = vst [vmem:[%s7356_s16 + $0x30] sm:$0xff] %v4453_v8 }
 0x593   : > { %v4444_v60 = vpop.f32.mrf.mxu3 }
 0x594   : > { %v4445_v3 = vadd.f32 %v7348_v14, %v4444_v60 }
 0x596   : > { %v4454_v35 = vadd.f32 %v4445_v3, %v4365_v54 }
 0x598   : > { %4462 = vst [vmem:[%s7356_s16 + $0x38] sm:$0xff] %v4454_v35 }
 0x599   : > { %5533 = shalt.err (!%p5530_p8)
}
 0x59a   : > { %s5585_s20 = smov 128   ;;  %s5586_s16 = smov 8  }
 0x59b   : > { %5304 = dma.vmem_to_hbm [thread:$0]  (%p5695_p5), %s4477_s17, 1024, %s4479_s22, %s4464_s29, %s5585_s20, %s5585_s20, %s5586_s16  }
 0x59c PF: > { %p5321_p9 = scmp.ge.s32.totalorder %s5576_s28, 2  ;;  %s4493_s30 = sand.u32 1, %s5564_s25  }
 0x59d   : > { %s4494_s15 = scalar_lea.sflag [#allocation6], %s4493_s30 }
 0x59e   : > { %p5314_p10 = pnand %p5321_p9, %p5699_p6 }
 0x5a0   : > { %p5315_p11 = pneg %p5314_p10 }
 0x5a2   : > { %5559 = dma.done.wait (%p5315_p11), %s4494_s15, 1024  }
 0x5a3   : > { %5561 = vsyncadd (%p5315_p11), %s4494_s15, 4294966272  ;;  %s7770_s28 = sld [smem:[#allocation14_spill]]  ;;  %s7773_s25 = smov %s5568_s26 }
 0x5a4   : > { %s7771_s23 = sld [smem:[#allocation13_spill]] }
 0x5a5   : > { %s7772_s27 = sld [smem:[#allocation15_spill]] }
 0x5a9   : > { %p25_p12 = scmp.ge.s32.totalorder %s7770_s28, 4  }
 0x5aa   : > { %s7774_s26 = smov %s7771_s23 }
 0x5ab   :  { %27 = sbr.rel (!%p25_p12) target bundleno = 5 (0x5), region = 128 }
 0x5b0   :  { %4500 = vsyncpa [#allocation5], 1 }
 0x5b1   :  { %4502 = vsyncpa [#allocation5 + $0x1], 1 }
 0x5b2   :  { %4503 = vsyncpa [#allocation8], 1 }
 0x5b3   :  { %4504 = vsyncpa [#allocation6], 1 }
 0x5b4   :  { %4506 = vsyncpa [#allocation6 + $0x1], 1 }

</bundles_post_ra>
